<compile_context>
chip_gen: v7x
topology: tpu7x:2x2x1
jax: 0.10.0
libtpu: 0.0.40
codegen_flags: <defaults>
</compile_context>

<pallas_src>
import functools

import jax
import jax.numpy as jnp
from jax import lax
from jax.experimental import pallas as pl
from jax.experimental.pallas import tpu as pltpu


def _round_up(x, m):
    return (x + m - 1) // m * m


def _pick_h_tile(H):
    # Largest multiple-of-8 divisor of H that is < H and <= 32 (keeps the VMEM
    # block small and gives the pipeline several steps); else use H itself.
    for th in (32, 24, 16, 8):
        if th < H and H % th == 0:
            return th
    return H


def _asppv2_kernel(x_ref, w_ref, b_ref, o_ref, acc_ref, *,
                   rates, max_d, TH, W, C_in_pad, TCO):
    """Grid = (C_out_tiles, N, H_tiles, R); the R axis is the reduction axis.

    x_ref  : (1, 1, TH+2*max_d, W+2*max_d, C_in_pad) bf16  halo'd input tile
    w_ref  : (1, 9*C_in_pad, TCO) bf16   weights of ONE dilation rate,
                                         rows ordered (ky, kx, c_in)
    b_ref  : (1, TCO) f32                sum of the per-branch biases
    o_ref  : (1, TH, W, TCO) bf16        summed output of all branches
    acc_ref: (TH*W, TCO) f32             VMEM accumulator, lives across R axis
    """
    r = pl.program_id(3)

    @pl.when(r == 0)
    def _init():
        acc_ref[...] = jnp.zeros_like(acc_ref)

    # One dilation rate per reduction step.  The rate must be static so the
    # tap offsets are static; branch over the compile-time tuple of rates with
    # pl.when -- exactly one branch executes per grid step.
    for i, d in enumerate(rates):

        @pl.when(r == i)
        def _one_rate(d=d):
            partial = jnp.zeros((TH * W, TCO), jnp.float32)
            # 9 per-tap matmuls (contraction = C_in_pad); no im2col slab.
            for ky in range(3):
                oy = max_d + d * (ky - 1)
                for kx in range(3):
                    ox = max_d + d * (kx - 1)
                    kidx = ky * 3 + kx
                    tap = x_ref[0, 0, oy:oy + TH, ox:ox + W, :]
                    tap = tap.reshape(TH * W, C_in_pad)
                    w_tap = w_ref[0, kidx * C_in_pad:(kidx + 1) * C_in_pad, :]
                    partial = partial + jnp.dot(
                        tap, w_tap, preferred_element_type=jnp.float32)
            acc_ref[...] += partial

    @pl.when(r == pl.num_programs(3) - 1)
    def _finalize():
        out = acc_ref[...] + b_ref[...]            # (1, TCO) bias-sum broadcast
        o_ref[...] = out.reshape(1, TH, W, TCO).astype(o_ref.dtype)


def asppv2_pallas(x_nchw, w_oihw, biases, rates):
    """x_nchw: (N, C_in, H, W); w_oihw: (R, C_out, C_in, 3, 3); biases: (R, C_out).

    Returns NCHW output, matching the PyTorch ASPPv2 forward.
    """
    rates = tuple(rates)
    R = len(rates)
    max_d = max(rates)
    N, C_in, H, W = x_nchw.shape
    C_out = w_oihw.shape[1]

    # Lane-dense output tile.  256-wide tiles better fill the v6e/v7x 2x256^2
    # MXU once C_out is large; the toy C_out pads to 128 so TCO=128 here.
    # TODO(synk): keep TCO=128 on v5e (4x128^2 MXU) via pltpu.get_tpu_info().
    C_out_p = _round_up(C_out, 128)
    TCO = 256 if C_out_p % 256 == 0 else 128

    # Pad C_in so per-tap weight slices stay sublane-aligned (padded input
    # channels are zero, so the extra contraction rows contribute nothing).
    C_in_pad = _round_up(C_in, 8)

    TH = _pick_h_tile(H)
    assert H % TH == 0
    # TODO(synk): pad H/W to multiples of 8 for shapes like 65x65 so the
    # (TH, W, C) -> (TH*W, C) reshape stays on (8,128) tile boundaries.
    assert W % 8 == 0, "pad W to a multiple of 8 for non-toy spatial sizes"
    n_h = H // TH

    Wp = W + 2 * max_d
    halo_h = TH + 2 * max_d

    # NCHW -> NHWC, spatial zero-pad, channel pad, bf16 cast (fused under jit).
    x = jnp.transpose(x_nchw, (0, 2, 3, 1))
    x = jnp.pad(x, ((0, 0), (max_d, max_d), (max_d, max_d), (0, C_in_pad - C_in)))
    x = x.astype(jnp.bfloat16)
    # Materialize halo'd H tiles: (N, n_h, TH+2*max_d, Wp, C_in_pad).
    # TODO(synk): at production sizes express the halo via an element-indexed
    # BlockSpec / manual DMA instead of duplicating halo rows in HBM.
    x_tiles = jnp.stack(
        [x[:, h * TH:h * TH + halo_h] for h in range(n_h)], axis=1)

    # Weights: (R, C_out, C_in, 3, 3) -> (R, 3, 3, C_in_pad, C_out_p)
    #          -> (R, 9*C_in_pad, C_out_p), rows ordered (ky, kx, c_in).
    w = jnp.transpose(w_oihw, (0, 3, 4, 2, 1))
    w = jnp.pad(w, ((0, 0), (0, 0), (0, 0),
                    (0, C_in_pad - C_in), (0, C_out_p - C_out)))
    w = w.reshape(R, 9 * C_in_pad, C_out_p).astype(jnp.bfloat16)

    # Sum of branch biases, folded in once at the end of the reduction.
    bias_sum = jnp.sum(biases.astype(jnp.float32), axis=0)
    bias_sum = jnp.pad(bias_sum, (0, C_out_p - C_out)).reshape(1, C_out_p)

    kernel = functools.partial(
        _asppv2_kernel, rates=rates, max_d=max_d, TH=TH, W=W,
        C_in_pad=C_in_pad, TCO=TCO)

    # VMEM budget from actual block sizes (x2 for double buffering) + headroom,
    # capped well below v7x's 64 MiB physical VMEM per TensorCore.
    x_blk = halo_h * Wp * C_in_pad * 2
    w_blk = 9 * C_in_pad * TCO * 2
    o_blk = TH * W * TCO * 2
    acc_blk = TH * W * TCO * 4
    vmem_bytes = 2 * (x_blk + w_blk + TCO * 4 + o_blk) + acc_blk + (8 << 20)
    vmem_bytes = int(max(16 << 20, min(vmem_bytes, 48 << 20)))

    out_nhwc = pl.pallas_call(
        kernel,
        out_shape=jax.ShapeDtypeStruct((N, H, W, C_out_p), jnp.bfloat16),
        grid_spec=pltpu.PrefetchScalarGridSpec(
            num_scalar_prefetch=0,
            # C_out tiles outermost (weight/bias block indices constant along
            # the inner batch / spatial axes); rate-reduction axis innermost.
            grid=(C_out_p // TCO, N, n_h, R),
            in_specs=[
                pl.BlockSpec((1, 1, halo_h, Wp, C_in_pad),
                             lambda co, n, h, r: (n, h, 0, 0, 0)),
                pl.BlockSpec((1, 9 * C_in_pad, TCO),
                             lambda co, n, h, r: (r, 0, co)),
                pl.BlockSpec((1, TCO), lambda co, n, h, r: (0, co)),
            ],
            out_specs=pl.BlockSpec((1, TH, W, TCO),
                                   lambda co, n, h, r: (n, h, 0, co)),
            scratch_shapes=[pltpu.VMEM((TH * W, TCO), jnp.float32)],
        ),
        compiler_params=pltpu.CompilerParams(
            dimension_semantics=("parallel", "parallel", "parallel", "arbitrary"),
            vmem_limit_bytes=vmem_bytes,
        ),
    )(x_tiles, w, bias_sum)

    # Drop channel padding and return NCHW / input dtype to match the torch
    # module.  TODO(synk): if the consumer takes NHWC bf16, return out_nhwc
    # directly and skip this extra HBM pass.
    out = out_nhwc[..., :C_out].astype(x_nchw.dtype)
    return jnp.transpose(out, (0, 3, 1, 2))


# Jit so the transpose/pad/cast prep and the output slice/transpose fuse with
# the surrounding graph (rates is static).
asppv2 = jax.jit(asppv2_pallas, static_argnames=("rates",))


def asppv2_reference(x_nchw, w_oihw, biases, rates):
    """Pure-JAX f32 reference: sum of dilated 3x3 convs + biases (torch semantics)."""
    out = None
    for r, d in enumerate(rates):
        y = lax.conv_general_dilated(
            x_nchw, w_oihw[r],
            window_strides=(1, 1),
            padding=((d, d), (d, d)),
            rhs_dilation=(d, d),
            dimension_numbers=("NCHW", "OIHW", "NCHW"),
        ) + biases[r][None, :, None, None]
        out = y if out is None else out + y
    return out


if __name__ == "__main__":
    # Small synthetic configuration consistent with ASPPv2(in_channels, atrous_rates, ...)
    N, C_in, H, W = 2, 4, 16, 16
    C_out = 8
    rates = (1, 2, 4)
    R = len(rates)

    key = jax.random.PRNGKey(0)
    k_x, k_w, k_b = jax.random.split(key, 3)

    x_nchw = jax.random.normal(k_x, (N, C_in, H, W), dtype=jnp.float32)
    # PyTorch Conv2d weights are OIHW per branch.
    w_oihw = jax.random.normal(k_w, (R, C_out, C_in, 3, 3), dtype=jnp.float32) * 0.1
    biases = jax.random.normal(k_b, (R, C_out), dtype=jnp.float32) * 0.1

    out = asppv2(x_nchw, w_oihw, biases, rates=rates)
    out = jax.block_until_ready(out)

    ref = asppv2_reference(x_nchw, w_oihw, biases, rates)
    assert out.shape == (N, C_out, H, W)
    max_err = float(jnp.max(jnp.abs(out - ref)))
    # Expected error vs. the all-f32 reference: bf16 operand rounding grows
    # ~sqrt(K) with the contraction length (K=9*R*C_in=108 here) plus one bf16
    # rounding of the stored output (~0.4% relative).  Tolerance sized for that.
    assert jnp.allclose(out, ref, atol=5e-2, rtol=1e-1), (
        f"mismatch vs reference conv (max abs err {max_err})")
    print("KERNEL_OK")
</pallas_src>

<mosaic_0001>
module attributes {stable_mosaic.version = 11 : i64} {
  func.func @_asppv2_kernel(%arg0: i32, %arg1: i32, %arg2: i32, %arg3: i32, %arg4: memref<1x1x16x24x8xbf16, #tpu.memory_space<vmem>>, %arg5: memref<1x72x128xbf16, #tpu.memory_space<vmem>>, %arg6: memref<1x128xf32, #tpu.memory_space<vmem>>, %arg7: memref<1x8x16x128xbf16, #tpu.memory_space<vmem>>, %arg8: memref<128x128xf32, #tpu.memory_space<vmem>>) attributes {dimension_semantics = [#tpu.dimension_semantics<parallel>, #tpu.dimension_semantics<parallel>, #tpu.dimension_semantics<parallel>, #tpu.dimension_semantics<arbitrary>], iteration_bounds = array<i64: 1, 2, 2, 3>, scalar_prefetch = 0 : i64, scratch_operands = 1 : i64, tpu.core_type = #tpu.core_type<tc>, window_params = [{transform_indices = @transform_0, window_bounds = array<i64: 1, 1, 16, 24, 8>}, {transform_indices = @transform_1, window_bounds = array<i64: 1, 72, 128>}, {transform_indices = @transform_2, window_bounds = array<i64: 1, 128>}, {transform_indices = @transform_3, window_bounds = array<i64: 1, 8, 16, 128>}]} {
    %c0_i32 = arith.constant 0 : i32
    %0 = arith.cmpi eq, %arg3, %c0_i32 : i32
    %1 = arith.extui %0 : i1 to i32
    %c0_i32_0 = arith.constant 0 : i32
    %2 = arith.cmpi ne, %1, %c0_i32_0 : i32
    scf.if %2 {
      %cst = arith.constant 0.000000e+00 : f32
      %15 = vector.broadcast %cst : f32 to vector<128x128xf32>
      %c0 = arith.constant 0 : index
      %c0_7 = arith.constant 0 : index
      %16 = vector.load %arg8[%c0, %c0_7] : memref<128x128xf32, #tpu.memory_space<vmem>>, vector<128x128xf32>
      tpu.vector_store %arg8[%c0, %c0_7], %15 {strides = array<i32>} : memref<128x128xf32, #tpu.memory_space<vmem>>, vector<128x128xf32>,
    } else {
    }
    %c0_i32_1 = arith.constant 0 : i32
    %3 = arith.cmpi eq, %arg3, %c0_i32_1 : i32
    %4 = arith.extui %3 : i1 to i32
    %c0_i32_2 = arith.constant 0 : i32
    %5 = arith.cmpi ne, %4, %c0_i32_2 : i32
    scf.if %5 {
      %cst = arith.constant 0.000000e+00 : f32
      %15 = vector.broadcast %cst : f32 to vector<128x128xf32>
      %c0 = arith.constant 0 : index
      %c0_7 = arith.constant 0 : index
      %c3 = arith.constant 3 : index
      %c3_8 = arith.constant 3 : index
      %c0_9 = arith.constant 0 : index
      %16 = vector.load %arg4[%c0, %c0_7, %c3, %c3_8, %c0_9] : memref<1x1x16x24x8xbf16, #tpu.memory_space<vmem>>, vector<1x1x8x16x8xbf16>
      %17 = vector.shape_cast %16 : vector<1x1x8x16x8xbf16> to vector<8x16x8xbf16>
      %18 = vector.shape_cast %17 : vector<8x16x8xbf16> to vector<128x8xbf16>
      %c0_10 = arith.constant 0 : index
      %c0_11 = arith.constant 0 : index
      %c0_12 = arith.constant 0 : index
      %19 = vector.load %arg5[%c0_10, %c0_11, %c0_12] : memref<1x72x128xbf16, #tpu.memory_space<vmem>>, vector<1x8x128xbf16>
      %20 = vector.shape_cast %19 : vector<1x8x128xbf16> to vector<8x128xbf16>
      %cst_13 = arith.constant dense<0.000000e+00> : vector<128x128xf32>
      %21 = tpu.matmul %18, %20, %cst_13 {dimension_numbers = #tpu.dot_dimension_numbers<[1], [0], [0], [1], [0, 0, 1, 1], [], []>} : vector<128x8xbf16>, vector<8x128xbf16>, vector<128x128xf32> -> vector<128x128xf32>
      %22 = arith.addf %15, %21 : vector<128x128xf32>
      %c0_14 = arith.constant 0 : index
      %c0_15 = arith.constant 0 : index
      %c3_16 = arith.constant 3 : index
      %c4 = arith.constant 4 : index
      %c0_17 = arith.constant 0 : index
      %23 = vector.load %arg4[%c0_14, %c0_15, %c3_16, %c4, %c0_17] : memref<1x1x16x24x8xbf16, #tpu.memory_space<vmem>>, vector<1x1x8x16x8xbf16>
      %24 = vector.shape_cast %23 : vector<1x1x8x16x8xbf16> to vector<8x16x8xbf16>
      %25 = vector.shape_cast %24 : vector<8x16x8xbf16> to vector<128x8xbf16>
      %c0_18 = arith.constant 0 : index
      %c8 = arith.constant 8 : index
      %c0_19 = arith.constant 0 : index
      %26 = vector.load %arg5[%c0_18, %c8, %c0_19] : memref<1x72x128xbf16, #tpu.memory_space<vmem>>, vector<1x8x128xbf16>
      %27 = vector.shape_cast %26 : vector<1x8x128xbf16> to vector<8x128xbf16>
      %cst_20 = arith.constant dense<0.000000e+00> : vector<128x128xf32>
      %28 = tpu.matmul %25, %27, %cst_20 {dimension_numbers = #tpu.dot_dimension_numbers<[1], [0], [0], [1], [0, 0, 1, 1], [], []>} : vector<128x8xbf16>, vector<8x128xbf16>, vector<128x128xf32> -> vector<128x128xf32>
      %29 = arith.addf %22, %28 : vector<128x128xf32>
      %c0_21 = arith.constant 0 : index
      %c0_22 = arith.constant 0 : index
      %c3_23 = arith.constant 3 : index
      %c5 = arith.constant 5 : index
      %c0_24 = arith.constant 0 : index
      %30 = vector.load %arg4[%c0_21, %c0_22, %c3_23, %c5, %c0_24] : memref<1x1x16x24x8xbf16, #tpu.memory_space<vmem>>, vector<1x1x8x16x8xbf16>
      %31 = vector.shape_cast %30 : vector<1x1x8x16x8xbf16> to vector<8x16x8xbf16>
      %32 = vector.shape_cast %31 : vector<8x16x8xbf16> to vector<128x8xbf16>
      %c0_25 = arith.constant 0 : index
      %c16 = arith.constant 16 : index
      %c0_26 = arith.constant 0 : index
      %33 = vector.load %arg5[%c0_25, %c16, %c0_26] : memref<1x72x128xbf16, #tpu.memory_space<vmem>>, vector<1x8x128xbf16>
      %34 = vector.shape_cast %33 : vector<1x8x128xbf16> to vector<8x128xbf16>
      %cst_27 = arith.constant dense<0.000000e+00> : vector<128x128xf32>
      %35 = tpu.matmul %32, %34, %cst_27 {dimension_numbers = #tpu.dot_dimension_numbers<[1], [0], [0], [1], [0, 0, 1, 1], [], []>} : vector<128x8xbf16>, vector<8x128xbf16>, vector<128x128xf32> -> vector<128x128xf32>
      %36 = arith.addf %29, %35 : vector<128x128xf32>
      %c0_28 = arith.constant 0 : index
      %c0_29 = arith.constant 0 : index
      %c4_30 = arith.constant 4 : index
      %c3_31 = arith.constant 3 : index
      %c0_32 = arith.constant 0 : index
      %37 = vector.load %arg4[%c0_28, %c0_29, %c4_30, %c3_31, %c0_32] : memref<1x1x16x24x8xbf16, #tpu.memory_space<vmem>>, vector<1x1x8x16x8xbf16>
      %38 = vector.shape_cast %37 : vector<1x1x8x16x8xbf16> to vector<8x16x8xbf16>
      %39 = vector.shape_cast %38 : vector<8x16x8xbf16> to vector<128x8xbf16>
      %c0_33 = arith.constant 0 : index
      %c24 = arith.constant 24 : index
      %c0_34 = arith.constant 0 : index
      %40 = vector.load %arg5[%c0_33, %c24, %c0_34] : memref<1x72x128xbf16, #tpu.memory_space<vmem>>, vector<1x8x128xbf16>
      %41 = vector.shape_cast %40 : vector<1x8x128xbf16> to vector<8x128xbf16>
      %cst_35 = arith.constant dense<0.000000e+00> : vector<128x128xf32>
      %42 = tpu.matmul %39, %41, %cst_35 {dimension_numbers = #tpu.dot_dimension_numbers<[1], [0], [0], [1], [0, 0, 1, 1], [], []>} : vector<128x8xbf16>, vector<8x128xbf16>, vector<128x128xf32> -> vector<128x128xf32>
      %43 = arith.addf %36, %42 : vector<128x128xf32>
      %c0_36 = arith.constant 0 : index
      %c0_37 = arith.constant 0 : index
      %c4_38 = arith.constant 4 : index
      %c4_39 = arith.constant 4 : index
      %c0_40 = arith.constant 0 : index
      %44 = vector.load %arg4[%c0_36, %c0_37, %c4_38, %c4_39, %c0_40] : memref<1x1x16x24x8xbf16, #tpu.memory_space<vmem>>, vector<1x1x8x16x8xbf16>
      %45 = vector.shape_cast %44 : vector<1x1x8x16x8xbf16> to vector<8x16x8xbf16>
      %46 = vector.shape_cast %45 : vector<8x16x8xbf16> to vector<128x8xbf16>
      %c0_41 = arith.constant 0 : index
      %c32 = arith.constant 32 : index
      %c0_42 = arith.constant 0 : index
      %47 = vector.load %arg5[%c0_41, %c32, %c0_42] : memref<1x72x128xbf16, #tpu.memory_space<vmem>>, vector<1x8x128xbf16>
      %48 = vector.shape_cast %47 : vector<1x8x128xbf16> to vector<8x128xbf16>
      %cst_43 = arith.constant dense<0.000000e+00> : vector<128x128xf32>
      %49 = tpu.matmul %46, %48, %cst_43 {dimension_numbers = #tpu.dot_dimension_numbers<[1], [0], [0], [1], [0, 0, 1, 1], [], []>} : vector<128x8xbf16>, vector<8x128xbf16>, vector<128x128xf32> -> vector<128x128xf32>
      %50 = arith.addf %43, %49 : vector<128x128xf32>
      %c0_44 = arith.constant 0 : index
      %c0_45 = arith.constant 0 : index
      %c4_46 = arith.constant 4 : index
      %c5_47 = arith.constant 5 : index
      %c0_48 = arith.constant 0 : index
      %51 = vector.load %arg4[%c0_44, %c0_45, %c4_46, %c5_47, %c0_48] : memref<1x1x16x24x8xbf16, #tpu.memory_space<vmem>>, vector<1x1x8x16x8xbf16>
      %52 = vector.shape_cast %51 : vector<1x1x8x16x8xbf16> to vector<8x16x8xbf16>
      %53 = vector.shape_cast %52 : vector<8x16x8xbf16> to vector<128x8xbf16>
      %c0_49 = arith.constant 0 : index
      %c40 = arith.constant 40 : index
      %c0_50 = arith.constant 0 : index
      %54 = vector.load %arg5[%c0_49, %c40, %c0_50] : memref<1x72x128xbf16, #tpu.memory_space<vmem>>, vector<1x8x128xbf16>
      %55 = vector.shape_cast %54 : vector<1x8x128xbf16> to vector<8x128xbf16>
      %cst_51 = arith.constant dense<0.000000e+00> : vector<128x128xf32>
      %56 = tpu.matmul %53, %55, %cst_51 {dimension_numbers = #tpu.dot_dimension_numbers<[1], [0], [0], [1], [0, 0, 1, 1], [], []>} : vector<128x8xbf16>, vector<8x128xbf16>, vector<128x128xf32> -> vector<128x128xf32>
      %57 = arith.addf %50, %56 : vector<128x128xf32>
      %c0_52 = arith.constant 0 : index
      %c0_53 = arith.constant 0 : index
      %c5_54 = arith.constant 5 : index
      %c3_55 = arith.constant 3 : index
      %c0_56 = arith.constant 0 : index
      %58 = vector.load %arg4[%c0_52, %c0_53, %c5_54, %c3_55, %c0_56] : memref<1x1x16x24x8xbf16, #tpu.memory_space<vmem>>, vector<1x1x8x16x8xbf16>
      %59 = vector.shape_cast %58 : vector<1x1x8x16x8xbf16> to vector<8x16x8xbf16>
      %60 = vector.shape_cast %59 : vector<8x16x8xbf16> to vector<128x8xbf16>
      %c0_57 = arith.constant 0 : index
      %c48 = arith.constant 48 : index
      %c0_58 = arith.constant 0 : index
      %61 = vector.load %arg5[%c0_57, %c48, %c0_58] : memref<1x72x128xbf16, #tpu.memory_space<vmem>>, vector<1x8x128xbf16>
      %62 = vector.shape_cast %61 : vector<1x8x128xbf16> to vector<8x128xbf16>
      %cst_59 = arith.constant dense<0.000000e+00> : vector<128x128xf32>
      %63 = tpu.matmul %60, %62, %cst_59 {dimension_numbers = #tpu.dot_dimension_numbers<[1], [0], [0], [1], [0, 0, 1, 1], [], []>} : vector<128x8xbf16>, vector<8x128xbf16>, vector<128x128xf32> -> vector<128x128xf32>
      %64 = arith.addf %57, %63 : vector<128x128xf32>
      %c0_60 = arith.constant 0 : index
      %c0_61 = arith.constant 0 : index
      %c5_62 = arith.constant 5 : index
      %c4_63 = arith.constant 4 : index
      %c0_64 = arith.constant 0 : index
      %65 = vector.load %arg4[%c0_60, %c0_61, %c5_62, %c4_63, %c0_64] : memref<1x1x16x24x8xbf16, #tpu.memory_space<vmem>>, vector<1x1x8x16x8xbf16>
      %66 = vector.shape_cast %65 : vector<1x1x8x16x8xbf16> to vector<8x16x8xbf16>
      %67 = vector.shape_cast %66 : vector<8x16x8xbf16> to vector<128x8xbf16>
      %c0_65 = arith.constant 0 : index
      %c56 = arith.constant 56 : index
      %c0_66 = arith.constant 0 : index
      %68 = vector.load %arg5[%c0_65, %c56, %c0_66] : memref<1x72x128xbf16, #tpu.memory_space<vmem>>, vector<1x8x128xbf16>
      %69 = vector.shape_cast %68 : vector<1x8x128xbf16> to vector<8x128xbf16>
      %cst_67 = arith.constant dense<0.000000e+00> : vector<128x128xf32>
      %70 = tpu.matmul %67, %69, %cst_67 {dimension_numbers = #tpu.dot_dimension_numbers<[1], [0], [0], [1], [0, 0, 1, 1], [], []>} : vector<128x8xbf16>, vector<8x128xbf16>, vector<128x128xf32> -> vector<128x128xf32>
      %71 = arith.addf %64, %70 : vector<128x128xf32>
      %c0_68 = arith.constant 0 : index
      %c0_69 = arith.constant 0 : index
      %c5_70 = arith.constant 5 : index
      %c5_71 = arith.constant 5 : index
      %c0_72 = arith.constant 0 : index
      %72 = vector.load %arg4[%c0_68, %c0_69, %c5_70, %c5_71, %c0_72] : memref<1x1x16x24x8xbf16, #tpu.memory_space<vmem>>, vector<1x1x8x16x8xbf16>
      %73 = vector.shape_cast %72 : vector<1x1x8x16x8xbf16> to vector<8x16x8xbf16>
      %74 = vector.shape_cast %73 : vector<8x16x8xbf16> to vector<128x8xbf16>
      %c0_73 = arith.constant 0 : index
      %c64 = arith.constant 64 : index
      %c0_74 = arith.constant 0 : index
      %75 = vector.load %arg5[%c0_73, %c64, %c0_74] : memref<1x72x128xbf16, #tpu.memory_space<vmem>>, vector<1x8x128xbf16>
      %76 = vector.shape_cast %75 : vector<1x8x128xbf16> to vector<8x128xbf16>
      %cst_75 = arith.constant dense<0.000000e+00> : vector<128x128xf32>
      %77 = tpu.matmul %74, %76, %cst_75 {dimension_numbers = #tpu.dot_dimension_numbers<[1], [0], [0], [1], [0, 0, 1, 1], [], []>} : vector<128x8xbf16>, vector<8x128xbf16>, vector<128x128xf32> -> vector<128x128xf32>
      %78 = arith.addf %71, %77 : vector<128x128xf32>
      %c0_76 = arith.constant 0 : index
      %c0_77 = arith.constant 0 : index
      %79 = vector.load %arg8[%c0_76, %c0_77] : memref<128x128xf32, #tpu.memory_space<vmem>>, vector<128x128xf32>
      %80 = arith.addf %79, %78 : vector<128x128xf32>
      %c0_78 = arith.constant 0 : index
      %c0_79 = arith.constant 0 : index
      %81 = vector.load %arg8[%c0_78, %c0_79] : memref<128x128xf32, #tpu.memory_space<vmem>>, vector<128x128xf32>
      tpu.vector_store %arg8[%c0_78, %c0_79], %80 {strides = array<i32>} : memref<128x128xf32, #tpu.memory_space<vmem>>, vector<128x128xf32>,
    } else {
    }
    %c1_i32 = arith.constant 1 : i32
    %6 = arith.cmpi eq, %arg3, %c1_i32 : i32
    %7 = arith.extui %6 : i1 to i32
    %c0_i32_3 = arith.constant 0 : i32
    %8 = arith.cmpi ne, %7, %c0_i32_3 : i32
    scf.if %8 {
      %cst = arith.constant 0.000000e+00 : f32
      %15 = vector.broadcast %cst : f32 to vector<128x128xf32>
      %c0 = arith.constant 0 : index
      %c0_7 = arith.constant 0 : index
      %c2 = arith.constant 2 : index
      %c2_8 = arith.constant 2 : index
      %c0_9 = arith.constant 0 : index
      %16 = vector.load %arg4[%c0, %c0_7, %c2, %c2_8, %c0_9] : memref<1x1x16x24x8xbf16, #tpu.memory_space<vmem>>, vector<1x1x8x16x8xbf16>
      %17 = vector.shape_cast %16 : vector<1x1x8x16x8xbf16> to vector<8x16x8xbf16>
      %18 = vector.shape_cast %17 : vector<8x16x8xbf16> to vector<128x8xbf16>
      %c0_10 = arith.constant 0 : index
      %c0_11 = arith.constant 0 : index
      %c0_12 = arith.constant 0 : index
      %19 = vector.load %arg5[%c0_10, %c0_11, %c0_12] : memref<1x72x128xbf16, #tpu.memory_space<vmem>>, vector<1x8x128xbf16>
      %20 = vector.shape_cast %19 : vector<1x8x128xbf16> to vector<8x128xbf16>
      %cst_13 = arith.constant dense<0.000000e+00> : vector<128x128xf32>
      %21 = tpu.matmul %18, %20, %cst_13 {dimension_numbers = #tpu.dot_dimension_numbers<[1], [0], [0], [1], [0, 0, 1, 1], [], []>} : vector<128x8xbf16>, vector<8x128xbf16>, vector<128x128xf32> -> vector<128x128xf32>
      %22 = arith.addf %15, %21 : vector<128x128xf32>
      %c0_14 = arith.constant 0 : index
      %c0_15 = arith.constant 0 : index
      %c2_16 = arith.constant 2 : index
      %c4 = arith.constant 4 : index
      %c0_17 = arith.constant 0 : index
      %23 = vector.load %arg4[%c0_14, %c0_15, %c2_16, %c4, %c0_17] : memref<1x1x16x24x8xbf16, #tpu.memory_space<vmem>>, vector<1x1x8x16x8xbf16>
      %24 = vector.shape_cast %23 : vector<1x1x8x16x8xbf16> to vector<8x16x8xbf16>
      %25 = vector.shape_cast %24 : vector<8x16x8xbf16> to vector<128x8xbf16>
      %c0_18 = arith.constant 0 : index
      %c8 = arith.constant 8 : index
      %c0_19 = arith.constant 0 : index
      %26 = vector.load %arg5[%c0_18, %c8, %c0_19] : memref<1x72x128xbf16, #tpu.memory_space<vmem>>, vector<1x8x128xbf16>
      %27 = vector.shape_cast %26 : vector<1x8x128xbf16> to vector<8x128xbf16>
      %cst_20 = arith.constant dense<0.000000e+00> : vector<128x128xf32>
      %28 = tpu.matmul %25, %27, %cst_20 {dimension_numbers = #tpu.dot_dimension_numbers<[1], [0], [0], [1], [0, 0, 1, 1], [], []>} : vector<128x8xbf16>, vector<8x128xbf16>, vector<128x128xf32> -> vector<128x128xf32>
      %29 = arith.addf %22, %28 : vector<128x128xf32>
      %c0_21 = arith.constant 0 : index
      %c0_22 = arith.constant 0 : index
      %c2_23 = arith.constant 2 : index
      %c6 = arith.constant 6 : index
      %c0_24 = arith.constant 0 : index
      %30 = vector.load %arg4[%c0_21, %c0_22, %c2_23, %c6, %c0_24] : memref<1x1x16x24x8xbf16, #tpu.memory_space<vmem>>, vector<1x1x8x16x8xbf16>
      %31 = vector.shape_cast %30 : vector<1x1x8x16x8xbf16> to vector<8x16x8xbf16>
      %32 = vector.shape_cast %31 : vector<8x16x8xbf16> to vector<128x8xbf16>
      %c0_25 = arith.constant 0 : index
      %c16 = arith.constant 16 : index
      %c0_26 = arith.constant 0 : index
      %33 = vector.load %arg5[%c0_25, %c16, %c0_26] : memref<1x72x128xbf16, #tpu.memory_space<vmem>>, vector<1x8x128xbf16>
      %34 = vector.shape_cast %33 : vector<1x8x128xbf16> to vector<8x128xbf16>
      %cst_27 = arith.constant dense<0.000000e+00> : vector<128x128xf32>
      %35 = tpu.matmul %32, %34, %cst_27 {dimension_numbers = #tpu.dot_dimension_numbers<[1], [0], [0], [1], [0, 0, 1, 1], [], []>} : vector<128x8xbf16>, vector<8x128xbf16>, vector<128x128xf32> -> vector<128x128xf32>
      %36 = arith.addf %29, %35 : vector<128x128xf32>
      %c0_28 = arith.constant 0 : index
      %c0_29 = arith.constant 0 : index
      %c4_30 = arith.constant 4 : index
      %c2_31 = arith.constant 2 : index
      %c0_32 = arith.constant 0 : index
      %37 = vector.load %arg4[%c0_28, %c0_29, %c4_30, %c2_31, %c0_32] : memref<1x1x16x24x8xbf16, #tpu.memory_space<vmem>>, vector<1x1x8x16x8xbf16>
      %38 = vector.shape_cast %37 : vector<1x1x8x16x8xbf16> to vector<8x16x8xbf16>
      %39 = vector.shape_cast %38 : vector<8x16x8xbf16> to vector<128x8xbf16>
      %c0_33 = arith.constant 0 : index
      %c24 = arith.constant 24 : index
      %c0_34 = arith.constant 0 : index
      %40 = vector.load %arg5[%c0_33, %c24, %c0_34] : memref<1x72x128xbf16, #tpu.memory_space<vmem>>, vector<1x8x128xbf16>
      %41 = vector.shape_cast %40 : vector<1x8x128xbf16> to vector<8x128xbf16>
      %cst_35 = arith.constant dense<0.000000e+00> : vector<128x128xf32>
      %42 = tpu.matmul %39, %41, %cst_35 {dimension_numbers = #tpu.dot_dimension_numbers<[1], [0], [0], [1], [0, 0, 1, 1], [], []>} : vector<128x8xbf16>, vector<8x128xbf16>, vector<128x128xf32> -> vector<128x128xf32>
      %43 = arith.addf %36, %42 : vector<128x128xf32>
      %c0_36 = arith.constant 0 : index
      %c0_37 = arith.constant 0 : index
      %c4_38 = arith.constant 4 : index
      %c4_39 = arith.constant 4 : index
      %c0_40 = arith.constant 0 : index
      %44 = vector.load %arg4[%c0_36, %c0_37, %c4_38, %c4_39, %c0_40] : memref<1x1x16x24x8xbf16, #tpu.memory_space<vmem>>, vector<1x1x8x16x8xbf16>
      %45 = vector.shape_cast %44 : vector<1x1x8x16x8xbf16> to vector<8x16x8xbf16>
      %46 = vector.shape_cast %45 : vector<8x16x8xbf16> to vector<128x8xbf16>
      %c0_41 = arith.constant 0 : index
      %c32 = arith.constant 32 : index
      %c0_42 = arith.constant 0 : index
      %47 = vector.load %arg5[%c0_41, %c32, %c0_42] : memref<1x72x128xbf16, #tpu.memory_space<vmem>>, vector<1x8x128xbf16>
      %48 = vector.shape_cast %47 : vector<1x8x128xbf16> to vector<8x128xbf16>
      %cst_43 = arith.constant dense<0.000000e+00> : vector<128x128xf32>
      %49 = tpu.matmul %46, %48, %cst_43 {dimension_numbers = #tpu.dot_dimension_numbers<[1], [0], [0], [1], [0, 0, 1, 1], [], []>} : vector<128x8xbf16>, vector<8x128xbf16>, vector<128x128xf32> -> vector<128x128xf32>
      %50 = arith.addf %43, %49 : vector<128x128xf32>
      %c0_44 = arith.constant 0 : index
      %c0_45 = arith.constant 0 : index
      %c4_46 = arith.constant 4 : index
      %c6_47 = arith.constant 6 : index
      %c0_48 = arith.constant 0 : index
      %51 = vector.load %arg4[%c0_44, %c0_45, %c4_46, %c6_47, %c0_48] : memref<1x1x16x24x8xbf16, #tpu.memory_space<vmem>>, vector<1x1x8x16x8xbf16>
      %52 = vector.shape_cast %51 : vector<1x1x8x16x8xbf16> to vector<8x16x8xbf16>
      %53 = vector.shape_cast %52 : vector<8x16x8xbf16> to vector<128x8xbf16>
      %c0_49 = arith.constant 0 : index
      %c40 = arith.constant 40 : index
      %c0_50 = arith.constant 0 : index
      %54 = vector.load %arg5[%c0_49, %c40, %c0_50] : memref<1x72x128xbf16, #tpu.memory_space<vmem>>, vector<1x8x128xbf16>
      %55 = vector.shape_cast %54 : vector<1x8x128xbf16> to vector<8x128xbf16>
      %cst_51 = arith.constant dense<0.000000e+00> : vector<128x128xf32>
      %56 = tpu.matmul %53, %55, %cst_51 {dimension_numbers = #tpu.dot_dimension_numbers<[1], [0], [0], [1], [0, 0, 1, 1], [], []>} : vector<128x8xbf16>, vector<8x128xbf16>, vector<128x128xf32> -> vector<128x128xf32>
      %57 = arith.addf %50, %56 : vector<128x128xf32>
      %c0_52 = arith.constant 0 : index
      %c0_53 = arith.constant 0 : index
      %c6_54 = arith.constant 6 : index
      %c2_55 = arith.constant 2 : index
      %c0_56 = arith.constant 0 : index
      %58 = vector.load %arg4[%c0_52, %c0_53, %c6_54, %c2_55, %c0_56] : memref<1x1x16x24x8xbf16, #tpu.memory_space<vmem>>, vector<1x1x8x16x8xbf16>
      %59 = vector.shape_cast %58 : vector<1x1x8x16x8xbf16> to vector<8x16x8xbf16>
      %60 = vector.shape_cast %59 : vector<8x16x8xbf16> to vector<128x8xbf16>
      %c0_57 = arith.constant 0 : index
      %c48 = arith.constant 48 : index
      %c0_58 = arith.constant 0 : index
      %61 = vector.load %arg5[%c0_57, %c48, %c0_58] : memref<1x72x128xbf16, #tpu.memory_space<vmem>>, vector<1x8x128xbf16>
      %62 = vector.shape_cast %61 : vector<1x8x128xbf16> to vector<8x128xbf16>
      %cst_59 = arith.constant dense<0.000000e+00> : vector<128x128xf32>
      %63 = tpu.matmul %60, %62, %cst_59 {dimension_numbers = #tpu.dot_dimension_numbers<[1], [0], [0], [1], [0, 0, 1, 1], [], []>} : vector<128x8xbf16>, vector<8x128xbf16>, vector<128x128xf32> -> vector<128x128xf32>
      %64 = arith.addf %57, %63 : vector<128x128xf32>
      %c0_60 = arith.constant 0 : index
      %c0_61 = arith.constant 0 : index
      %c6_62 = arith.constant 6 : index
      %c4_63 = arith.constant 4 : index
      %c0_64 = arith.constant 0 : index
      %65 = vector.load %arg4[%c0_60, %c0_61, %c6_62, %c4_63, %c0_64] : memref<1x1x16x24x8xbf16, #tpu.memory_space<vmem>>, vector<1x1x8x16x8xbf16>
      %66 = vector.shape_cast %65 : vector<1x1x8x16x8xbf16> to vector<8x16x8xbf16>
      %67 = vector.shape_cast %66 : vector<8x16x8xbf16> to vector<128x8xbf16>
      %c0_65 = arith.constant 0 : index
      %c56 = arith.constant 56 : index
      %c0_66 = arith.constant 0 : index
      %68 = vector.load %arg5[%c0_65, %c56, %c0_66] : memref<1x72x128xbf16, #tpu.memory_space<vmem>>, vector<1x8x128xbf16>
      %69 = vector.shape_cast %68 : vector<1x8x128xbf16> to vector<8x128xbf16>
      %cst_67 = arith.constant dense<0.000000e+00> : vector<128x128xf32>
      %70 = tpu.matmul %67, %69, %cst_67 {dimension_numbers = #tpu.dot_dimension_numbers<[1], [0], [0], [1], [0, 0, 1, 1], [], []>} : vector<128x8xbf16>, vector<8x128xbf16>, vector<128x128xf32> -> vector<128x128xf32>
      %71 = arith.addf %64, %70 : vector<128x128xf32>
      %c0_68 = arith.constant 0 : index
      %c0_69 = arith.constant 0 : index
      %c6_70 = arith.constant 6 : index
      %c6_71 = arith.constant 6 : index
      %c0_72 = arith.constant 0 : index
      %72 = vector.load %arg4[%c0_68, %c0_69, %c6_70, %c6_71, %c0_72] : memref<1x1x16x24x8xbf16, #tpu.memory_space<vmem>>, vector<1x1x8x16x8xbf16>
      %73 = vector.shape_cast %72 : vector<1x1x8x16x8xbf16> to vector<8x16x8xbf16>
      %74 = vector.shape_cast %73 : vector<8x16x8xbf16> to vector<128x8xbf16>
      %c0_73 = arith.constant 0 : index
      %c64 = arith.constant 64 : index
      %c0_74 = arith.constant 0 : index
      %75 = vector.load %arg5[%c0_73, %c64, %c0_74] : memref<1x72x128xbf16, #tpu.memory_space<vmem>>, vector<1x8x128xbf16>
      %76 = vector.shape_cast %75 : vector<1x8x128xbf16> to vector<8x128xbf16>
      %cst_75 = arith.constant dense<0.000000e+00> : vector<128x128xf32>
      %77 = tpu.matmul %74, %76, %cst_75 {dimension_numbers = #tpu.dot_dimension_numbers<[1], [0], [0], [1], [0, 0, 1, 1], [], []>} : vector<128x8xbf16>, vector<8x128xbf16>, vector<128x128xf32> -> vector<128x128xf32>
      %78 = arith.addf %71, %77 : vector<128x128xf32>
      %c0_76 = arith.constant 0 : index
      %c0_77 = arith.constant 0 : index
      %79 = vector.load %arg8[%c0_76, %c0_77] : memref<128x128xf32, #tpu.memory_space<vmem>>, vector<128x128xf32>
      %80 = arith.addf %79, %78 : vector<128x128xf32>
      %c0_78 = arith.constant 0 : index
      %c0_79 = arith.constant 0 : index
      %81 = vector.load %arg8[%c0_78, %c0_79] : memref<128x128xf32, #tpu.memory_space<vmem>>, vector<128x128xf32>
      tpu.vector_store %arg8[%c0_78, %c0_79], %80 {strides = array<i32>} : memref<128x128xf32, #tpu.memory_space<vmem>>, vector<128x128xf32>,
    } else {
    }
    %c2_i32 = arith.constant 2 : i32
    %9 = arith.cmpi eq, %arg3, %c2_i32 : i32
    %10 = arith.extui %9 : i1 to i32
    %c0_i32_4 = arith.constant 0 : i32
    %11 = arith.cmpi ne, %10, %c0_i32_4 : i32
    scf.if %11 {
      %cst = arith.constant 0.000000e+00 : f32
      %15 = vector.broadcast %cst : f32 to vector<128x128xf32>
      %c0 = arith.constant 0 : index
      %c0_7 = arith.constant 0 : index
      %c0_8 = arith.constant 0 : index
      %c0_9 = arith.constant 0 : index
      %c0_10 = arith.constant 0 : index
      %16 = vector.load %arg4[%c0, %c0_7, %c0_8, %c0_9, %c0_10] : memref<1x1x16x24x8xbf16, #tpu.memory_space<vmem>>, vector<1x1x8x16x8xbf16>
      %17 = vector.shape_cast %16 : vector<1x1x8x16x8xbf16> to vector<8x16x8xbf16>
      %18 = vector.shape_cast %17 : vector<8x16x8xbf16> to vector<128x8xbf16>
      %c0_11 = arith.constant 0 : index
      %c0_12 = arith.constant 0 : index
      %c0_13 = arith.constant 0 : index
      %19 = vector.load %arg5[%c0_11, %c0_12, %c0_13] : memref<1x72x128xbf16, #tpu.memory_space<vmem>>, vector<1x8x128xbf16>
      %20 = vector.shape_cast %19 : vector<1x8x128xbf16> to vector<8x128xbf16>
      %cst_14 = arith.constant dense<0.000000e+00> : vector<128x128xf32>
      %21 = tpu.matmul %18, %20, %cst_14 {dimension_numbers = #tpu.dot_dimension_numbers<[1], [0], [0], [1], [0, 0, 1, 1], [], []>} : vector<128x8xbf16>, vector<8x128xbf16>, vector<128x128xf32> -> vector<128x128xf32>
      %22 = arith.addf %15, %21 : vector<128x128xf32>
      %c0_15 = arith.constant 0 : index
      %c0_16 = arith.constant 0 : index
      %c0_17 = arith.constant 0 : index
      %c4 = arith.constant 4 : index
      %c0_18 = arith.constant 0 : index
      %23 = vector.load %arg4[%c0_15, %c0_16, %c0_17, %c4, %c0_18] : memref<1x1x16x24x8xbf16, #tpu.memory_space<vmem>>, vector<1x1x8x16x8xbf16>
      %24 = vector.shape_cast %23 : vector<1x1x8x16x8xbf16> to vector<8x16x8xbf16>
      %25 = vector.shape_cast %24 : vector<8x16x8xbf16> to vector<128x8xbf16>
      %c0_19 = arith.constant 0 : index
      %c8 = arith.constant 8 : index
      %c0_20 = arith.constant 0 : index
      %26 = vector.load %arg5[%c0_19, %c8, %c0_20] : memref<1x72x128xbf16, #tpu.memory_space<vmem>>, vector<1x8x128xbf16>
      %27 = vector.shape_cast %26 : vector<1x8x128xbf16> to vector<8x128xbf16>
      %cst_21 = arith.constant dense<0.000000e+00> : vector<128x128xf32>
      %28 = tpu.matmul %25, %27, %cst_21 {dimension_numbers = #tpu.dot_dimension_numbers<[1], [0], [0], [1], [0, 0, 1, 1], [], []>} : vector<128x8xbf16>, vector<8x128xbf16>, vector<128x128xf32> -> vector<128x128xf32>
      %29 = arith.addf %22, %28 : vector<128x128xf32>
      %c0_22 = arith.constant 0 : index
      %c0_23 = arith.constant 0 : index
      %c0_24 = arith.constant 0 : index
      %c8_25 = arith.constant 8 : index
      %c0_26 = arith.constant 0 : index
      %30 = vector.load %arg4[%c0_22, %c0_23, %c0_24, %c8_25, %c0_26] : memref<1x1x16x24x8xbf16, #tpu.memory_space<vmem>>, vector<1x1x8x16x8xbf16>
      %31 = vector.shape_cast %30 : vector<1x1x8x16x8xbf16> to vector<8x16x8xbf16>
      %32 = vector.shape_cast %31 : vector<8x16x8xbf16> to vector<128x8xbf16>
      %c0_27 = arith.constant 0 : index
      %c16 = arith.constant 16 : index
      %c0_28 = arith.constant 0 : index
      %33 = vector.load %arg5[%c0_27, %c16, %c0_28] : memref<1x72x128xbf16, #tpu.memory_space<vmem>>, vector<1x8x128xbf16>
      %34 = vector.shape_cast %33 : vector<1x8x128xbf16> to vector<8x128xbf16>
      %cst_29 = arith.constant dense<0.000000e+00> : vector<128x128xf32>
      %35 = tpu.matmul %32, %34, %cst_29 {dimension_numbers = #tpu.dot_dimension_numbers<[1], [0], [0], [1], [0, 0, 1, 1], [], []>} : vector<128x8xbf16>, vector<8x128xbf16>, vector<128x128xf32> -> vector<128x128xf32>
      %36 = arith.addf %29, %35 : vector<128x128xf32>
      %c0_30 = arith.constant 0 : index
      %c0_31 = arith.constant 0 : index
      %c4_32 = arith.constant 4 : index
      %c0_33 = arith.constant 0 : index
      %c0_34 = arith.constant 0 : index
      %37 = vector.load %arg4[%c0_30, %c0_31, %c4_32, %c0_33, %c0_34] : memref<1x1x16x24x8xbf16, #tpu.memory_space<vmem>>, vector<1x1x8x16x8xbf16>
      %38 = vector.shape_cast %37 : vector<1x1x8x16x8xbf16> to vector<8x16x8xbf16>
      %39 = vector.shape_cast %38 : vector<8x16x8xbf16> to vector<128x8xbf16>
      %c0_35 = arith.constant 0 : index
      %c24 = arith.constant 24 : index
      %c0_36 = arith.constant 0 : index
      %40 = vector.load %arg5[%c0_35, %c24, %c0_36] : memref<1x72x128xbf16, #tpu.memory_space<vmem>>, vector<1x8x128xbf16>
      %41 = vector.shape_cast %40 : vector<1x8x128xbf16> to vector<8x128xbf16>
      %cst_37 = arith.constant dense<0.000000e+00> : vector<128x128xf32>
      %42 = tpu.matmul %39, %41, %cst_37 {dimension_numbers = #tpu.dot_dimension_numbers<[1], [0], [0], [1], [0, 0, 1, 1], [], []>} : vector<128x8xbf16>, vector<8x128xbf16>, vector<128x128xf32> -> vector<128x128xf32>
      %43 = arith.addf %36, %42 : vector<128x128xf32>
      %c0_38 = arith.constant 0 : index
      %c0_39 = arith.constant 0 : index
      %c4_40 = arith.constant 4 : index
      %c4_41 = arith.constant 4 : index
      %c0_42 = arith.constant 0 : index
      %44 = vector.load %arg4[%c0_38, %c0_39, %c4_40, %c4_41, %c0_42] : memref<1x1x16x24x8xbf16, #tpu.memory_space<vmem>>, vector<1x1x8x16x8xbf16>
      %45 = vector.shape_cast %44 : vector<1x1x8x16x8xbf16> to vector<8x16x8xbf16>
      %46 = vector.shape_cast %45 : vector<8x16x8xbf16> to vector<128x8xbf16>
      %c0_43 = arith.constant 0 : index
      %c32 = arith.constant 32 : index
      %c0_44 = arith.constant 0 : index
      %47 = vector.load %arg5[%c0_43, %c32, %c0_44] : memref<1x72x128xbf16, #tpu.memory_space<vmem>>, vector<1x8x128xbf16>
      %48 = vector.shape_cast %47 : vector<1x8x128xbf16> to vector<8x128xbf16>
      %cst_45 = arith.constant dense<0.000000e+00> : vector<128x128xf32>
      %49 = tpu.matmul %46, %48, %cst_45 {dimension_numbers = #tpu.dot_dimension_numbers<[1], [0], [0], [1], [0, 0, 1, 1], [], []>} : vector<128x8xbf16>, vector<8x128xbf16>, vector<128x128xf32> -> vector<128x128xf32>
      %50 = arith.addf %43, %49 : vector<128x128xf32>
      %c0_46 = arith.constant 0 : index
      %c0_47 = arith.constant 0 : index
      %c4_48 = arith.constant 4 : index
      %c8_49 = arith.constant 8 : index
      %c0_50 = arith.constant 0 : index
      %51 = vector.load %arg4[%c0_46, %c0_47, %c4_48, %c8_49, %c0_50] : memref<1x1x16x24x8xbf16, #tpu.memory_space<vmem>>, vector<1x1x8x16x8xbf16>
      %52 = vector.shape_cast %51 : vector<1x1x8x16x8xbf16> to vector<8x16x8xbf16>
      %53 = vector.shape_cast %52 : vector<8x16x8xbf16> to vector<128x8xbf16>
      %c0_51 = arith.constant 0 : index
      %c40 = arith.constant 40 : index
      %c0_52 = arith.constant 0 : index
      %54 = vector.load %arg5[%c0_51, %c40, %c0_52] : memref<1x72x128xbf16, #tpu.memory_space<vmem>>, vector<1x8x128xbf16>
      %55 = vector.shape_cast %54 : vector<1x8x128xbf16> to vector<8x128xbf16>
      %cst_53 = arith.constant dense<0.000000e+00> : vector<128x128xf32>
      %56 = tpu.matmul %53, %55, %cst_53 {dimension_numbers = #tpu.dot_dimension_numbers<[1], [0], [0], [1], [0, 0, 1, 1], [], []>} : vector<128x8xbf16>, vector<8x128xbf16>, vector<128x128xf32> -> vector<128x128xf32>
      %57 = arith.addf %50, %56 : vector<128x128xf32>
      %c0_54 = arith.constant 0 : index
      %c0_55 = arith.constant 0 : index
      %c8_56 = arith.constant 8 : index
      %c0_57 = arith.constant 0 : index
      %c0_58 = arith.constant 0 : index
      %58 = vector.load %arg4[%c0_54, %c0_55, %c8_56, %c0_57, %c0_58] : memref<1x1x16x24x8xbf16, #tpu.memory_space<vmem>>, vector<1x1x8x16x8xbf16>
      %59 = vector.shape_cast %58 : vector<1x1x8x16x8xbf16> to vector<8x16x8xbf16>
      %60 = vector.shape_cast %59 : vector<8x16x8xbf16> to vector<128x8xbf16>
      %c0_59 = arith.constant 0 : index
      %c48 = arith.constant 48 : index
      %c0_60 = arith.constant 0 : index
      %61 = vector.load %arg5[%c0_59, %c48, %c0_60] : memref<1x72x128xbf16, #tpu.memory_space<vmem>>, vector<1x8x128xbf16>
      %62 = vector.shape_cast %61 : vector<1x8x128xbf16> to vector<8x128xbf16>
      %cst_61 = arith.constant dense<0.000000e+00> : vector<128x128xf32>
      %63 = tpu.matmul %60, %62, %cst_61 {dimension_numbers = #tpu.dot_dimension_numbers<[1], [0], [0], [1], [0, 0, 1, 1], [], []>} : vector<128x8xbf16>, vector<8x128xbf16>, vector<128x128xf32> -> vector<128x128xf32>
      %64 = arith.addf %57, %63 : vector<128x128xf32>
      %c0_62 = arith.constant 0 : index
      %c0_63 = arith.constant 0 : index
      %c8_64 = arith.constant 8 : index
      %c4_65 = arith.constant 4 : index
      %c0_66 = arith.constant 0 : index
      %65 = vector.load %arg4[%c0_62, %c0_63, %c8_64, %c4_65, %c0_66] : memref<1x1x16x24x8xbf16, #tpu.memory_space<vmem>>, vector<1x1x8x16x8xbf16>
      %66 = vector.shape_cast %65 : vector<1x1x8x16x8xbf16> to vector<8x16x8xbf16>
      %67 = vector.shape_cast %66 : vector<8x16x8xbf16> to vector<128x8xbf16>
      %c0_67 = arith.constant 0 : index
      %c56 = arith.constant 56 : index
      %c0_68 = arith.constant 0 : index
      %68 = vector.load %arg5[%c0_67, %c56, %c0_68] : memref<1x72x128xbf16, #tpu.memory_space<vmem>>, vector<1x8x128xbf16>
      %69 = vector.shape_cast %68 : vector<1x8x128xbf16> to vector<8x128xbf16>
      %cst_69 = arith.constant dense<0.000000e+00> : vector<128x128xf32>
      %70 = tpu.matmul %67, %69, %cst_69 {dimension_numbers = #tpu.dot_dimension_numbers<[1], [0], [0], [1], [0, 0, 1, 1], [], []>} : vector<128x8xbf16>, vector<8x128xbf16>, vector<128x128xf32> -> vector<128x128xf32>
      %71 = arith.addf %64, %70 : vector<128x128xf32>
      %c0_70 = arith.constant 0 : index
      %c0_71 = arith.constant 0 : index
      %c8_72 = arith.constant 8 : index
      %c8_73 = arith.constant 8 : index
      %c0_74 = arith.constant 0 : index
      %72 = vector.load %arg4[%c0_70, %c0_71, %c8_72, %c8_73, %c0_74] : memref<1x1x16x24x8xbf16, #tpu.memory_space<vmem>>, vector<1x1x8x16x8xbf16>
      %73 = vector.shape_cast %72 : vector<1x1x8x16x8xbf16> to vector<8x16x8xbf16>
      %74 = vector.shape_cast %73 : vector<8x16x8xbf16> to vector<128x8xbf16>
      %c0_75 = arith.constant 0 : index
      %c64 = arith.constant 64 : index
      %c0_76 = arith.constant 0 : index
      %75 = vector.load %arg5[%c0_75, %c64, %c0_76] : memref<1x72x128xbf16, #tpu.memory_space<vmem>>, vector<1x8x128xbf16>
      %76 = vector.shape_cast %75 : vector<1x8x128xbf16> to vector<8x128xbf16>
      %cst_77 = arith.constant dense<0.000000e+00> : vector<128x128xf32>
      %77 = tpu.matmul %74, %76, %cst_77 {dimension_numbers = #tpu.dot_dimension_numbers<[1], [0], [0], [1], [0, 0, 1, 1], [], []>} : vector<128x8xbf16>, vector<8x128xbf16>, vector<128x128xf32> -> vector<128x128xf32>
      %78 = arith.addf %71, %77 : vector<128x128xf32>
      %c0_78 = arith.constant 0 : index
      %c0_79 = arith.constant 0 : index
      %79 = vector.load %arg8[%c0_78, %c0_79] : memref<128x128xf32, #tpu.memory_space<vmem>>, vector<128x128xf32>
      %80 = arith.addf %79, %78 : vector<128x128xf32>
      %c0_80 = arith.constant 0 : index
      %c0_81 = arith.constant 0 : index
      %81 = vector.load %arg8[%c0_80, %c0_81] : memref<128x128xf32, #tpu.memory_space<vmem>>, vector<128x128xf32>
      tpu.vector_store %arg8[%c0_80, %c0_81], %80 {strides = array<i32>} : memref<128x128xf32, #tpu.memory_space<vmem>>, vector<128x128xf32>,
    } else {
    }
    %c2_i32_5 = arith.constant 2 : i32
    %12 = arith.cmpi eq, %arg3, %c2_i32_5 : i32
    %13 = arith.extui %12 : i1 to i32
    %c0_i32_6 = arith.constant 0 : i32
    %14 = arith.cmpi ne, %13, %c0_i32_6 : i32
    scf.if %14 {
      %c0 = arith.constant 0 : index
      %c0_7 = arith.constant 0 : index
      %15 = vector.load %arg8[%c0, %c0_7] : memref<128x128xf32, #tpu.memory_space<vmem>>, vector<128x128xf32>
      %c0_8 = arith.constant 0 : index
      %c0_9 = arith.constant 0 : index
      %16 = vector.load %arg6[%c0_8, %c0_9] : memref<1x128xf32, #tpu.memory_space<vmem>>, vector<1x128xf32>
      %17 = vector.broadcast %16 : vector<1x128xf32> to vector<128x128xf32>
      %18 = arith.addf %15, %17 : vector<128x128xf32>
      %19 = vector.shape_cast %18 : vector<128x128xf32> to vector<1x8x16x128xf32>
      %20 = arith.truncf %19 : vector<1x8x16x128xf32> to vector<1x8x16x128xbf16>
      %c0_10 = arith.constant 0 : index
      %c0_11 = arith.constant 0 : index
      %c0_12 = arith.constant 0 : index
      %c0_13 = arith.constant 0 : index
      %21 = vector.load %arg7[%c0_10, %c0_11, %c0_12, %c0_13] : memref<1x8x16x128xbf16, #tpu.memory_space<vmem>>, vector<1x8x16x128xbf16>
      tpu.vector_store %arg7[%c0_10, %c0_11, %c0_12, %c0_13], %20 {strides = array<i32>} : memref<1x8x16x128xbf16, #tpu.memory_space<vmem>>, vector<1x8x16x128xbf16>,
    } else {
    }
    return
  }
  func.func @transform_0(%arg0: i32, %arg1: i32, %arg2: i32, %arg3: i32) -> (i32, i32, i32, i32, i32) {
    %c0_i32 = arith.constant 0 : i32
    %c0_i32_0 = arith.constant 0 : i32
    %c0_i32_1 = arith.constant 0 : i32
    %c0_i32_2 = arith.constant 0 : i32
    return %arg1, %arg2, %c0_i32, %c0_i32_0, %c0_i32_1 : i32, i32, i32, i32, i32
  }
  func.func @transform_1(%arg0: i32, %arg1: i32, %arg2: i32, %arg3: i32) -> (i32, i32, i32) {
    %c0_i32 = arith.constant 0 : i32
    %c0_i32_0 = arith.constant 0 : i32
    return %arg3, %c0_i32, %arg0 : i32, i32, i32
  }
  func.func @transform_2(%arg0: i32, %arg1: i32, %arg2: i32, %arg3: i32) -> (i32, i32) {
    %c0_i32 = arith.constant 0 : i32
    %c0_i32_0 = arith.constant 0 : i32
    return %c0_i32, %arg0 : i32, i32
  }
  func.func @transform_3(%arg0: i32, %arg1: i32, %arg2: i32, %arg3: i32) -> (i32, i32, i32, i32) {
    %c0_i32 = arith.constant 0 : i32
    %c0_i32_0 = arith.constant 0 : i32
    return %arg1, %arg2, %c0_i32, %arg0 : i32, i32, i32, i32
  }
}

</mosaic_0001>

<bundles_post_ra>
// kernel: asppv2_pallas.1
= control target key start
LH: loop header
LB: loop body
LE: loop exit
PB: predicated region body
PF: predicated region fallthrough
CT: control target
= control target key end

     0   :  { %s10348_s12 = smov 0   ;;  %s10350_s13 = smov 0   ;;  %s12711_s0 = inlined_call_operand.vmem [shape: bf16[2,2,16,24,8], index: 0, kind: input, shape index: {}]   ;;  %s12712_s1 = inlined_call_operand.vmem [shape: bf16[3,72,128], index: 1, kind: input, shape index: {}]   ;;  %s12713_s2 = inlined_call_operand.vmem [shape: f32[1,128], index: 2, kind: input, shape index: {}]   ;;  %s12714_s3 = inlined_call_operand.vmem [shape: bf16[2,16,16,128], index: 3, kind: output, shape index: {}]  }
   0x1   :  { %s10352_s14 = smov 0   ;;  %s10354_s15 = smov 0  }
   0x2   :  { %s10356_s16 = smov 0   ;;  %s10358_s17 = smov 0  }
   0x3   :  { %s10360_s18 = smov 0  }
   0x4 LB: > { %s28_s19 = sadd.s32 1, %s10314_s15  ;;  %s31_s20 = sadd.s32 1, %s10318_s16  ;;  %s10326_s18 = sphi %s10360_s18, %s13_s18   ;;  %s10322_s17 = sphi %s10358_s17, %s12815_s17   ;;  %s10318_s16 = sphi %s10356_s16, %s12814_s16   ;;  %s10314_s15 = sphi %s10354_s15, %s12813_s15   ;;  %s10310_s14 = sphi %s10352_s14, %s12812_s14   ;;  %s10306_s13 = sphi %s10350_s13, %s12811_s13   ;;  %s10302_s12 = sphi %s10348_s12, %s12810_s12  }
   0x5   : > { %p29_p0 = scmp.ge.s32.totalorder %s28_s19, 3  ;;  %p7972_p1 = scmp.ge.s32.totalorder %s10326_s18, 1 }
   0x6   : > { %p196_p2 = scmp.lt.s32.totalorder %s10326_s18, 13  ;;  %s35_s21 = sadd.s32 1, %s10322_s17 }
   0x7   : > { %s12817_s19 = smov (%p29_p0, %s28_s19), 0  ;;  %s12819_s20 = smov (!%p29_p0, %s31_s20), %s10318_s16 }
   0x8   : > { %p197_p3 = pnand %p7972_p1, %p196_p2  ;;  %p33_p4 = scmp.ge.s32.totalorder %s12819_s20, 2 }
   0x9   : > { %p243_p6 = scmp.lt.s32.totalorder (!%p197_p3), %s10310_s14, 1  ;;  %p245_p7 = scmp.lt.s32.totalorder (!%p197_p3), %s10306_s13, 1 }
   0xa   : > { %s12821_s20 = smov (%p33_p4, %s12819_s20), 0  ;;  %s12823_s21 = smov (!%p33_p4, %s35_s21), %s10322_s17 }
   0xb   : > { %p37_p5 = scmp.ge.s32.totalorder %s12823_s21, 2  ;;  %200 = sbr.rel (%p197_p3) target bundleno = 1293 (0x50d), region = 32 }
   0xc   : > { %p252_p8 = scmp.lt.s32.totalorder (!%p197_p3), %s10302_s12, 2  ;;  %s7975_s24 = sshll.u32 (!%p197_p3), %s10306_s13, 3 }
   0xd   : > { %s12825_s21 = smov (%p37_p5, %s12823_s21), 0  ;;  %p266_p9 = scmp.lt.s32.totalorder (!%p197_p3), %s7975_s24, 15 }
   0xe   : > { %p7979_p10 = scmp.ne.s32.totalorder (!%p197_p3), %s10302_s12, 0 }
  0x12   : > { %s12827_s14 = smov (!%p243_p6, %s10310_s14), 1  ;;  %s12829_s24 = smov (!%p266_p9, %s7975_s24), 15 }
  0x13   : > { %s246_s22 = scalar_select %p245_p7, %s10306_s13, 1 }
  0x14   : > { %s10150_s23 = smul.u32 96, %s12827_s14  ;;  %s7977_s9 = sshll.u32 %s12827_s14, 5 }
  0x15   : > { %s10149_s25 = smul.u32 48, %s246_s22  ;;  %s7976_s10 = sshll.u32 %s12829_s24, 1 }
  0x16   : > { %s253_s26 = scalar_select %p252_p8, %s10302_s12, 2 }
  0x17   : > { %s249_s27 = sadd.s32 %s10150_s23, %s10149_s25  ;;  %s273_s11 = sadd.s32 %s7977_s9, %s7976_s10 }
  0x18   : > { %s7973_s28 = sshll.u32 %s249_s27, 2  ;;  %s10151_s29 = smul.u32 36, %s253_s26 }
  0x19   : > { %s10402_s5 = scalar_lea.vmem %s12711_s0, %s7973_s28  ;;  %s7978_s13 = sshll.u32 %s273_s11, 2 }
  0x1a   : > { %s10407_s8 = scalar_lea.vmem %s12712_s1, %s10151_s29  ;;  %s10412_s25 = scalar_lea.vmem %s12714_s3, %s7978_s13 }
  0x1b   : > { %281 = sbr.rel (%p7979_p10) target bundleno = 542 (0x21e), region = 36 }
  0x22   : > { %v642_v0 = vld [vmem:[%s10407_s8 + $0x4] sm:$0xf]  ;;  %vm692_vm0 = vcmask 1043456   ;;  %v1803_v1 = vld [vmem:[%s10407_s8 + $0x10] sm:$0xf]  ;;  %vm583_vm1 = vcmask 1041408  }
  0x23   : > { %10119 = vmatprep.subr.msk.bf16.mxu1 %vm692_vm0, %v642_v0  ;;  %10123 = vmatprep.subr.msk.bf16.mxu0 %vm692_vm0, %v1803_v1  ;;  %v694_v2 = vsel %vm692_vm0, %v642_v0, 0  ;;  %v10421_v3 = vsel %vm692_vm0, %v1803_v1, 0  ;;  %v7981_v4 = vld [vmem:[%s10402_s5 + $0x28] sm:$0xf]  ;;  %v7982_v5 = vld [vmem:[%s10402_s5 + $0x2c] sm:$0x3] }
  0x24   : > { %9244 = vmatpush3.bf16.msra.mxu1 %v694_v2  ;;  %9316 = vmatpush3.bf16.msra.mxu0 %v10421_v3  ;;  %v336_v6 = vshrl.u32 %v7981_v4, 16  ;;  %v339_v7 = vshll.u32 %v7981_v4, 16  ;;  %v346_v8 = vshrl.u32 %v7982_v5, 16  ;;  %v349_v9 = vshll.u32 %v7982_v5, 16  ;;  %v8004_v10 = vld [vmem:[%s10402_s5 + $0x24] sm:$0xc] }
  0x25   : > { %vm584_vm2 = vcmask 1045508   ;;  %v8012_v11 = vrot.slane %v8004_v10, 10  ;;  %v588_v12 = vrot.slane %v7981_v4, 6  ;;  %v591_v13 = vrot.slane %v7982_v5, 6  ;;  %v10428_v14 = vld [vmem:[%s10407_s8] sm:$0xf] }
  0x26   : > { %v10430_v15 = vrot.slane %v336_v6, 5  ;;  %v10432_v16 = vrot.slane %v339_v7, 6  ;;  %v10434_v17 = vrot.slane %v346_v8, 5  ;;  %v10436_v18 = vrot.slane %v349_v9, 6  ;;  %vm10439_vm3 = vmor %vm583_vm1, %vm584_vm2  ;;  %10120 = vmatprep.subr.msk.bf16.mxu1 %vm692_vm0, %v10428_v14  ;;  %v8077_v20 = vld [vmem:[%s10402_s5 + $0x34] sm:$0xf] }
  0x27   : > { %v589_v21 = vsel %vm10439_vm3, %v8012_v11, %v588_v12  ;;  %v590_v22 = vrot.slane %v588_v12, 4  ;;  %vm667_vm4 = vcmask 64512   ;;  %v953_v23 = vshrl.u32 %v8004_v10, 16  ;;  %v8078_v24 = vld [vmem:[%s10402_s5 + $0x38] sm:$0x3] }
  0x28   : > { %v956_v25 = vshll.u32 %v8004_v10, 16  ;;  %v10449_v26 = vrot.slane %v336_v6, 6  ;;  %v10451_v27 = vrot.slane %v339_v7, 7  ;;  %v1336_v28 = vshrl.u32 %v8077_v20, 16  ;;  %v8116_v29 = vld [vmem:[%s10402_s5 + $0x30] sm:$0xc] }
  0x29   : > { %v592_v30 = vsel %vm10439_vm3, %v590_v22, %v591_v13  ;;  %v10456_v31 = vrot.slane %v953_v23, 6  ;;  %v1339_v32 = vshll.u32 %v8077_v20, 16  ;;  %v1346_v33 = vshrl.u32 %v8078_v24, 16  ;;  %v10459_v34 = vld [vmem:[%s10407_s8 + $0x14] sm:$0xf] }
  0x2a   : > { %v8020_v35 = vcombine.low %v589_v21, %v592_v30  ;;  %v10461_v36 = vrot.slane %v956_v25, 7  ;;  %v10463_v37 = vrot.slane %v1336_v28, 5  ;;  %v1349_v38 = vshll.u32 %v8078_v24, 16  ;;  %10125 = vmatprep.subr.msk.bf16.mxu0 %vm692_vm0, %v10459_v34  ;;  %v8005_v47 = vld [vmem:[%s10402_s5 + $0x30] sm:$0xc] }
  0x2b   : > { %v10467_v39 = vrot.slane %v1339_v32, 6  ;;  %v10469_v40 = vrot.slane %v1346_v33, 5  ;;  %v8124_v41 = vrot.slane %v8116_v29, 10  ;;  %v1749_v42 = vrot.slane %v8077_v20, 6  ;;  %v7984_v52 = vld [vmem:[%s10402_s5 + $0x34] sm:$0xf] }
  0x2c   : > { %9245 = vmatprep.mubr.msk.bf16.mxu1 %vm667_vm4, %v8020_v35  ;;  %v10472_v43 = vrot.slane %v1349_v38, 6  ;;  %v1752_v44 = vrot.slane %v8078_v24, 6  ;;  %v1977_v45 = vshrl.u32 %v8116_v29, 16  ;;  %v1980_v46 = vshll.u32 %v8116_v29, 16  ;;  %v7985_v55 = vld [vmem:[%s10402_s5 + $0x38] sm:$0x3] }
  0x2d   : > { %v1750_v48 = vsel %vm10439_vm3, %v8124_v41, %v1749_v42  ;;  %v1751_v49 = vrot.slane %v1749_v42, 4  ;;  %v10477_v50 = vrot.slane %v1336_v28, 6  ;;  %v10479_v51 = vrot.slane %v1339_v32, 7  ;;  %v8080_v11 = vld [vmem:[%s10402_s5 + $0x40] sm:$0xf] }
  0x2e   : > { %v10482_v53 = vrot.slane %v1977_v45, 6  ;;  %v10484_v54 = vrot.slane %v1980_v46, 7  ;;  %v364_v56 = vshrl.u32 %v7984_v52, 16  ;;  %v367_v57 = vshll.u32 %v7984_v52, 16  ;;  %v8117_v22 = vld [vmem:[%s10402_s5 + $0x3c] sm:$0xc] }
  0x2f   : > { %v1753_v58 = vsel %vm10439_vm3, %v1751_v49, %v1752_v44  ;;  %v374_v59 = vshrl.u32 %v7985_v55, 16  ;;  %v377_v60 = vshll.u32 %v7985_v55, 16  ;;  %v8013_v61 = vrot.slane %v8005_v47, 10  ;;  %v8081_v28 = vld [vmem:[%s10402_s5 + $0x44] sm:$0x3] }
  0x30   : > { %v8132_v62 = vcombine.low %v1750_v48, %v1753_v58  ;;  %v366_v63 = vrot.slane %v364_v56, 5  ;;  %v369_v0 = vrot.slane %v367_v57, 6  ;;  %v595_v1 = vrot.slane %v7984_v52, 6  ;;  %v10510_v45 = vld [vmem:[%s10402_s5 + $0x40] sm:$0xf] }
  0x31   : > { %v10489_v2 = vrot.slane %v374_v59, 5  ;;  %v10491_v4 = vrot.slane %v377_v60, 6  ;;  %v598_v5 = vrot.slane %v7985_v55, 6  ;;  %v976_v6 = vshrl.u32 %v8005_v47, 16  ;;  %v10516_v49 = vld [vmem:[%s10402_s5 + $0x44] sm:$0x3] }
  0x32   : > { %9317 = vmatprep.mubr.msk.bf16.mxu0 %vm667_vm4, %v8132_v62  ;;  %v10494_v7 = vor.u32 %v369_v0, %v366_v63  ;;  %v596_v8 = vsel %vm10439_vm3, %v8013_v61, %v595_v1  ;;  %v597_v9 = vrot.slane %v595_v1, 4  ;;  %v979_v10 = vshll.u32 %v8005_v47, 16  ;;  %v8006_v52 = vld [vmem:[%s10402_s5 + $0x3c] sm:$0xc]  ;;  %v10524_v59 = vld [vmem:[%s10402_s5 + $0x4c] sm:$0xf] }
  0x33   : > { %v978_v13 = vrot.slane %v976_v6, 6  ;;  %v984_v20 = vrot.slane %v364_v56, 6  ;;  %v985_v21 = vrot.slane %v367_v57, 7  ;;  %v842_v25 = vsel %vm692_vm0, %v10428_v14, 0  ;;  %v8084_v0 = vld [vmem:[%s10402_s5 + $0x50] sm:$0x3] }
  0x34   : > { %v599_v23 = vsel %vm10439_vm3, %v597_v9, %v598_v5  ;;  %v981_v24 = vrot.slane %v979_v10, 7  ;;  %v1364_v29 = vshrl.u32 %v8080_v11, 16  ;;  %v1367_v33 = vshll.u32 %v8080_v11, 16  ;;  %v10532_v1 = vld [vmem:[%s10402_s5 + $0x48] sm:$0xc] }
  0x35   : > { %v8021_v30 = vcombine.low %v596_v8, %v599_v23  ;;  %v10507_v32 = vor.u32 %v985_v21, %v984_v20  ;;  %v1374_v35 = vshrl.u32 %v8081_v28, 16  ;;  %v1377_v42 = vshll.u32 %v8081_v28, 16  ;;  %v10535_v5 = vld [vmem:[%s10402_s5 + $0x4c] sm:$0xf]  ;;  %v8007_v23 = vld [vmem:[%s10402_s5 + $0x48] sm:$0xc] }
  0x36   : > { %v982_v38 = vor.u32 %v981_v24, %v978_v13  ;;  %v1366_v41 = vrot.slane %v1364_v29, 5  ;;  %v8125_v44 = vrot.slane %v8117_v22, 10  ;;  %v1369_v46 = vrot.slane %v1367_v33, 6 }
  0x37   : > { %9246 = vmatmul.mubr.msk.bf16.vlgmr.msra.gmra.mrb[0].mxu1 %vm667_vm4, %v8021_v30  ;;  %v10513_v14 = vrot.slane %v1374_v35, 5  ;;  %v1756_v47 = vrot.slane %v8080_v11, 6  ;;  %v1759_v48 = vrot.slane %v8081_v28, 6  ;;  %v10521_v56 = vrot.slane %v1377_v42, 6  ;;  %v10540_v11 = vld [vmem:[%s10402_s5 + $0x50] sm:$0x3] }
  0x38   : > { %v10519_v55 = vrot.slane %v982_v38, 4  ;;  %9262 = vmatpush3.bf16.msra.mxu1 %v842_v25  ;;  %v2000_v57 = vshrl.u32 %v8117_v22, 16  ;;  %v2003_v58 = vshll.u32 %v8117_v22, 16  ;;  %v10526_v60 = vor.u32 %v1369_v46, %v1366_v41  ;;  %v10552_v30 = vld [vmem:[%s10402_s5 + $0x58] sm:$0xf] }
  0x39   : > { %v1757_v61 = vsel %vm10439_vm3, %v8125_v44, %v1756_v47  ;;  %v1758_v62 = vrot.slane %v1756_v47, 4  ;;  %v2008_v63 = vrot.slane %v1364_v29, 6  ;;  %v2009_v10 = vrot.slane %v1367_v33, 7  ;;  %12755 = vst [vmem:[#allocation3_spill] sm:$0xff] %v10552_v30  ;;  %v8087_v33 = vld [vmem:[%s10402_s5 + $0x5c] sm:$0x3] }
  0x3a   : > { %v2002_v8 = vrot.slane %v2000_v57, 6  ;;  %v2005_v9 = vrot.slane %v2003_v58, 7  ;;  %v2210_v20 = vsel %vm692_vm0, %v10459_v34, 0  ;;  %v8014_v21 = vrot.slane %v8006_v52, 10  ;;  %v10556_v35 = vld [vmem:[%s10402_s5 + $0x54] sm:$0xc] }
  0x3b   : > { %v1760_v13 = vsel %vm10439_vm3, %v1758_v62, %v1759_v48  ;;  %v602_v22 = vrot.slane %v10510_v45, 6  ;;  %v10548_v28 = vor.u32 %v2009_v10, %v2008_v63  ;;  %v605_v29 = vrot.slane %v10516_v49, 6  ;;  %v10563_v44 = vld [vmem:[%s10407_s8 + $0x18] sm:$0xf]  ;;  %v8008_v57 = vld [vmem:[%s10402_s5 + $0x54] sm:$0xc] }
  0x3c   : > { %v8133_v24 = vcombine.low %v1757_v61, %v1760_v13  ;;  %v2006_v25 = vor.u32 %v2005_v9, %v2002_v8  ;;  %v8126_v41 = vrot.slane %v10532_v1, 10  ;;  %v1763_v42 = vrot.slane %v10524_v59, 6  ;;  %v10576_v8 = vld [vmem:[%s10402_s5 + $0x58] sm:$0xf]  ;;  %v10579_v9 = vld [vmem:[%s10402_s5 + $0x5c] sm:$0x3] }
  0x3d   : > { %v603_v38 = vsel %vm10439_vm3, %v8014_v21, %v602_v22  ;;  %v604_v34 = vrot.slane %v602_v22, 4  ;;  %v1766_v47 = vrot.slane %v8084_v0, 6  ;;  %v8015_v48 = vrot.slane %v8007_v23, 10 }
  0x3e   : > { %9318 = vmatmul.mubr.msk.bf16.vlgmr.msra.gmra.mrb[0].mxu0 %vm667_vm4, %v8133_v24  ;;  %v10566_v46 = vrot.slane %v2006_v25, 4  ;;  %v609_v52 = vrot.slane %v10535_v5, 6  ;;  %v1764_v61 = vsel %vm10439_vm3, %v8126_v41, %v1763_v42  ;;  %v1765_v62 = vrot.slane %v1763_v42, 4  ;;  %v8148_v41 = vld [vmem:[%s10402_s5 + $0x38] sm:$0x7] }
  0x3f   : > { %9334 = vmatpush3.bf16.msra.mxu0 %v2210_v20  ;;  %v606_v58 = vsel %vm10439_vm3, %v604_v34, %v605_v29  ;;  %v612_v63 = vrot.slane %v10540_v11, 6  ;;  %v8127_v20 = vrot.slane %v10556_v35, 10  ;;  %v1770_v22 = vrot.slane %v10552_v30, 6 }
  0x40   : > { %v8022_v0 = vcombine.low %v603_v38, %v606_v58  ;;  %v610_v10 = vsel %vm10439_vm3, %v8015_v48, %v609_v52  ;;  %v611_v13 = vrot.slane %v609_v52, 4  ;;  %10126 = vmatprep.subr.msk.bf16.mxu0 %vm692_vm0, %v10563_v44  ;;  %v1767_v21 = vsel %vm10439_vm3, %v1765_v62, %v1766_v47 }
  0x41   : > { %v1773_v23 = vrot.slane %v8087_v33, 6  ;;  %v8016_v24 = vrot.slane %v8008_v57, 10  ;;  %v8134_v25 = vcombine.low %v1764_v61, %v1767_v21  ;;  %v616_v38 = vrot.slane %v10576_v8, 6  ;;  %v8009_v33 = vld [vmem:[%s10402_s5 + $0x60] sm:$0xc] }
  0x42   : > { %9249 = vmatprep.mubr.msk.bf16.mxu1 %vm667_vm4, %v8022_v0  ;;  %v613_v29 = vsel %vm10439_vm3, %v611_v13, %v612_v63  ;;  %v619_v34 = vrot.slane %v10579_v9, 6  ;;  %v1771_v47 = vsel %vm10439_vm3, %v8127_v20, %v1770_v22  ;;  %v1772_v48 = vrot.slane %v1770_v22, 4  ;;  %v10613_v13 = vld [vmem:[%s10402_s5 + $0x64] sm:$0xf]  ;;  %v10616_v20 = vld [vmem:[%s10402_s5 + $0x68] sm:$0x3] }
  0x43   : > { %v8023_v42 = vcombine.low %v610_v10, %v613_v29  ;;  %vm949_vm5 = vsmask.f32 1280  ;;  %9321 = vmatprep.mubr.msk.bf16.mxu0 %vm667_vm4, %v8134_v25  ;;  %v617_v52 = vsel %vm10439_vm3, %v8016_v24, %v616_v38  ;;  %v618_v57 = vrot.slane %v616_v38, 4  ;;  %v10622_v24 = vld [vmem:[%s10407_s8 + $0x8] sm:$0xf] }
  0x44   : > { %vm950_vm6 = vsmask.f32 5392  ;;  %v1983_v58 = vor.u32 %v10484_v54, %v10482_v53  ;;  %v1774_v61 = vsel %vm10439_vm3, %v1772_v48, %v1773_v23  ;;  %v1987_v63 = vor.u32 %v10479_v51, %v10477_v50  ;;  %v8149_v23 = vld [vmem:[%s10402_s5 + $0x44] sm:$0x7]  ;;  %v8010_v38 = vld [vmem:[%s10402_s5 + $0x6c] sm:$0xc]  ;;  %10121 = vmatprep.subr.msk.bf16.mxu1 %vm692_vm0, %v10622_v24 }
  0x45   : > { %9250 = vmatmul.mubr.msk.bf16.gmra.mrb[4].mxu1 %vm667_vm4, %v8023_v42  ;;  %vm10606_vm7 = vmor %vm949_vm5, %vm950_vm6  ;;  %v1991_v0 = vshrl.u32 %v8148_v41, 16  ;;  %v1994_v10 = vshll.u32 %v8148_v41, 16  ;;  %v8135_v53 = vcombine.low %v1771_v47, %v1774_v61  ;;  %v620_v54 = vsel %vm10439_vm3, %v618_v57, %v619_v34  ;;  %v10637_v48 = vld [vmem:[%s10402_s5 + $0x70] sm:$0xf]  ;;  %v10642_v61 = vld [vmem:[%s10402_s5 + $0x74] sm:$0x3] }
  0x46   : > { %v1984_v21 = vrot.slane %v1983_v58, 4  ;;  %v8017_v22 = vrot.slane %v8009_v33, 10  ;;  %v8024_v25 = vcombine.low %v617_v52, %v620_v54  ;;  %v1989_v29 = vrot.slane %v1987_v63, 4 }
  0x47   : > { %v1993_v50 = vrot.slane %v1991_v0, 6  ;;  %v1996_v51 = vrot.slane %v1994_v10, 7  ;;  %9322 = vmatmul.mubr.msk.bf16.gmra.mrb[4].mxu0 %vm667_vm4, %v8135_v53  ;;  %v623_v41 = vrot.slane %v10613_v13, 6  ;;  %v626_v42 = vrot.slane %v10616_v20, 6 }
  0x48   : > { %v1988_v34 = vsel %vm10606_vm7, %v1984_v21, %v1987_v63  ;;  %v2011_v47 = vsel %vm10606_vm7, %v10566_v46, %v10548_v28  ;;  %9253 = vmatprep.mubr.msk.bf16.mxu1 %vm667_vm4, %v8024_v25  ;;  %v2012_v52 = vrot.slane %v10548_v28, 4  ;;  %v2014_v57 = vshrl.u32 %v8149_v23, 16 }
  0x49   : > { %v1997_v33 = vor.u32 %v1996_v51, %v1993_v50  ;;  %v2017_v58 = vshll.u32 %v8149_v23, 16  ;;  %v624_v63 = vsel %vm10439_vm3, %v8017_v22, %v623_v41  ;;  %v625_v0 = vrot.slane %v623_v41, 4  ;;  %v8150_v51 = vld [vmem:[%s10402_s5 + $0x50] sm:$0x7] }
  0x4a   : > { %v2624_v10 = vsel %vm692_vm0, %v10563_v44, 0  ;;  %v8018_v46 = vrot.slane %v8010_v38, 10  ;;  %v2016_v54 = vrot.slane %v2014_v57, 6  ;;  %v630_v28 = vrot.slane %v10637_v48, 6 }
  0x4b   : > { %v1998_v53 = vsel %vm10606_vm7, %v1989_v29, %v1997_v33  ;;  %v2019_v21 = vrot.slane %v2017_v58, 7  ;;  %v627_v23 = vsel %vm10439_vm3, %v625_v0, %v626_v42  ;;  %v633_v50 = vrot.slane %v10642_v61, 6  ;;  %v8011_v58 = vld [vmem:[%s10402_s5 + $0x78] sm:$0xc] }
  0x4c   : > { %v8156_v25 = vcombine.low %v1988_v34, %v1998_v53  ;;  %v12715_v22 = vshrl.u32 %v10524_v59, 16  ;;  %v8025_v44 = vcombine.low %v624_v63, %v627_v23  ;;  %v631_v29 = vsel %vm10439_vm3, %v8018_v46, %v630_v28 }
  0x4d   : > { %v2020_v38 = vor.u32 %v2019_v21, %v2016_v54  ;;  %v632_v41 = vrot.slane %v630_v28, 4  ;;  %v12716_v34 = vshll.u32 %v10524_v59, 16  ;;  %v2023_v33 = vshrl.u32 %v10532_v1, 16  ;;  %v10671_v54 = vld [vmem:[%s10402_s5 + $0x7c] sm:$0xf] }
  0x4e   : > { %9335 = vmatprep.mubr.msk.bf16.mxu0 %vm667_vm4, %v8156_v25  ;;  %v2026_v42 = vshll.u32 %v10532_v1, 16  ;;  %v2031_v57 = vrot.slane %v12715_v22, 6  ;;  %9254 = vmatmul.mubr.msk.bf16.gmra.mrb[8].mxu1 %vm667_vm4, %v8025_v44  ;;  %v2037_v46 = vshrl.u32 %v8150_v51, 16  ;;  %v2040_v53 = vshll.u32 %v8150_v51, 16  ;;  %v10674_v21 = vld [vmem:[%s10402_s5 + $0x80] sm:$0x3] }
  0x4f   : > { %v2021_v63 = vsel %vm10606_vm7, %v2012_v52, %v2020_v38  ;;  %v634_v0 = vsel %vm10439_vm3, %v632_v41, %v633_v50  ;;  %v2025_v25 = vrot.slane %v2023_v33, 6  ;;  %v2032_v44 = vrot.slane %v12716_v34, 7 }
  0x50   : > { %v8157_v28 = vcombine.low %v2011_v47, %v2021_v63  ;;  %v8026_v1 = vcombine.low %v631_v29, %v634_v0  ;;  %v2028_v23 = vrot.slane %v2026_v42, 7  ;;  %v2039_v22 = vrot.slane %v2037_v46, 6  ;;  %v8151_v63 = vld [vmem:[%s10402_s5 + $0x5c] sm:$0x7] }
  0x51   : > { %v2042_v52 = vrot.slane %v2040_v53, 7  ;;  %v8019_v38 = vrot.slane %v8011_v58, 10  ;;  %v637_v51 = vrot.slane %v10671_v54, 6  ;;  %v640_v47 = vrot.slane %v10674_v21, 6  ;;  %v10687_v0 = vld [vmem:[%s10407_s8 + $0x1c] sm:$0xf] }
  0x52   : > { %9336 = vmatmul.mubr.msk.bf16.vlgmr.msra.gmra.mrb[0].mxu0 %vm667_vm4, %v8157_v28  ;;  %9257 = vmatprep.mubr.msk.bf16.mxu1 %vm667_vm4, %v8026_v1  ;;  %v2029_v50 = vor.u32 %v2028_v23, %v2025_v25  ;;  %v12717_v29 = vshrl.u32 %v10552_v30, 16  ;;  %v2033_v41 = vor.u32 %v2032_v44, %v2031_v57  ;;  %v12718_v42 = vshll.u32 %v10552_v30, 16  ;;  %v8120_v30 = vld [vmem:[%s10402_s5 + $0x60] sm:$0xc] }
  0x53   : > { %9352 = vmatpush3.bf16.msra.mxu0 %v2624_v10  ;;  %v2043_v33 = vor.u32 %v2042_v52, %v2039_v22  ;;  %v2046_v58 = vshrl.u32 %v10556_v35, 16  ;;  %v638_v53 = vsel %vm10439_vm3, %v8019_v38, %v637_v51  ;;  %v639_v28 = vrot.slane %v637_v51, 4  ;;  %v7980_v38 = vld [vmem:[%s10402_s5 + $0x24] sm:$0xe] }
  0x54   : > { %v2030_v46 = vrot.slane %v2029_v50, 4  ;;  %v2049_v1 = vshll.u32 %v10556_v35, 16  ;;  %10127 = vmatprep.subr.msk.bf16.mxu0 %vm692_vm0, %v10687_v0  ;;  %v2035_v10 = vrot.slane %v2033_v41, 4  ;;  %v2054_v57 = vrot.slane %v12717_v29, 6  ;;  %v10706_v29 = vld [vmem:[%s10402_s5 + $0x64] sm:$0xf] }
  0x55   : > { %v2048_v22 = vrot.slane %v2046_v58, 6  ;;  %v2055_v25 = vrot.slane %v12718_v42, 7  ;;  %v641_v44 = vsel %vm10439_vm3, %v639_v28, %v640_v47  ;;  %v2060_v35 = vshrl.u32 %v8151_v63, 16 }
  0x56   : > { %v2034_v23 = vsel %vm10606_vm7, %v2030_v46, %v2033_v41  ;;  %v2051_v52 = vrot.slane %v2049_v1, 7  ;;  %v2044_v50 = vsel %vm10606_vm7, %v2035_v10, %v2043_v33  ;;  %v8027_v51 = vcombine.low %v638_v53, %v641_v44  ;;  %v7983_v44 = vld [vmem:[%s10402_s5 + $0x30] sm:$0xe] }
  0x57   : > { %v2056_v58 = vor.u32 %v2055_v25, %v2054_v57  ;;  %v2063_v34 = vshll.u32 %v8151_v63, 16  ;;  %v8158_v6 = vcombine.low %v2034_v23, %v2044_v50  ;;  %v2062_v42 = vrot.slane %v2060_v35, 6 }
  0x58   : > { %v2052_v12 = vor.u32 %v2051_v52, %v2048_v22  ;;  %vm323_vm8 = vsmask.f32 2304  ;;  %9258 = vmatmul.mubr.msk.bf16.gmra.mrb[12].mxu1 %vm667_vm4, %v8027_v51  ;;  %vm324_vm9 = vsmask.f32 6416  ;;  %v327_v46 = vshrl.u32 %v7980_v38, 16 }
  0x59   : > { %v2058_v41 = vrot.slane %v2056_v58, 4  ;;  %v2065_v47 = vrot.slane %v2063_v34, 7  ;;  %9339 = vmatprep.mubr.msk.bf16.mxu0 %vm667_vm4, %v8158_v6  ;;  %v330_v53 = vshll.u32 %v7980_v38, 16  ;;  %v342_v63 = vor.u32 %v10432_v16, %v10430_v15  ;;  %vm10715_vm10 = vmor %vm323_vm8, %vm324_vm9  ;;  %v8152_v15 = vld [vmem:[%s10402_s5 + $0x68] sm:$0x7] }
  0x5a   : > { %v2053_v33 = vrot.slane %v2052_v12, 4  ;;  %v352_v28 = vor.u32 %v10436_v18, %v10434_v17  ;;  %v329_v34 = vrot.slane %v327_v46, 5  ;;  %v12726_v22 = vshrl.u32 %v10706_v29, 16 }
  0x5b   : > { %v2066_v1 = vor.u32 %v2065_v47, %v2062_v42  ;;  %v12725_v57 = vshll.u32 %v10706_v29, 16  ;;  %v332_v6 = vrot.slane %v330_v53, 6  ;;  %v344_v25 = vrot.slane %v342_v63, 4 }
  0x5c   : > { %v2057_v12 = vsel %vm10606_vm7, %v2053_v33, %v2056_v58  ;;  %v2069_v16 = vshrl.u32 %v8120_v30, 16  ;;  %v2072_v18 = vshll.u32 %v8120_v30, 16  ;;  %v2077_v42 = vrot.slane %v12726_v22, 6  ;;  %v7992_v22 = vld [vmem:[%s10402_s5 + $0x54] sm:$0xe] }
  0x5d   : > { %v2067_v17 = vsel %vm10606_vm7, %v2058_v41, %v2066_v1  ;;  %v2078_v23 = vrot.slane %v12725_v57, 7  ;;  %v333_v35 = vor.u32 %v332_v6, %v329_v34  ;;  %v353_v38 = vsel %vm10715_vm10, %v344_v25, %v352_v28 }
  0x5e   : > { %v8159_v52 = vcombine.low %v2057_v12, %v2067_v17  ;;  %v2071_v50 = vrot.slane %v2069_v16, 6  ;;  %v2074_v51 = vrot.slane %v2072_v18, 7  ;;  %v2083_v47 = vshrl.u32 %v8152_v15, 16  ;;  %v10736_v17 = vld [vmem:[%s10402_s5 + $0x70] sm:$0xf] }
  0x5f   : > { %v2079_v58 = vor.u32 %v2078_v23, %v2077_v42  ;;  %v2086_v41 = vshll.u32 %v8152_v15, 16  ;;  %v334_v30 = vrot.slane %v333_v35, 4  ;;  %v355_v46 = vshrl.u32 %v7983_v44, 16  ;;  %v10746_v42 = vld [vmem:[%s10402_s5 + $0x6c] sm:$0xc] }
  0x60   : > { %9340 = vmatmul.mubr.msk.bf16.gmra.mrb[4].mxu0 %vm667_vm4, %v8159_v52  ;;  %v358_v33 = vshll.u32 %v7983_v44, 16  ;;  %v372_v53 = vrot.slane %v10494_v7, 4  ;;  %v2075_v1 = vor.u32 %v2074_v51, %v2071_v50  ;;  %v2085_v34 = vrot.slane %v2083_v47, 6 }
  0x61   : > { %v2081_v12 = vrot.slane %v2079_v58, 4  ;;  %v2088_v6 = vrot.slane %v2086_v41, 7  ;;  %v343_v28 = vsel %vm10715_vm10, %v334_v30, %v342_v63  ;;  %v357_v25 = vrot.slane %v355_v46, 5  ;;  %v7986_v30 = vld [vmem:[%s10402_s5 + $0x3c] sm:$0xe] }
  0x62   : > { %v360_v16 = vrot.slane %v358_v33, 6  ;;  %v12760_v15 = vor.u32 %v10491_v4, %v10489_v2  ;;  %v8036_v23 = vcombine.low %v343_v28, %v353_v38  ;;  %v2076_v44 = vrot.slane %v2075_v1, 4  ;;  %v8153_v2 = vld [vmem:[%s10402_s5 + $0x74] sm:$0x7] }
  0x63   : > { %v2089_v52 = vor.u32 %v2088_v6, %v2085_v34  ;;  %v1186_v35 = vsel %vm692_vm0, %v10622_v24, 0  ;;  %v12724_v63 = vshrl.u32 %v10736_v17, 16  ;;  %v12721_v51 = vshll.u32 %v10736_v17, 16 }
  0x64   : > { %v381_v18 = vsel %vm10715_vm10, %v372_v53, %v12760_v15  ;;  %v361_v50 = vor.u32 %v360_v16, %v357_v25  ;;  %9263 = vmatprep.mubr.msk.bf16.mxu1 %vm667_vm4, %v8036_v23  ;;  %v2080_v4 = vsel %vm10606_vm7, %v2076_v44, %v2079_v58  ;;  %v2092_v24 = vshrl.u32 %v10746_v42, 16 }
  0x65   : > { %v2090_v38 = vsel %vm10606_vm7, %v2081_v12, %v2089_v52  ;;  %v2095_v53 = vshll.u32 %v10746_v42, 16  ;;  %v2100_v1 = vrot.slane %v12724_v63, 6  ;;  %v2101_v58 = vrot.slane %v12721_v51, 7 }
  0x66   : > { %v8160_v46 = vcombine.low %v2080_v4, %v2090_v38  ;;  %v362_v33 = vrot.slane %v361_v50, 4  ;;  %v2094_v34 = vrot.slane %v2092_v24, 6  ;;  %v2106_v6 = vshrl.u32 %v8153_v2, 16  ;;  %v10772_v4 = vld [vmem:[%s10402_s5 + $0x7c] sm:$0xf] }
  0x67   : > { %v2109_v12 = vshll.u32 %v8153_v2, 16  ;;  %v2097_v25 = vrot.slane %v2095_v53, 7  ;;  %v383_v16 = vshrl.u32 %v7986_v30, 16  ;;  %v386_v15 = vshll.u32 %v7986_v30, 16 }
  0x68   : > { %9343 = vmatprep.mubr.msk.bf16.mxu0 %vm667_vm4, %v8160_v46  ;;  %v371_v28 = vsel %vm10715_vm10, %v362_v33, %v10494_v7  ;;  %v2102_v44 = vor.u32 %v2101_v58, %v2100_v1  ;;  %v2108_v52 = vrot.slane %v2106_v6, 6  ;;  %v392_v2 = vshrl.u32 %v10510_v45, 16  ;;  %v10776_v46 = vld [vmem:[%s10407_s8 + $0xc] sm:$0xf]  ;;  %v8122_v6 = vld [vmem:[%s10402_s5 + $0x78] sm:$0xc] }
  0x69   : > { %v8037_v23 = vcombine.low %v371_v28, %v381_v18  ;;  %v2111_v50 = vrot.slane %v2109_v12, 7  ;;  %v2098_v38 = vor.u32 %v2097_v25, %v2094_v34  ;;  %v385_v24 = vrot.slane %v383_v16, 5 }
  0x6a   : > { %v388_v47 = vrot.slane %v386_v15, 6  ;;  %v2104_v7 = vrot.slane %v2102_v44, 4  ;;  %v395_v18 = vshll.u32 %v10510_v45, 16  ;;  %v402_v30 = vshrl.u32 %v10516_v49, 16  ;;  %v8154_v15 = vld [vmem:[%s10402_s5 + $0x80] sm:$0x7] }
  0x6b   : > { %9264 = vmatmul.mubr.msk.bf16.vlgmr.msra.gmra.mrb[0].mxu1 %vm667_vm4, %v8037_v23  ;;  %v2112_v33 = vor.u32 %v2111_v50, %v2108_v52  ;;  %v2099_v53 = vrot.slane %v2098_v38, 4  ;;  %v394_v34 = vrot.slane %v392_v2, 5  ;;  %v405_v58 = vshll.u32 %v10516_v49, 16 }
  0x6c   : > { %9280 = vmatpush3.bf16.msra.mxu1 %v1186_v35  ;;  %v389_v1 = vor.u32 %v388_v47, %v385_v24  ;;  %v397_v28 = vrot.slane %v395_v18, 6  ;;  %v404_v25 = vrot.slane %v402_v30, 5  ;;  %v12723_v16 = vshrl.u32 %v10772_v4, 16 }
  0x6d   : > { %v2113_v12 = vsel %vm10606_vm7, %v2104_v7, %v2112_v33  ;;  %10122 = vmatprep.subr.msk.bf16.mxu1 %vm692_vm0, %v10776_v46  ;;  %v2103_v35 = vsel %vm10606_vm7, %v2099_v53, %v2102_v44  ;;  %v407_v49 = vrot.slane %v405_v58, 6  ;;  %v12722_v23 = vshll.u32 %v10772_v4, 16  ;;  %v7989_v7 = vld [vmem:[%s10402_s5 + $0x48] sm:$0xe] }
  0x6e   : > { %v390_v47 = vrot.slane %v389_v1, 4  ;;  %v8161_v52 = vcombine.low %v2103_v35, %v2113_v12  ;;  %v398_v50 = vor.u32 %v397_v28, %v394_v34  ;;  %v2115_v38 = vshrl.u32 %v8122_v6, 16 }
  0x6f   : > { %v2118_v24 = vshll.u32 %v8122_v6, 16  ;;  %v408_v33 = vor.u32 %v407_v49, %v404_v25  ;;  %v2123_v30 = vrot.slane %v12723_v16, 6  ;;  %v2124_v41 = vrot.slane %v12722_v23, 7  ;;  %v10808_v16 = vld [vmem:[%s10402_s5 + $0x88] sm:$0xf] }
  0x70   : > { %v2129_v51 = vshrl.u32 %v8154_v15, 16  ;;  %9344 = vmatmul.mubr.msk.bf16.gmra.mrb[8].mxu0 %vm667_vm4, %v8161_v52  ;;  %v399_v44 = vsel %vm10715_vm10, %v390_v47, %v398_v50  ;;  %v400_v53 = vrot.slane %v398_v50, 4  ;;  %v2117_v1 = vrot.slane %v2115_v38, 6 }
  0x71   : > { %v2120_v34 = vrot.slane %v2118_v24, 7  ;;  %v2125_v58 = vor.u32 %v2124_v41, %v2123_v30  ;;  %v2132_v12 = vshll.u32 %v8154_v15, 16  ;;  %v411_v28 = vshrl.u32 %v7989_v7, 16  ;;  %v8123_v15 = vld [vmem:[%s10402_s5 + $0x84] sm:$0xc] }
  0x72   : > { %v2131_v6 = vrot.slane %v2129_v51, 6  ;;  %v409_v25 = vsel %vm10715_vm10, %v400_v53, %v408_v33  ;;  %v414_v49 = vshll.u32 %v7989_v7, 16  ;;  %v12727_v23 = vshrl.u32 %v10535_v5, 16 }
  0x73   : > { %v2121_v35 = vor.u32 %v2120_v34, %v2117_v1  ;;  %v8038_v52 = vcombine.low %v399_v44, %v409_v25  ;;  %v2127_v63 = vrot.slane %v2125_v58, 4  ;;  %v2134_v47 = vrot.slane %v2132_v12, 7 }
  0x74   : > { %v413_v50 = vrot.slane %v411_v28, 5  ;;  %v416_v24 = vrot.slane %v414_v49, 6  ;;  %v422_v51 = vrot.slane %v12727_v23, 5  ;;  %v12740_v41 = vshll.u32 %v10535_v5, 16 }
  0x75   : > { %v2122_v38 = vrot.slane %v2121_v35, 4  ;;  %9267 = vmatprep.mubr.msk.bf16.mxu1 %vm667_vm4, %v8038_v52  ;;  %v2135_v7 = vor.u32 %v2134_v47, %v2131_v6  ;;  %v430_v33 = vshrl.u32 %v10540_v11, 16  ;;  %v433_v30 = vshll.u32 %v10540_v11, 16  ;;  %v8155_v35 = vld [vmem:[%s10402_s5 + $0x8c] sm:$0x7] }
  0x76   : > { %v12729_v44 = vshrl.u32 %v10808_v16, 16  ;;  %v417_v1 = vor.u32 %v416_v24, %v413_v50  ;;  %v425_v34 = vrot.slane %v12740_v41, 6  ;;  %v12728_v12 = vshll.u32 %v10808_v16, 16  ;;  %v10930_v41 = vld [vmem:[%s10407_s8 + $0x20] sm:$0xf] }
  0x77   : > { %v2126_v53 = vsel %vm10606_vm7, %v2122_v38, %v2125_v58  ;;  %v2136_v28 = vsel %vm10606_vm7, %v2127_v63, %v2135_v7  ;;  %v432_v6 = vrot.slane %v430_v33, 5  ;;  %v435_v25 = vrot.slane %v433_v30, 6 }
  0x78   : > { %v2138_v49 = vshrl.u32 %v8123_v15, 16  ;;  %v8162_v52 = vcombine.low %v2126_v53, %v2136_v28  ;;  %v418_v11 = vrot.slane %v417_v1, 4  ;;  %v426_v47 = vor.u32 %v425_v34, %v422_v51 }
  0x79   : > { %v2141_v57 = vshll.u32 %v8123_v15, 16  ;;  %v436_v23 = vor.u32 %v435_v25, %v432_v6  ;;  %v2146_v50 = vrot.slane %v12729_v44, 6  ;;  %v2147_v38 = vrot.slane %v12728_v12, 7  ;;  %v8172_v25 = vld [vmem:[%s10402_s5 + $0x3c] sm:$0xe] }
  0x7a   : > { %v2140_v58 = vrot.slane %v2138_v49, 6  ;;  %9347 = vmatprep.mubr.msk.bf16.mxu0 %vm667_vm4, %v8162_v52  ;;  %v427_v63 = vsel %vm10715_vm10, %v418_v11, %v426_v47  ;;  %v428_v24 = vrot.slane %v426_v47, 4  ;;  %v2152_v33 = vshrl.u32 %v8155_v35, 16 }
  0x7b   : > { %v2143_v7 = vrot.slane %v2141_v57, 7  ;;  %v2148_v51 = vor.u32 %v2147_v38, %v2146_v50  ;;  %v2155_v15 = vshll.u32 %v8155_v35, 16  ;;  %v439_v30 = vshrl.u32 %v7992_v22, 16 }
  0x7c   : > { %v442_v53 = vshll.u32 %v7992_v22, 16  ;;  %v437_v1 = vsel %vm10715_vm10, %v428_v24, %v436_v23  ;;  %v2154_v28 = vrot.slane %v2152_v33, 6  ;;  %v12739_v6 = vshrl.u32 %v10576_v8, 16  ;;  %v10849_v33 = vld [vmem:[%s10402_s5 + $0x40] sm:$0xf] }
  0x7d   : > { %v2144_v34 = vor.u32 %v2143_v7, %v2140_v58  ;;  %v8039_v49 = vcombine.low %v427_v63, %v437_v1  ;;  %v2150_v52 = vrot.slane %v2148_v51, 4  ;;  %v2157_v11 = vrot.slane %v2155_v15, 7  ;;  %v10852_v15 = vld [vmem:[%s10402_s5 + $0x44] sm:$0x3] }
  0x7e   : > { %v441_v47 = vrot.slane %v439_v30, 5  ;;  %v444_v12 = vrot.slane %v442_v53, 6  ;;  %v450_v35 = vrot.slane %v12739_v6, 5  ;;  %v12730_v22 = vshll.u32 %v10576_v8, 16 }
  0x7f   : > { %v2145_v57 = vrot.slane %v2144_v34, 4  ;;  %9268 = vmatmul.mubr.msk.bf16.gmra.mrb[4].mxu1 %vm667_vm4, %v8039_v49  ;;  %v2158_v23 = vor.u32 %v2157_v11, %v2154_v28  ;;  %v458_v58 = vshrl.u32 %v10579_v9, 16  ;;  %v461_v50 = vshll.u32 %v10579_v9, 16 }
  0x80   : > { %v2351_v38 = vshrl.u32 %v8172_v25, 16  ;;  %v445_v24 = vor.u32 %v444_v12, %v441_v47  ;;  %v453_v7 = vrot.slane %v12730_v22, 6  ;;  %v2354_v30 = vshll.u32 %v8172_v25, 16 }
  0x81   : > { %v2149_v63 = vsel %vm10606_vm7, %v2145_v57, %v2148_v51  ;;  %v2159_v53 = vsel %vm10606_vm7, %v2150_v52, %v2158_v23  ;;  %v460_v1 = vrot.slane %v458_v58, 5  ;;  %v463_v34 = vrot.slane %v461_v50, 6  ;;  %v7995_v51 = vld [vmem:[%s10402_s5 + $0x60] sm:$0xe] }
  0x82   : > { %v2353_v9 = vrot.slane %v2351_v38, 5  ;;  %v8163_v28 = vcombine.low %v2149_v63, %v2159_v53  ;;  %v446_v49 = vrot.slane %v445_v24, 4  ;;  %v454_v11 = vor.u32 %v453_v7, %v450_v35 }
  0x83   : > { %v2356_v44 = vrot.slane %v2354_v30, 6  ;;  %v464_v12 = vor.u32 %v463_v34, %v460_v1  ;;  %v12732_v47 = vshrl.u32 %v10849_v33, 16  ;;  %v12731_v57 = vshll.u32 %v10849_v33, 16 }
  0x84   : > { %v2370_v22 = vshrl.u32 %v10852_v15, 16  ;;  %9348 = vmatmul.mubr.msk.bf16.gmra.mrb[12].mxu0 %vm667_vm4, %v8163_v28  ;;  %v455_v25 = vsel %vm10715_vm10, %v446_v49, %v454_v11  ;;  %v456_v52 = vrot.slane %v454_v11, 4  ;;  %v2373_v58 = vshll.u32 %v10852_v15, 16  ;;  %v8175_v28 = vld [vmem:[%s10402_s5 + $0x48] sm:$0xe] }
  0x85   : > { %v2357_v23 = vor.u32 %v2356_v44, %v2353_v9  ;;  %v2362_v35 = vrot.slane %v12732_v47, 5  ;;  %v2365_v50 = vrot.slane %v12731_v57, 6  ;;  %v467_v63 = vshrl.u32 %v7995_v51, 16  ;;  %v10875_v47 = vld [vmem:[%s10402_s5 + $0x4c] sm:$0xf] }
  0x86   : > { %v2372_v38 = vrot.slane %v2370_v22, 5  ;;  %v465_v24 = vsel %vm10715_vm10, %v456_v52, %v464_v12  ;;  %v2375_v30 = vrot.slane %v2373_v58, 6  ;;  %v470_v53 = vshll.u32 %v7995_v51, 16 }
  0x87   : > { %v2358_v7 = vrot.slane %v2357_v23, 4  ;;  %v8040_v1 = vcombine.low %v455_v25, %v465_v24  ;;  %v2366_v34 = vor.u32 %v2365_v50, %v2362_v35  ;;  %v469_v44 = vrot.slane %v467_v63, 5  ;;  %v10888_v24 = vld [vmem:[%s10402_s5 + $0x50] sm:$0x3] }
  0x88   : > { %v12733_v9 = vshrl.u32 %v10613_v13, 16  ;;  %v2376_v49 = vor.u32 %v2375_v30, %v2372_v38  ;;  %v472_v11 = vrot.slane %v470_v53, 6  ;;  %v12734_v57 = vshll.u32 %v10613_v13, 16 }
  0x89   : > { %v486_v22 = vshrl.u32 %v10616_v20, 16  ;;  %9271 = vmatprep.mubr.msk.bf16.mxu1 %vm667_vm4, %v8040_v1  ;;  %v2367_v51 = vsel %vm10715_vm10, %v2358_v7, %v2366_v34  ;;  %v2368_v12 = vrot.slane %v2366_v34, 4  ;;  %v489_v52 = vshll.u32 %v10616_v20, 16  ;;  %v7998_v20 = vld [vmem:[%s10402_s5 + $0x6c] sm:$0xe] }
  0x8a   : > { %v478_v25 = vrot.slane %v12733_v9, 5  ;;  %v473_v23 = vor.u32 %v472_v11, %v469_v44  ;;  %v481_v58 = vrot.slane %v12734_v57, 6  ;;  %v2379_v50 = vshrl.u32 %v8175_v28, 16 }
  0x8b   : > { %v488_v35 = vrot.slane %v486_v22, 5  ;;  %v2377_v38 = vsel %vm10715_vm10, %v2368_v12, %v2376_v49  ;;  %v491_v63 = vrot.slane %v489_v52, 6  ;;  %v2382_v7 = vshll.u32 %v8175_v28, 16 }
  0x8c   : > { %v12735_v30 = vshrl.u32 %v10875_v47, 16  ;;  %v8196_v53 = vcombine.low %v2367_v51, %v2377_v38  ;;  %v474_v1 = vrot.slane %v473_v23, 4  ;;  %v482_v34 = vor.u32 %v481_v58, %v478_v25 }
  0x8d   : > { %v2381_v9 = vrot.slane %v2379_v50, 5  ;;  %v492_v44 = vor.u32 %v491_v63, %v488_v35  ;;  %v2384_v11 = vrot.slane %v2382_v7, 6  ;;  %v12736_v57 = vshll.u32 %v10875_v47, 16 }
  0x8e   : > { %v2390_v22 = vrot.slane %v12735_v30, 5  ;;  %9353 = vmatprep.mubr.msk.bf16.mxu0 %vm667_vm4, %v8196_v53  ;;  %v483_v49 = vsel %vm10715_vm10, %v474_v1, %v482_v34  ;;  %v484_v28 = vrot.slane %v482_v34, 4  ;;  %v2398_v51 = vshrl.u32 %v10888_v24, 16  ;;  %v8178_v30 = vld [vmem:[%s10402_s5 + $0x54] sm:$0xe] }
  0x8f   : > { %v2401_v12 = vshll.u32 %v10888_v24, 16  ;;  %v2385_v25 = vor.u32 %v2384_v11, %v2381_v9  ;;  %v2393_v52 = vrot.slane %v12736_v57, 6  ;;  %v2877_v23 = vsel %vm692_vm0, %v10687_v0, 0 }
  0x90   : > { %v495_v58 = vshrl.u32 %v7998_v20, 16  ;;  %v493_v35 = vsel %vm10715_vm10, %v484_v28, %v492_v44  ;;  %v2400_v50 = vrot.slane %v2398_v51, 5  ;;  %v498_v63 = vshll.u32 %v7998_v20, 16 }
  0x91   : > { %v2403_v38 = vrot.slane %v2401_v12, 6  ;;  %v8041_v7 = vcombine.low %v483_v49, %v493_v35  ;;  %v2386_v53 = vrot.slane %v2385_v25, 4  ;;  %v2394_v1 = vor.u32 %v2393_v52, %v2390_v22  ;;  %v10919_v25 = vld [vmem:[%s10402_s5 + $0x58] sm:$0xf] }
  0x92   : > { %v497_v34 = vrot.slane %v495_v58, 5  ;;  %v500_v11 = vrot.slane %v498_v63, 6  ;;  %v12737_v57 = vshrl.u32 %v10637_v48, 16  ;;  %v12738_v0 = vshll.u32 %v10637_v48, 16 }
  0x93   : > { %v2404_v9 = vor.u32 %v2403_v38, %v2400_v50  ;;  %9272 = vmatmul.mubr.msk.bf16.gmra.mrb[8].mxu1 %vm667_vm4, %v8041_v7  ;;  %v2395_v44 = vsel %vm10715_vm10, %v2386_v53, %v2394_v1  ;;  %v2396_v28 = vrot.slane %v2394_v1, 4  ;;  %v514_v20 = vshrl.u32 %v10642_v61, 16  ;;  %v10924_v38 = vld [vmem:[%s10402_s5 + $0x5c] sm:$0x3] }
  0x94   : > { %v517_v22 = vshll.u32 %v10642_v61, 16  ;;  %v501_v49 = vor.u32 %v500_v11, %v497_v34  ;;  %v506_v51 = vrot.slane %v12737_v57, 5  ;;  %v509_v12 = vrot.slane %v12738_v0, 6  ;;  %v8001_v34 = vld [vmem:[%s10402_s5 + $0x78] sm:$0xe] }
  0x95   : > { %v2407_v52 = vshrl.u32 %v8178_v30, 16  ;;  %v2405_v58 = vsel %vm10715_vm10, %v2396_v28, %v2404_v9  ;;  %v516_v35 = vrot.slane %v514_v20, 5  ;;  %v2410_v63 = vshll.u32 %v8178_v30, 16 }
  0x96   : > { %v519_v50 = vrot.slane %v517_v22, 6  ;;  %v8197_v61 = vcombine.low %v2395_v44, %v2405_v58  ;;  %v502_v7 = vrot.slane %v501_v49, 4  ;;  %v510_v53 = vor.u32 %v509_v12, %v506_v51 }
  0x97   : > { %v2409_v1 = vrot.slane %v2407_v52, 5  ;;  %v2412_v57 = vrot.slane %v2410_v63, 6  ;;  %v12742_v0 = vshrl.u32 %v10919_v25, 16  ;;  %v12741_v6 = vshll.u32 %v10919_v25, 16 }
  0x98   : > { %v520_v11 = vor.u32 %v519_v50, %v516_v35  ;;  %9354 = vmatmul.mubr.msk.bf16.vlgmr.msra.gmra.mrb[0].mxu0 %vm667_vm4, %v8197_v61  ;;  %v511_v9 = vsel %vm10715_vm10, %v502_v7, %v510_v53  ;;  %v512_v28 = vrot.slane %v510_v53, 4  ;;  %v2426_v30 = vshrl.u32 %v10924_v38, 16  ;;  %v8181_v61 = vld [vmem:[%s10402_s5 + $0x60] sm:$0xe] }
  0x99   : > { %v2429_v44 = vshll.u32 %v10924_v38, 16  ;;  %9370 = vmatpush3.bf16.msra.mxu0 %v2877_v23  ;;  %v2413_v20 = vor.u32 %v2412_v57, %v2409_v1  ;;  %v2418_v22 = vrot.slane %v12742_v0, 5  ;;  %v2421_v49 = vrot.slane %v12741_v6, 6 }
  0x9a   : > { %v523_v51 = vshrl.u32 %v8001_v34, 16  ;;  %v521_v12 = vsel %vm10715_vm10, %v512_v28, %v520_v11  ;;  %v2428_v52 = vrot.slane %v2426_v30, 5  ;;  %v526_v35 = vshll.u32 %v8001_v34, 16  ;;  %10128 = vmatprep.subr.msk.bf16.mxu0 %vm692_vm0, %v10930_v41 }
  0x9b   : > { %v2431_v58 = vrot.slane %v2429_v44, 6  ;;  %v8042_v50 = vcombine.low %v511_v9, %v521_v12  ;;  %v2414_v63 = vrot.slane %v2413_v20, 4  ;;  %v2422_v57 = vor.u32 %v2421_v49, %v2418_v22  ;;  %v10958_v22 = vld [vmem:[%s10402_s5 + $0x64] sm:$0xf] }
  0x9c   : > { %v525_v23 = vrot.slane %v523_v51, 5  ;;  %v528_v53 = vrot.slane %v526_v35, 6  ;;  %v12746_v1 = vshrl.u32 %v10671_v54, 16  ;;  %v12743_v6 = vshll.u32 %v10671_v54, 16 }
  0x9d   : > { %v2432_v7 = vor.u32 %v2431_v58, %v2428_v52  ;;  %9275 = vmatprep.mubr.msk.bf16.mxu1 %vm667_vm4, %v8042_v50  ;;  %v2423_v34 = vsel %vm10715_vm10, %v2414_v63, %v2422_v57  ;;  %v2424_v11 = vrot.slane %v2422_v57, 4  ;;  %v542_v9 = vshrl.u32 %v10674_v21, 16  ;;  %v10963_v58 = vld [vmem:[%s10402_s5 + $0x68] sm:$0x3] }
  0x9e   : > { %v545_v28 = vshll.u32 %v10674_v21, 16  ;;  %v529_v30 = vor.u32 %v528_v53, %v525_v23  ;;  %v534_v44 = vrot.slane %v12746_v1, 5  ;;  %v537_v20 = vrot.slane %v12743_v6, 6 }
  0x9f   : > { %v2435_v49 = vshrl.u32 %v8181_v61, 16  ;;  %v2433_v51 = vsel %vm10715_vm10, %v2424_v11, %v2432_v7  ;;  %v544_v12 = vrot.slane %v542_v9, 5  ;;  %v2438_v35 = vshll.u32 %v8181_v61, 16 }
  0xa0   : > { %v547_v52 = vrot.slane %v545_v28, 6  ;;  %v8198_v50 = vcombine.low %v2423_v34, %v2433_v51  ;;  %v530_v21 = vrot.slane %v529_v30, 4  ;;  %v538_v63 = vor.u32 %v537_v20, %v534_v44  ;;  %v8052_v44 = vld [vmem:[%s10402_s5 + $0x2c] sm:$0x7] }
  0xa1   : > { %v2437_v57 = vrot.slane %v2435_v49, 5  ;;  %v2440_v53 = vrot.slane %v2438_v35, 6  ;;  %v12745_v0 = vshrl.u32 %v10958_v22, 16  ;;  %v12744_v6 = vshll.u32 %v10958_v22, 16  ;;  %v8184_v35 = vld [vmem:[%s10402_s5 + $0x6c] sm:$0xe] }
  0xa2   : > { %v548_v23 = vor.u32 %v547_v52, %v544_v12  ;;  %9357 = vmatprep.mubr.msk.bf16.mxu0 %vm667_vm4, %v8198_v50  ;;  %v539_v7 = vsel %vm10715_vm10, %v530_v21, %v538_v63  ;;  %v540_v11 = vrot.slane %v538_v63, 4  ;;  %v2454_v61 = vshrl.u32 %v10963_v58, 16 }
  0xa3   : > { %v2457_v34 = vshll.u32 %v10963_v58, 16  ;;  %v2441_v9 = vor.u32 %v2440_v53, %v2437_v57  ;;  %v2446_v28 = vrot.slane %v12745_v0, 5  ;;  %v2449_v30 = vrot.slane %v12744_v6, 6  ;;  %v10985_v53 = vld [vmem:[%s10402_s5 + $0x70] sm:$0xf] }
  0xa4   : > { %v959_v20 = vor.u32 %v10461_v36, %v10456_v31  ;;  %v549_v49 = vsel %vm10715_vm10, %v540_v11, %v548_v23  ;;  %v2456_v51 = vrot.slane %v2454_v61, 5  ;;  %v963_v52 = vor.u32 %v10451_v27, %v10449_v26  ;;  %v10988_v36 = vld [vmem:[%s10402_s5 + $0x74] sm:$0x3] }
  0xa5   : > { %v2459_v12 = vrot.slane %v2457_v34, 6  ;;  %v8043_v50 = vcombine.low %v539_v7, %v549_v49  ;;  %v2442_v21 = vrot.slane %v2441_v9, 4  ;;  %v2450_v63 = vor.u32 %v2449_v30, %v2446_v28  ;;  %v8053_v49 = vld [vmem:[%s10402_s5 + $0x38] sm:$0x7] }
  0xa6   : > { %v960_v57 = vrot.slane %v959_v20, 4  ;;  %v965_v0 = vrot.slane %v963_v52, 4  ;;  %v967_v1 = vshrl.u32 %v8052_v44, 16  ;;  %v970_v31 = vshll.u32 %v8052_v44, 16 }
  0xa7   : > { %v2460_v6 = vor.u32 %v2459_v12, %v2456_v51  ;;  %9276 = vmatmul.mubr.msk.bf16.gmra.mrb[12].mxu1 %vm667_vm4, %v8043_v50  ;;  %v2451_v23 = vsel %vm10715_vm10, %v2442_v21, %v2450_v63  ;;  %v2452_v26 = vrot.slane %v2450_v63, 4  ;;  %v2463_v7 = vshrl.u32 %v8184_v35, 16  ;;  %v8187_v63 = vld [vmem:[%s10402_s5 + $0x78] sm:$0xe] }
  0xa8   : > { %v964_v27 = vsel %vm10606_vm7, %v960_v57, %v963_v52  ;;  %v969_v11 = vrot.slane %v967_v1, 6  ;;  %v972_v61 = vrot.slane %v970_v31, 7  ;;  %v2466_v34 = vshll.u32 %v8184_v35, 16 }
  0xa9   : > { %v12748_v9 = vshrl.u32 %v10985_v53, 16  ;;  %v2461_v28 = vsel %vm10715_vm10, %v2452_v26, %v2460_v6  ;;  %v2465_v30 = vrot.slane %v2463_v7, 5  ;;  %v12747_v44 = vshll.u32 %v10985_v53, 16 }
  0xaa   : > { %v2482_v20 = vshrl.u32 %v10988_v36, 16  ;;  %v8199_v51 = vcombine.low %v2451_v23, %v2461_v28  ;;  %v973_v12 = vor.u32 %v972_v61, %v969_v11  ;;  %v2468_v50 = vrot.slane %v2466_v34, 6  ;;  %v11016_v28 = vld [vmem:[%s10402_s5 + $0x7c] sm:$0xf] }
  0xab   : > { %v2474_v1 = vrot.slane %v12748_v9, 5  ;;  %v2477_v52 = vrot.slane %v12747_v44, 6  ;;  %v2485_v21 = vshll.u32 %v10988_v36, 16  ;;  %v987_v6 = vsel %vm10606_vm7, %v10519_v55, %v10507_v32  ;;  %v11021_v9 = vld [vmem:[%s10402_s5 + $0x80] sm:$0x3] }
  0xac   : > { %v2484_v35 = vrot.slane %v2482_v20, 5  ;;  %9358 = vmatmul.mubr.msk.bf16.gmra.mrb[4].mxu0 %vm667_vm4, %v8199_v51  ;;  %v974_v57 = vsel %vm10606_vm7, %v965_v0, %v973_v12  ;;  %v2469_v31 = vor.u32 %v2468_v50, %v2465_v30  ;;  %v988_v23 = vrot.slane %v10507_v32, 4 }
  0xad   : > { %v990_v26 = vshrl.u32 %v8053_v49, 16  ;;  %v8060_v7 = vcombine.low %v964_v27, %v974_v57  ;;  %v2478_v11 = vor.u32 %v2477_v52, %v2474_v1  ;;  %v2487_v61 = vrot.slane %v2485_v21, 6 }
  0xae   : > { %v993_v34 = vshll.u32 %v8053_v49, 16  ;;  %v2470_v20 = vrot.slane %v2469_v31, 4  ;;  %v1600_v55 = vsel %vm692_vm0, %v10776_v46, 0  ;;  %v2491_v51 = vshrl.u32 %v8187_v63, 16 }
  0xaf   : > { %v992_v44 = vrot.slane %v990_v26, 6  ;;  %9281 = vmatprep.mubr.msk.bf16.mxu1 %vm667_vm4, %v8060_v7  ;;  %v2480_v0 = vrot.slane %v2478_v11, 4  ;;  %v2488_v30 = vor.u32 %v2487_v61, %v2484_v35  ;;  %v2494_v12 = vshll.u32 %v8187_v63, 16 }
  0xb0   : > { %v995_v32 = vrot.slane %v993_v34, 7  ;;  %v2479_v27 = vsel %vm10715_vm10, %v2470_v20, %v2478_v11  ;;  %v2493_v49 = vrot.slane %v2491_v51, 5  ;;  %v12752_v50 = vshrl.u32 %v11016_v28, 16  ;;  %v8054_v34 = vld [vmem:[%s10402_s5 + $0x44] sm:$0x7] }
  0xb1   : > { %v12749_v1 = vshll.u32 %v11016_v28, 16  ;;  %v2489_v46 = vsel %vm10715_vm10, %v2480_v0, %v2488_v30  ;;  %v2496_v21 = vrot.slane %v2494_v12, 6  ;;  %v2510_v57 = vshrl.u32 %v11021_v9, 16  ;;  %v8190_v12 = vld [vmem:[%s10402_s5 + $0x84] sm:$0xe] }
  0xb2   : > { %v996_v52 = vor.u32 %v995_v32, %v992_v44  ;;  %v8200_v35 = vcombine.low %v2479_v27, %v2489_v46  ;;  %v2502_v63 = vrot.slane %v12752_v50, 5  ;;  %v2513_v26 = vshll.u32 %v11021_v9, 16  ;;  %v10209_v44 = vld [vmem:[%s10402_s5 + $0x3c] sm:$0xc]  ;;  %v11080_v50 = vld [vmem:[%s10402_s5 + $0x94] sm:$0xf] }
  0xb3   : > { %v2505_v31 = vrot.slane %v12749_v1, 6  ;;  %v2497_v11 = vor.u32 %v2496_v21, %v2493_v49  ;;  %v2512_v61 = vrot.slane %v2510_v57, 5  ;;  %v999_v20 = vshrl.u32 %v10209_v44, 16 }
  0xb4   : > { %v997_v7 = vsel %vm10606_vm7, %v988_v23, %v996_v52  ;;  %9361 = vmatprep.mubr.msk.bf16.mxu0 %vm667_vm4, %v8200_v35  ;;  %v2515_v30 = vrot.slane %v2513_v26, 6  ;;  %v1002_v32 = vshll.u32 %v10209_v44, 16  ;;  %v1007_v1 = vrot.slane %v392_v2, 6 }
  0xb5   : > { %v8061_v51 = vcombine.low %v987_v6, %v997_v7  ;;  %v2506_v0 = vor.u32 %v2505_v31, %v2502_v63  ;;  %v2498_v27 = vrot.slane %v2497_v11, 4  ;;  %v1001_v46 = vrot.slane %v999_v20, 6  ;;  %v11050_v31 = vld [vmem:[%s10402_s5 + $0x88] sm:$0xf]  ;;  %v11055_v7 = vld [vmem:[%s10402_s5 + $0x8c] sm:$0x3] }
  0xb6   : > { %v1008_v23 = vrot.slane %v395_v18, 7  ;;  %v2516_v52 = vor.u32 %v2515_v30, %v2512_v61  ;;  %v1004_v6 = vrot.slane %v1002_v32, 7  ;;  %v1013_v21 = vshrl.u32 %v8054_v34, 16  ;;  %v10210_v61 = vld [vmem:[%s10407_s8 + $0x10] sm:$0xf] }
  0xb7   : > { %9282 = vmatmul.mubr.msk.bf16.vlgmr.msra.gmra.mrb[0].mxu1 %vm667_vm4, %v8061_v51  ;;  %v2508_v49 = vrot.slane %v2506_v0, 4  ;;  %v2507_v57 = vsel %vm10715_vm10, %v2498_v27, %v2506_v0  ;;  %v1016_v63 = vshll.u32 %v8054_v34, 16  ;;  %v2519_v2 = vshrl.u32 %v8190_v12, 16 }
  0xb8   : > { %9298 = vmatpush3.bf16.msra.mxu1 %v1600_v55  ;;  %v1009_v35 = vor.u32 %v1008_v23, %v1007_v1  ;;  %v1005_v18 = vor.u32 %v1004_v6, %v1001_v46  ;;  %v1015_v26 = vrot.slane %v1013_v21, 6  ;;  %v2522_v11 = vshll.u32 %v8190_v12, 16  ;;  %v10211_v46 = vld [vmem:[%s10402_s5 + $0x48] sm:$0xc] }
  0xb9   : > { %v2517_v45 = vsel %vm10715_vm10, %v2508_v49, %v2516_v52  ;;  %10124 = vmatprep.subr.msk.bf16.mxu1 %vm692_vm0, %v10210_v61  ;;  %v1018_v20 = vrot.slane %v1016_v63, 7  ;;  %v2521_v1 = vrot.slane %v2519_v2, 5  ;;  %v12751_v0 = vshrl.u32 %v11050_v31, 16 }
  0xba   : > { %v8201_v55 = vcombine.low %v2507_v57, %v2517_v45  ;;  %v1011_v44 = vrot.slane %v1009_v35, 4  ;;  %v1006_v34 = vrot.slane %v1005_v18, 4  ;;  %v2524_v51 = vrot.slane %v2522_v11, 6  ;;  %v8055_v57 = vld [vmem:[%s10402_s5 + $0x50] sm:$0x7] }
  0xbb   : > { %v12750_v30 = vshll.u32 %v11050_v31, 16  ;;  %v1019_v32 = vor.u32 %v1018_v20, %v1015_v26  ;;  %v2538_v27 = vshrl.u32 %v11055_v7, 16  ;;  %v2541_v12 = vshll.u32 %v11055_v7, 16 }
  0xbc   : > { %9362 = vmatmul.mubr.msk.bf16.gmra.mrb[8].mxu0 %vm667_vm4, %v8201_v55  ;;  %v1022_v23 = vshrl.u32 %v10211_v46, 16  ;;  %v1010_v49 = vsel %vm10606_vm7, %v1006_v34, %v1009_v35  ;;  %v2525_v52 = vor.u32 %v2524_v51, %v2521_v1  ;;  %v2530_v6 = vrot.slane %v12751_v0, 5  ;;  %v8193_v35 = vld [vmem:[%s10402_s5 + $0x90] sm:$0xe] }
  0xbd   : > { %v2533_v21 = vrot.slane %v12750_v30, 6  ;;  %v1020_v63 = vsel %vm10606_vm7, %v1011_v44, %v1019_v32  ;;  %v2540_v2 = vrot.slane %v2538_v27, 5  ;;  %v2543_v45 = vrot.slane %v2541_v12, 6 }
  0xbe   : > { %v1024_v18 = vrot.slane %v1022_v23, 6  ;;  %v8062_v26 = vcombine.low %v1010_v49, %v1020_v63  ;;  %v2526_v11 = vrot.slane %v2525_v52, 4  ;;  %v1025_v55 = vshll.u32 %v10211_v46, 16  ;;  %v11088_v63 = vld [vmem:[%s10402_s5 + $0x98] sm:$0x3] }
  0xbf   : > { %v2534_v61 = vor.u32 %v2533_v21, %v2530_v6  ;;  %v2544_v20 = vor.u32 %v2543_v45, %v2540_v2  ;;  %v12761_v1 = vshrl.u32 %v10535_v5, 16  ;;  %v12762_v51 = vshll.u32 %v10535_v5, 16 }
  0xc0   : > { %v1036_v0 = vshrl.u32 %v8055_v57, 16  ;;  %9285 = vmatprep.mubr.msk.bf16.mxu1 %vm667_vm4, %v8062_v26  ;;  %v1027_v27 = vrot.slane %v1025_v55, 7  ;;  %v1039_v12 = vshll.u32 %v8055_v57, 16  ;;  %v2547_v49 = vshrl.u32 %v8193_v35, 16 }
  0xc1   : > { %v1030_v34 = vrot.slane %v12761_v1, 6  ;;  %v1031_v30 = vrot.slane %v12762_v51, 7  ;;  %v2535_v44 = vsel %vm10715_vm10, %v2526_v11, %v2534_v61  ;;  %v2536_v32 = vrot.slane %v2534_v61, 4  ;;  %v10212_v1 = vld [vmem:[%s10402_s5 + $0x54] sm:$0xc] }
  0xc2   : > { %v1038_v23 = vrot.slane %v1036_v0, 6  ;;  %v2550_v52 = vshll.u32 %v8193_v35, 16  ;;  %v1028_v6 = vor.u32 %v1027_v27, %v1024_v18  ;;  %v1041_v21 = vrot.slane %v1039_v12, 7  ;;  %v8056_v27 = vld [vmem:[%s10402_s5 + $0x5c] sm:$0x7] }
  0xc3   : > { %v1032_v46 = vor.u32 %v1031_v30, %v1030_v34  ;;  %v2545_v5 = vsel %vm10715_vm10, %v2536_v32, %v2544_v20  ;;  %v2556_v2 = vshrl.u32 %v11080_v50, 16  ;;  %v2549_v11 = vrot.slane %v2547_v49, 5 }
  0xc4   : > { %v8202_v45 = vcombine.low %v2535_v44, %v2545_v5  ;;  %v2552_v61 = vrot.slane %v2550_v52, 6  ;;  %v1029_v57 = vrot.slane %v1028_v6, 4  ;;  %v1042_v30 = vor.u32 %v1041_v21, %v1038_v23  ;;  %v11106_v6 = vld [vmem:[%s10402_s5 + $0x3c] sm:$0xc] }
  0xc5   : > { %v1034_v26 = vrot.slane %v1032_v46, 4  ;;  %v2558_v0 = vrot.slane %v2556_v2, 5  ;;  %v2559_v55 = vshll.u32 %v11080_v50, 16  ;;  %v2566_v35 = vshrl.u32 %v11088_v63, 16 }
  0xc6   : > { %9365 = vmatprep.mubr.msk.bf16.mxu0 %vm667_vm4, %v8202_v45  ;;  %v2553_v18 = vor.u32 %v2552_v61, %v2549_v11  ;;  %v2569_v20 = vshll.u32 %v11088_v63, 16  ;;  %v1045_v34 = vshrl.u32 %v10212_v1, 16  ;;  %v1033_v51 = vsel %vm10606_vm7, %v1029_v57, %v1032_v46 }
  0xc7   : > { %v1043_v44 = vsel %vm10606_vm7, %v1034_v26, %v1042_v30  ;;  %v2561_v32 = vrot.slane %v2559_v55, 6  ;;  %v1048_v12 = vshll.u32 %v10212_v1, 16  ;;  %v2568_v52 = vrot.slane %v2566_v35, 5 }
  0xc8   : > { %v8063_v23 = vcombine.low %v1033_v51, %v1043_v44  ;;  %v2554_v49 = vrot.slane %v2553_v18, 4  ;;  %v2571_v5 = vrot.slane %v2569_v20, 6  ;;  %v1047_v45 = vrot.slane %v1045_v34, 6 }
  0xc9   : > { %v2562_v21 = vor.u32 %v2561_v32, %v2558_v0  ;;  %v1050_v11 = vrot.slane %v1048_v12, 7  ;;  %v12763_v61 = vshrl.u32 %v10576_v8, 16  ;;  %v12764_v57 = vshll.u32 %v10576_v8, 16 }
  0xca   : > { %9286 = vmatmul.mubr.msk.bf16.gmra.mrb[4].mxu1 %vm667_vm4, %v8063_v23  ;;  %v2572_v26 = vor.u32 %v2571_v5, %v2568_v52  ;;  %v1059_v1 = vshrl.u32 %v8056_v27, 16  ;;  %v1062_v18 = vshll.u32 %v8056_v27, 16  ;;  %v8220_v34 = vrot.slane %v11106_v6, 10  ;;  %v8057_v27 = vld [vmem:[%s10402_s5 + $0x68] sm:$0x7] }
  0xcb   : > { %v1053_v46 = vrot.slane %v12763_v61, 6  ;;  %v1054_v30 = vrot.slane %v12764_v57, 7  ;;  %v2563_v35 = vsel %vm10715_vm10, %v2554_v49, %v2562_v21  ;;  %v2564_v20 = vrot.slane %v2562_v21, 4  ;;  %v10213_v5 = vld [vmem:[%s10402_s5 + $0x60] sm:$0xc] }
  0xcc   : > { %v1051_v0 = vor.u32 %v1050_v11, %v1047_v45  ;;  %v1061_v44 = vrot.slane %v1059_v1, 6  ;;  %v1064_v32 = vrot.slane %v1062_v18, 7  ;;  %v2773_v12 = vrot.slane %v10849_v33, 6  ;;  %v11127_v18 = vld [vmem:[%s10402_s5 + $0x48] sm:$0xc] }
  0xcd   : > { %v1055_v51 = vor.u32 %v1054_v30, %v1053_v46  ;;  %v2573_v8 = vsel %vm10715_vm10, %v2564_v20, %v2572_v26  ;;  %v2776_v52 = vrot.slane %v10852_v15, 6  ;;  %v1068_v61 = vshrl.u32 %v10213_v5, 16 }
  0xce   : > { %v1052_v23 = vrot.slane %v1051_v0, 4  ;;  %v8203_v49 = vcombine.low %v2563_v35, %v2573_v8  ;;  %v1065_v45 = vor.u32 %v1064_v32, %v1061_v44  ;;  %v2774_v11 = vsel %vm10439_vm3, %v8220_v34, %v2773_v12 }
  0xcf   : > { %v1057_v21 = vrot.slane %v1055_v51, 4  ;;  %v2775_v57 = vrot.slane %v2773_v12, 4  ;;  %v1070_v30 = vrot.slane %v1068_v61, 6  ;;  %v1071_v1 = vshll.u32 %v10213_v5, 16 }
  0xd0   : > { %v1056_v46 = vsel %vm10606_vm7, %v1052_v23, %v1055_v51  ;;  %9366 = vmatmul.mubr.msk.bf16.gmra.mrb[12].mxu0 %vm667_vm4, %v8203_v49  ;;  %v12765_v26 = vshrl.u32 %v10613_v13, 16  ;;  %v12766_v20 = vshll.u32 %v10613_v13, 16  ;;  %v1082_v34 = vshrl.u32 %v8057_v27, 16 }
  0xd1   : > { %v1066_v15 = vsel %vm10606_vm7, %v1057_v21, %v1065_v45  ;;  %v2777_v51 = vsel %vm10439_vm3, %v2775_v57, %v2776_v52  ;;  %v1073_v32 = vrot.slane %v1071_v1, 7  ;;  %v1085_v12 = vshll.u32 %v8057_v27, 16 }
  0xd2   : > { %v1076_v35 = vrot.slane %v12765_v26, 6  ;;  %v1077_v0 = vrot.slane %v12766_v20, 7  ;;  %v8064_v44 = vcombine.low %v1056_v46, %v1066_v15  ;;  %v8228_v8 = vcombine.low %v2774_v11, %v2777_v51  ;;  %v8058_v11 = vld [vmem:[%s10402_s5 + $0x74] sm:$0x7]  ;;  %v10214_v46 = vld [vmem:[%s10402_s5 + $0x6c] sm:$0xc] }
  0xd3   : > { %v1084_v5 = vrot.slane %v1082_v34, 6  ;;  %v8221_v61 = vrot.slane %v11127_v18, 10  ;;  %v1074_v49 = vor.u32 %v1073_v32, %v1070_v30  ;;  %v1087_v21 = vrot.slane %v1085_v12, 7  ;;  %v11154_v32 = vld [vmem:[%s10402_s5 + $0x54] sm:$0xc] }
  0xd4   : > { %v1078_v23 = vor.u32 %v1077_v0, %v1076_v35  ;;  %9289 = vmatprep.mubr.msk.bf16.mxu1 %vm667_vm4, %v8064_v44  ;;  %v2780_v13 = vrot.slane %v10875_v47, 6  ;;  %v2783_v45 = vrot.slane %v10888_v24, 6  ;;  %9371 = vmatprep.mubr.msk.bf16.mxu0 %vm667_vm4, %v8228_v8  ;;  %v3234_v27 = vsel %vm692_vm0, %v10930_v41, 0 }
  0xd5   : > { %v1091_v57 = vshrl.u32 %v10214_v46, 16  ;;  %v1094_v1 = vshll.u32 %v10214_v46, 16  ;;  %v1075_v15 = vrot.slane %v1074_v49, 4  ;;  %v1088_v26 = vor.u32 %v1087_v21, %v1084_v5 }
  0xd6   : > { %v1080_v52 = vrot.slane %v1078_v23, 4  ;;  %v2781_v30 = vsel %vm10439_vm3, %v8221_v61, %v2780_v13  ;;  %v2782_v35 = vrot.slane %v2780_v13, 4  ;;  %v12767_v24 = vshrl.u32 %v10637_v48, 16 }
  0xd7   : > { %v1093_v20 = vrot.slane %v1091_v57, 6  ;;  %v1096_v0 = vrot.slane %v1094_v1, 7  ;;  %v12768_v44 = vshll.u32 %v10637_v48, 16  ;;  %v1079_v41 = vsel %vm10606_vm7, %v1075_v15, %v1078_v23  ;;  %v8059_v15 = vld [vmem:[%s10402_s5 + $0x80] sm:$0x7] }
  0xd8   : > { %v1099_v34 = vrot.slane %v12767_v24, 6  ;;  %v1089_v12 = vsel %vm10606_vm7, %v1080_v52, %v1088_v26  ;;  %v2784_v8 = vsel %vm10439_vm3, %v2782_v35, %v2783_v45  ;;  %v1105_v5 = vshrl.u32 %v8058_v11, 16  ;;  %v10215_v26 = vld [vmem:[%s10402_s5 + $0x78] sm:$0xc]  ;;  %v11172_v24 = vld [vmem:[%s10402_s5 + $0x60] sm:$0xc] }
  0xd9   : > { %v1100_v51 = vrot.slane %v12768_v44, 7  ;;  %v8065_v61 = vcombine.low %v1079_v41, %v1089_v12  ;;  %v8229_v49 = vcombine.low %v2781_v30, %v2784_v8  ;;  %v1097_v21 = vor.u32 %v1096_v0, %v1093_v20 }
  0xda   : > { %v1107_v48 = vrot.slane %v1105_v5, 6  ;;  %v1108_v46 = vshll.u32 %v8058_v11, 16  ;;  %v8222_v57 = vrot.slane %v11154_v32, 10  ;;  %v2787_v23 = vrot.slane %v10919_v25, 6 }
  0xdb   : > { %v1101_v13 = vor.u32 %v1100_v51, %v1099_v34  ;;  %9290 = vmatmul.mubr.msk.bf16.gmra.mrb[8].mxu1 %vm667_vm4, %v8065_v61  ;;  %9372 = vmatmul.mubr.msk.bf16.vlgmr.msra.gmra.mrb[0].mxu0 %vm667_vm4, %v8229_v49  ;;  %v1098_v52 = vrot.slane %v1097_v21, 4  ;;  %v2790_v45 = vrot.slane %v10924_v38, 6  ;;  %v1114_v30 = vshrl.u32 %v10215_v26, 16 }
  0xdc   : > { %9388 = vmatpush3.bf16.msra.mxu0 %v3234_v27  ;;  %v1110_v35 = vrot.slane %v1108_v46, 7  ;;  %v2788_v11 = vsel %vm10439_vm3, %v8222_v57, %v2787_v23  ;;  %v2789_v20 = vrot.slane %v2787_v23, 4  ;;  %v1117_v0 = vshll.u32 %v10215_v26, 16 }
  0xdd   : > { %v1103_v1 = vrot.slane %v1101_v13, 4  ;;  %v1102_v34 = vsel %vm10606_vm7, %v1098_v52, %v1101_v13  ;;  %v1116_v44 = vrot.slane %v1114_v30, 6  ;;  %v12769_v51 = vshrl.u32 %v10671_v54, 16  ;;  %v8076_v13 = vld [vmem:[%s10402_s5 + $0x30] sm:$0xe] }
  0xde   : > { %v12770_v41 = vshll.u32 %v10671_v54, 16  ;;  %v1111_v27 = vor.u32 %v1110_v35, %v1107_v48  ;;  %v2791_v8 = vsel %vm10439_vm3, %v2789_v20, %v2790_v45  ;;  %v1119_v5 = vrot.slane %v1117_v0, 7 }
  0xdf   : > { %v1122_v38 = vrot.slane %v12769_v51, 6  ;;  %v1128_v61 = vshrl.u32 %v8059_v15, 16  ;;  %v8230_v49 = vcombine.low %v2788_v11, %v2791_v8  ;;  %v1131_v46 = vshll.u32 %v8059_v15, 16  ;;  %v11190_v11 = vld [vmem:[%s10402_s5 + $0x6c] sm:$0xc] }
  0xe0   : > { %v1123_v12 = vrot.slane %v12770_v41, 7  ;;  %v8223_v57 = vrot.slane %v11172_v24, 10  ;;  %v1112_v23 = vsel %vm10606_vm7, %v1103_v1, %v1111_v27  ;;  %v1120_v52 = vor.u32 %v1119_v5, %v1116_v44 }
  0xe1   : > { %v1130_v26 = vrot.slane %v1128_v61, 6  ;;  %v2794_v54 = vrot.slane %v10958_v22, 6  ;;  %v8066_v48 = vcombine.low %v1102_v34, %v1112_v23  ;;  %9375 = vmatprep.mubr.msk.bf16.mxu0 %vm667_vm4, %v8230_v49  ;;  %v1133_v30 = vrot.slane %v1131_v46, 7 }
  0xe2   : > { %v1124_v21 = vor.u32 %v1123_v12, %v1122_v38  ;;  %v2797_v35 = vrot.slane %v10963_v58, 6  ;;  %v1121_v15 = vrot.slane %v1120_v52, 4  ;;  %v1327_v1 = vshrl.u32 %v8076_v13, 16  ;;  %v8079_v58 = vld [vmem:[%s10402_s5 + $0x3c] sm:$0xe] }
  0xe3   : > { %v2795_v20 = vsel %vm10439_vm3, %v8223_v57, %v2794_v54  ;;  %v2796_v0 = vrot.slane %v2794_v54, 4  ;;  %9293 = vmatprep.mubr.msk.bf16.mxu1 %vm667_vm4, %v8066_v48  ;;  %v1134_v44 = vor.u32 %v1133_v30, %v1130_v26  ;;  %v1330_v51 = vshll.u32 %v8076_v13, 16  ;;  %v8082_v26 = vld [vmem:[%s10402_s5 + $0x48] sm:$0xe] }
  0xe4   : > { %v1126_v45 = vrot.slane %v1124_v21, 4  ;;  %v1342_v34 = vor.u32 %v10467_v39, %v10463_v37  ;;  %v1352_v38 = vor.u32 %v10472_v43, %v10469_v40  ;;  %v1125_v41 = vsel %vm10606_vm7, %v1121_v15, %v1124_v21  ;;  %v11208_v39 = vld [vmem:[%s10402_s5 + $0x78] sm:$0xc] }
  0xe5   : > { %v2798_v12 = vsel %vm10439_vm3, %v2796_v0, %v2797_v35  ;;  %v1329_v27 = vrot.slane %v1327_v1, 5  ;;  %v8224_v8 = vrot.slane %v11190_v11, 10  ;;  %v1332_v49 = vrot.slane %v1330_v51, 6 }
  0xe6   : > { %v1135_v5 = vsel %vm10606_vm7, %v1126_v45, %v1134_v44  ;;  %v8231_v61 = vcombine.low %v2795_v20, %v2798_v12  ;;  %v1344_v37 = vrot.slane %v1342_v34, 4  ;;  %v2801_v43 = vrot.slane %v10985_v53, 6 }
  0xe7   : > { %v8067_v40 = vcombine.low %v1125_v41, %v1135_v5  ;;  %v2804_v21 = vrot.slane %v10988_v36, 6  ;;  %v1355_v46 = vshrl.u32 %v8079_v58, 16  ;;  %v1333_v57 = vor.u32 %v1332_v49, %v1329_v27 }
  0xe8   : > { %9376 = vmatmul.mubr.msk.bf16.gmra.mrb[4].mxu0 %vm667_vm4, %v8231_v61  ;;  %v1353_v13 = vsel %vm10715_vm10, %v1344_v37, %v1352_v38  ;;  %v1358_v23 = vshll.u32 %v8079_v58, 16  ;;  %v1372_v52 = vrot.slane %v10526_v60, 4  ;;  %v2802_v54 = vsel %vm10439_vm3, %v8224_v8, %v2801_v43 }
  0xe9   : > { %9294 = vmatmul.mubr.msk.bf16.gmra.mrb[12].mxu1 %vm667_vm4, %v8067_v40  ;;  %v2803_v48 = vrot.slane %v2801_v43, 4  ;;  %v1357_v45 = vrot.slane %v1355_v46, 5  ;;  %v8225_v36 = vrot.slane %v11208_v39, 10  ;;  %v1334_v30 = vrot.slane %v1333_v57, 4  ;;  %v10216_v43 = vld [vmem:[%s10402_s5 + $0x50] sm:$0x3] }
  0xea   : > { %v1360_v35 = vrot.slane %v1358_v23, 6  ;;  %v12771_v15 = vor.u32 %v10521_v56, %v10513_v14  ;;  %v2808_v0 = vrot.slane %v11016_v28, 6  ;;  %v2811_v44 = vrot.slane %v11021_v9, 6  ;;  %v11235_v56 = vld [vmem:[%s10402_s5 + $0x84] sm:$0xc] }
  0xeb   : > { %v2805_v1 = vsel %vm10439_vm3, %v2803_v48, %v2804_v21  ;;  %v1383_v51 = vshrl.u32 %v8082_v26, 16  ;;  %v1386_v38 = vshll.u32 %v8082_v26, 16  ;;  %v1343_v58 = vsel %vm10715_vm10, %v1334_v30, %v1342_v34 }
  0xec   : > { %v1381_v20 = vsel %vm10715_vm10, %v1372_v52, %v12771_v15  ;;  %v8232_v41 = vcombine.low %v2802_v54, %v2805_v1  ;;  %v1361_v12 = vor.u32 %v1360_v35, %v1357_v45  ;;  %v2809_v14 = vsel %vm10439_vm3, %v8225_v36, %v2808_v0  ;;  %v8085_v52 = vld [vmem:[%s10402_s5 + $0x54] sm:$0xe] }
  0xed   : > { %v8100_v27 = vcombine.low %v1343_v58, %v1353_v13  ;;  %v2810_v8 = vrot.slane %v2808_v0, 4  ;;  %v1385_v5 = vrot.slane %v1383_v51, 5  ;;  %v1388_v61 = vrot.slane %v1386_v38, 6 }
  0xee   : > { %9379 = vmatprep.mubr.msk.bf16.mxu0 %vm667_vm4, %v8232_v41  ;;  %v1362_v9 = vrot.slane %v1361_v12, 4  ;;  %v12772_v49 = vshrl.u32 %v10524_v59, 16  ;;  %v12773_v34 = vshll.u32 %v10524_v59, 16  ;;  %v1402_v21 = vshrl.u32 %v10216_v43, 16  ;;  %v12774_v12 = vld [vmem:[#allocation3_spill] sm:$0xff] }
  0xef   : > { %9299 = vmatprep.mubr.msk.bf16.mxu1 %vm667_vm4, %v8100_v27  ;;  %v2812_v46 = vsel %vm10439_vm3, %v2810_v8, %v2811_v44  ;;  %v1389_v57 = vor.u32 %v1388_v61, %v1385_v5  ;;  %v1405_v13 = vshll.u32 %v10216_v43, 16  ;;  %v8226_v23 = vrot.slane %v11235_v56, 10  ;;  %v11265_v5 = vld [vmem:[%s10402_s5 + $0x90] sm:$0xc] }
  0xf0   : > { %v1394_v37 = vrot.slane %v12772_v49, 5  ;;  %v1397_v40 = vrot.slane %v12773_v34, 6  ;;  %v1371_v26 = vsel %vm10715_vm10, %v1362_v9, %v10526_v60  ;;  %v8233_v54 = vcombine.low %v2809_v14, %v2812_v46  ;;  %v10217_v49 = vld [vmem:[%s10402_s5 + $0x5c] sm:$0x3]  ;;  %v8088_v34 = vld [vmem:[%s10402_s5 + $0x60] sm:$0xe] }
  0xf1   : > { %v1404_v59 = vrot.slane %v1402_v21, 5  ;;  %v8101_v45 = vcombine.low %v1371_v26, %v1381_v20  ;;  %v1390_v36 = vrot.slane %v1389_v57, 4  ;;  %v1407_v30 = vrot.slane %v1405_v13, 6 }
  0xf2   : > { %v1398_v48 = vor.u32 %v1397_v40, %v1394_v37  ;;  %v2815_v35 = vrot.slane %v11050_v31, 6  ;;  %9380 = vmatmul.mubr.msk.bf16.gmra.mrb[8].mxu0 %vm667_vm4, %v8233_v54  ;;  %v2818_v0 = vrot.slane %v11055_v7, 6  ;;  %v1411_v1 = vshrl.u32 %v8085_v52, 16 }
  0xf3   : > { %v1414_v44 = vshll.u32 %v8085_v52, 16  ;;  %9300 = vmatmul.mubr.msk.bf16.vlgmr.msra.gmra.mrb[0].mxu1 %vm667_vm4, %v8101_v45  ;;  %v1408_v20 = vor.u32 %v1407_v30, %v1404_v59  ;;  %v12775_v7 = vshrl.u32 %v12774_v12, 16  ;;  %v12776_v27 = vshll.u32 %v12774_v12, 16  ;;  %v11279_v59 = vld [vmem:[%s10402_s5 + $0x68] sm:$0x3] }
  0xf4   : > { %v1400_v15 = vrot.slane %v1398_v48, 4  ;;  %v1399_v60 = vsel %vm10715_vm10, %v1390_v36, %v1398_v48  ;;  %v2816_v51 = vsel %vm10439_vm3, %v8226_v23, %v2815_v35  ;;  %v2817_v38 = vrot.slane %v2815_v35, 4  ;;  %9730 = vmatpush3.bf16.msra.mxu1 %v10421_v3 }
  0xf5   : > { %v1413_v58 = vrot.slane %v1411_v1, 5  ;;  %v1416_v41 = vrot.slane %v1414_v44, 6  ;;  %v1422_v14 = vrot.slane %v12775_v7, 5  ;;  %v1425_v8 = vrot.slane %v12776_v27, 6 }
  0xf6   : > { %v1409_v61 = vsel %vm10715_vm10, %v1400_v15, %v1408_v20  ;;  %v2819_v9 = vsel %vm10439_vm3, %v2817_v38, %v2818_v0  ;;  %v1430_v37 = vshrl.u32 %v10217_v49, 16  ;;  %v1433_v3 = vshll.u32 %v10217_v49, 16 }
  0xf7   : > { %v8102_v40 = vcombine.low %v1399_v60, %v1409_v61  ;;  %v8234_v43 = vcombine.low %v2816_v51, %v2819_v9  ;;  %v1417_v21 = vor.u32 %v1416_v41, %v1413_v58  ;;  %v1426_v46 = vor.u32 %v1425_v8, %v1422_v14  ;;  %v8244_v8 = vld [vmem:[%s10402_s5 + $0x44] sm:$0x7] }
  0xf8   : > { %v1432_v57 = vrot.slane %v1430_v37, 5  ;;  %v1435_v13 = vrot.slane %v1433_v3, 6  ;;  %v8227_v23 = vrot.slane %v11265_v5, 10  ;;  %v2822_v52 = vrot.slane %v11080_v50, 6  ;;  %v8091_v37 = vld [vmem:[%s10402_s5 + $0x6c] sm:$0xe] }
  0xf9   : > { %9303 = vmatprep.mubr.msk.bf16.mxu1 %vm667_vm4, %v8102_v40  ;;  %9383 = vmatprep.mubr.msk.bf16.mxu0 %vm667_vm4, %v8234_v43  ;;  %v1418_v26 = vrot.slane %v1417_v21, 4  ;;  %v1428_v54 = vrot.slane %v1426_v46, 4  ;;  %v2825_v48 = vrot.slane %v11088_v63, 6  ;;  %v1439_v45 = vshrl.u32 %v8088_v34, 16 }
  0xfa   : > { %v1436_v36 = vor.u32 %v1435_v13, %v1432_v57  ;;  %v2823_v30 = vsel %vm10439_vm3, %v8227_v23, %v2822_v52  ;;  %v2824_v35 = vrot.slane %v2822_v52, 4  ;;  %v1442_v15 = vshll.u32 %v8088_v34, 16 }
  0xfb   : > { %v1427_v0 = vsel %vm10715_vm10, %v1418_v26, %v1426_v46  ;;  %v1441_v1 = vrot.slane %v1439_v45, 5  ;;  %v12777_v44 = vshrl.u32 %v10706_v29, 16  ;;  %v12778_v63 = vshll.u32 %v10706_v29, 16 }
  0xfc   : > { %v1437_v51 = vsel %vm10715_vm10, %v1428_v54, %v1436_v36  ;;  %v2826_v38 = vsel %vm10439_vm3, %v2824_v35, %v2825_v48  ;;  %v1444_v58 = vrot.slane %v1442_v15, 6  ;;  %v1458_v41 = vshrl.u32 %v11279_v59, 16  ;;  %v11308_v35 = vld [vmem:[%s10402_s5 + $0x74] sm:$0x3] }
  0xfd   : > { %v1450_v60 = vrot.slane %v12777_v44, 5  ;;  %v1453_v20 = vrot.slane %v12778_v63, 6  ;;  %v8103_v12 = vcombine.low %v1427_v0, %v1437_v51  ;;  %v8235_v7 = vcombine.low %v2823_v30, %v2826_v38 }
  0xfe   : > { %v1461_v27 = vshll.u32 %v11279_v59, 16  ;;  %v1445_v61 = vor.u32 %v1444_v58, %v1441_v1  ;;  %v1460_v9 = vrot.slane %v1458_v41, 5  ;;  %v3001_v29 = vshrl.u32 %v11106_v6, 16 }
  0xff   : > { %v1454_v14 = vor.u32 %v1453_v20, %v1450_v60  ;;  %v3004_v49 = vshll.u32 %v11106_v6, 16  ;;  %9304 = vmatmul.mubr.msk.bf16.gmra.mrb[4].mxu1 %vm667_vm4, %v8103_v12  ;;  %9384 = vmatmul.mubr.msk.bf16.gmra.mrb[12].mxu0 %vm667_vm4, %v8235_v7  ;;  %v12779_v40 = vshrl.u32 %v10849_v33, 16  ;;  %v12780_v21 = vshll.u32 %v10849_v33, 16 }
 0x100   : > { %v1463_v34 = vrot.slane %v1461_v27, 6  ;;  %v1446_v57 = vrot.slane %v1445_v61, 4  ;;  %v3003_v13 = vrot.slane %v3001_v29, 6  ;;  %v3015_v52 = vshrl.u32 %v8244_v8, 16 }
 0x101   : > { %v1456_v3 = vrot.slane %v1454_v14, 4  ;;  %v3009_v43 = vrot.slane %v12779_v40, 6  ;;  %v3010_v46 = vrot.slane %v12780_v21, 7  ;;  %v3006_v23 = vrot.slane %v3004_v49, 7 }
 0x102   : > { %v1464_v26 = vor.u32 %v1463_v34, %v1460_v9  ;;  %v3018_v54 = vshll.u32 %v8244_v8, 16  ;;  %v1467_v48 = vshrl.u32 %v8091_v37, 16  ;;  %v1455_v45 = vsel %vm10715_vm10, %v1446_v57, %v1454_v14  ;;  %v8245_v34 = vld [vmem:[%s10402_s5 + $0x50] sm:$0x7]  ;;  %v8094_v57 = vld [vmem:[%s10402_s5 + $0x78] sm:$0xe] }
 0x103   : > { %v3011_v6 = vor.u32 %v3010_v46, %v3009_v43  ;;  %v3007_v36 = vor.u32 %v3006_v23, %v3003_v13  ;;  %v3017_v30 = vrot.slane %v3015_v52, 6  ;;  %v1470_v15 = vshll.u32 %v8091_v37, 16 }
 0x104   : > { %v1465_v33 = vsel %vm10715_vm10, %v1456_v3, %v1464_v26  ;;  %v3020_v1 = vrot.slane %v3018_v54, 7  ;;  %v1469_v44 = vrot.slane %v1467_v48, 5  ;;  %v12781_v51 = vshrl.u32 %v10736_v17, 16 }
 0x105   : > { %v3013_v0 = vrot.slane %v3011_v6, 4  ;;  %v8104_v60 = vcombine.low %v1455_v45, %v1465_v33  ;;  %v3008_v63 = vrot.slane %v3007_v36, 4  ;;  %v1472_v20 = vrot.slane %v1470_v15, 6  ;;  %v11338_v33 = vld [vmem:[%s10402_s5 + $0x80] sm:$0x3] }
 0x106   : > { %v1478_v38 = vrot.slane %v12781_v51, 5  ;;  %v3021_v58 = vor.u32 %v3020_v1, %v3017_v30  ;;  %v12782_v41 = vshll.u32 %v10736_v17, 16  ;;  %v1486_v7 = vshrl.u32 %v11308_v35, 16 }
 0x107   : > { %v1489_v14 = vshll.u32 %v11308_v35, 16  ;;  %9307 = vmatprep.mubr.msk.bf16.mxu1 %vm667_vm4, %v8104_v60  ;;  %v3012_v27 = vsel %vm10606_vm7, %v3008_v63, %v3011_v6  ;;  %v1473_v8 = vor.u32 %v1472_v20, %v1469_v44  ;;  %v1787_v61 = vrot.slane %v11308_v35, 6 }
 0x108   : > { %v1481_v12 = vrot.slane %v12782_v41, 6  ;;  %v3024_v9 = vshrl.u32 %v11127_v18, 16  ;;  %v3022_v29 = vsel %vm10606_vm7, %v3013_v0, %v3021_v58  ;;  %v1488_v37 = vrot.slane %v1486_v7, 5 }
 0x109   : > { %v1491_v3 = vrot.slane %v1489_v14, 6  ;;  %v8252_v40 = vcombine.low %v3012_v27, %v3022_v29  ;;  %v1474_v43 = vrot.slane %v1473_v8, 4  ;;  %v3027_v46 = vshll.u32 %v11127_v18, 16 }
 0x10a   : > { %v1482_v49 = vor.u32 %v1481_v12, %v1478_v38  ;;  %v3026_v21 = vrot.slane %v3024_v9, 6  ;;  %v12783_v52 = vshrl.u32 %v10875_v47, 16  ;;  %v12784_v6 = vshll.u32 %v10875_v47, 16 }
 0x10b   : > { %v1492_v23 = vor.u32 %v1491_v3, %v1488_v37  ;;  %9389 = vmatprep.mubr.msk.bf16.mxu0 %vm667_vm4, %v8252_v40  ;;  %v3029_v45 = vrot.slane %v3027_v46, 7  ;;  %v3038_v36 = vshrl.u32 %v8245_v34, 16  ;;  %v3041_v30 = vshll.u32 %v8245_v34, 16 }
 0x10c   : > { %v1484_v13 = vrot.slane %v1482_v49, 4  ;;  %v3032_v26 = vrot.slane %v12783_v52, 6  ;;  %v3033_v54 = vrot.slane %v12784_v6, 7  ;;  %v1483_v48 = vsel %vm10715_vm10, %v1474_v43, %v1482_v49 }
 0x10d   : > { %v1495_v0 = vshrl.u32 %v8094_v57, 16  ;;  %v1498_v1 = vshll.u32 %v8094_v57, 16  ;;  %v3030_v60 = vor.u32 %v3029_v45, %v3026_v21  ;;  %v3040_v47 = vrot.slane %v3038_v36, 6 }
 0x10e   : > { %v1493_v18 = vsel %vm10715_vm10, %v1484_v13, %v1492_v23  ;;  %v3034_v15 = vor.u32 %v3033_v54, %v3032_v26  ;;  %v3043_v63 = vrot.slane %v3041_v30, 7  ;;  %v12785_v58 = vshrl.u32 %v10772_v4, 16  ;;  %v8097_v23 = vld [vmem:[%s10402_s5 + $0x84] sm:$0xe] }
 0x10f   : > { %v8105_v44 = vcombine.low %v1483_v48, %v1493_v18  ;;  %v1497_v51 = vrot.slane %v1495_v0, 5  ;;  %v1500_v38 = vrot.slane %v1498_v1, 6  ;;  %v3031_v12 = vrot.slane %v3030_v60, 4  ;;  %v11363_v1 = vld [vmem:[%s10402_s5 + $0x8c] sm:$0x3] }
 0x110   : > { %v3036_v20 = vrot.slane %v3034_v15, 4  ;;  %v1506_v41 = vrot.slane %v12785_v58, 5  ;;  %v3044_v7 = vor.u32 %v3043_v63, %v3040_v47  ;;  %v12786_v14 = vshll.u32 %v10772_v4, 16  ;;  %v8246_v4 = vld [vmem:[%s10402_s5 + $0x5c] sm:$0x7] }
 0x111   : > { %9308 = vmatmul.mubr.msk.bf16.gmra.mrb[8].mxu1 %vm667_vm4, %v8105_v44  ;;  %v1514_v8 = vshrl.u32 %v11338_v33, 16  ;;  %v1501_v9 = vor.u32 %v1500_v38, %v1497_v51  ;;  %v1517_v29 = vshll.u32 %v11338_v33, 16  ;;  %v3047_v49 = vshrl.u32 %v11154_v32, 16 }
 0x112   : > { %v1509_v27 = vrot.slane %v12786_v14, 6  ;;  %v3050_v37 = vshll.u32 %v11154_v32, 16  ;;  %v3035_v3 = vsel %vm10606_vm7, %v3031_v12, %v3034_v15  ;;  %v3045_v34 = vsel %vm10606_vm7, %v3036_v20, %v3044_v7 }
 0x113   : > { %v1516_v43 = vrot.slane %v1514_v8, 5  ;;  %v8253_v21 = vcombine.low %v3035_v3, %v3045_v34  ;;  %v1502_v46 = vrot.slane %v1501_v9, 4  ;;  %v1519_v57 = vrot.slane %v1517_v29, 6 }
 0x114   : > { %v1510_v40 = vor.u32 %v1509_v27, %v1506_v41  ;;  %v3049_v13 = vrot.slane %v3047_v49, 6  ;;  %v3052_v26 = vrot.slane %v3050_v37, 7  ;;  %v12787_v6 = vshrl.u32 %v10919_v25, 16 }
 0x115   : > { %v12788_v54 = vshll.u32 %v10919_v25, 16  ;;  %9390 = vmatmul.mubr.msk.bf16.vlgmr.msra.gmra.mrb[0].mxu0 %vm667_vm4, %v8253_v21  ;;  %v1520_v36 = vor.u32 %v1519_v57, %v1516_v43  ;;  %v3061_v30 = vshrl.u32 %v8246_v4, 16  ;;  %v3064_v18 = vshll.u32 %v8246_v4, 16  ;;  %v8247_v4 = vld [vmem:[%s10402_s5 + $0x68] sm:$0x7] }
 0x116   : > { %v1512_v52 = vrot.slane %v1510_v40, 4  ;;  %v3055_v32 = vrot.slane %v12787_v6, 6  ;;  %v1511_v45 = vsel %vm10715_vm10, %v1502_v46, %v1510_v40  ;;  %v3053_v15 = vor.u32 %v3052_v26, %v3049_v13 }
 0x117   : > { %v3056_v48 = vrot.slane %v12788_v54, 7  ;;  %v1523_v44 = vshrl.u32 %v8097_v23, 16  ;;  %v1526_v60 = vshll.u32 %v8097_v23, 16  ;;  %v3063_v63 = vrot.slane %v3061_v30, 6 }
 0x118   : > { %v1521_v47 = vsel %vm10715_vm10, %v1512_v52, %v1520_v36  ;;  %v3066_v25 = vrot.slane %v3064_v18, 7  ;;  %v12789_v20 = vshrl.u32 %v10808_v16, 16  ;;  %v3054_v58 = vrot.slane %v3053_v15, 4  ;;  %v10218_v15 = vld [vmem:[%s10402_s5 + $0x60] sm:$0xc] }
 0x119   : > { %v3057_v0 = vor.u32 %v3056_v48, %v3055_v32  ;;  %v8106_v38 = vcombine.low %v1511_v45, %v1521_v47  ;;  %v1525_v12 = vrot.slane %v1523_v44, 5  ;;  %v1528_v14 = vrot.slane %v1526_v60, 6  ;;  %v10219_v44 = vld [vmem:[%s10402_s5 + $0x64] sm:$0xf] }
 0x11a   : > { %v1534_v51 = vrot.slane %v12789_v20, 5  ;;  %v3067_v7 = vor.u32 %v3066_v25, %v3063_v63  ;;  %v12790_v27 = vshll.u32 %v10808_v16, 16  ;;  %v1542_v9 = vshrl.u32 %v11363_v1, 16  ;;  %v8248_v20 = vld [vmem:[%s10402_s5 + $0x74] sm:$0x7] }
 0x11b   : > { %v3059_v41 = vrot.slane %v3057_v0, 4  ;;  %9311 = vmatprep.mubr.msk.bf16.mxu1 %vm667_vm4, %v8106_v38  ;;  %v3058_v29 = vsel %vm10606_vm7, %v3054_v58, %v3057_v0  ;;  %v1545_v49 = vshll.u32 %v11363_v1, 16  ;;  %v3070_v37 = vshrl.u32 %v11172_v24, 16 }
 0x11c   : > { %v1537_v8 = vrot.slane %v12790_v27, 6  ;;  %v3073_v3 = vshll.u32 %v11172_v24, 16  ;;  %v1529_v40 = vor.u32 %v1528_v14, %v1525_v12  ;;  %v1544_v16 = vrot.slane %v1542_v9, 5 }
 0x11d   : > { %v3068_v34 = vsel %vm10606_vm7, %v3059_v41, %v3067_v7  ;;  %v1547_v46 = vrot.slane %v1545_v49, 6  ;;  %v3072_v57 = vrot.slane %v3070_v37, 6  ;;  %v12791_v26 = vshrl.u32 %v10958_v22, 16 }
 0x11e   : > { %v1538_v43 = vor.u32 %v1537_v8, %v1534_v51  ;;  %v8254_v21 = vcombine.low %v3058_v29, %v3068_v34  ;;  %v3075_v13 = vrot.slane %v3073_v3, 7  ;;  %v1530_v23 = vrot.slane %v1529_v40, 4 }
 0x11f   : > { %v3078_v6 = vrot.slane %v12791_v26, 6  ;;  %v12792_v24 = vshll.u32 %v10958_v22, 16  ;;  %v1548_v54 = vor.u32 %v1547_v46, %v1544_v16  ;;  %v3084_v45 = vshrl.u32 %v8247_v4, 16 }
 0x120   : > { %v1540_v52 = vrot.slane %v1538_v43, 4  ;;  %9393 = vmatprep.mubr.msk.bf16.mxu0 %vm667_vm4, %v8254_v21  ;;  %v3076_v48 = vor.u32 %v3075_v13, %v3072_v57  ;;  %v3087_v36 = vshll.u32 %v8247_v4, 16  ;;  %v1539_v30 = vsel %vm10715_vm10, %v1530_v23, %v1538_v43 }
 0x121   : > { %v3079_v32 = vrot.slane %v12792_v24, 7  ;;  %v8128_v0 = vrot.slane %v10218_v15, 10  ;;  %v1777_v60 = vrot.slane %v10219_v44, 6  ;;  %v3086_v63 = vrot.slane %v3084_v45, 6  ;;  %v8249_v24 = vld [vmem:[%s10402_s5 + $0x80] sm:$0x7] }
 0x122   : > { %v1549_v47 = vsel %vm10715_vm10, %v1540_v52, %v1548_v54  ;;  %v3077_v22 = vrot.slane %v3076_v48, 4  ;;  %v3089_v25 = vrot.slane %v3087_v36, 7  ;;  %v1780_v14 = vrot.slane %v11279_v59, 6 }
 0x123   : > { %v3080_v18 = vor.u32 %v3079_v32, %v3078_v6  ;;  %v8107_v51 = vcombine.low %v1539_v30, %v1549_v47  ;;  %v1778_v58 = vsel %vm10439_vm3, %v8128_v0, %v1777_v60  ;;  %v1779_v41 = vrot.slane %v1777_v60, 4 }
 0x124   : > { %v3090_v7 = vor.u32 %v3089_v25, %v3086_v63  ;;  %v3093_v27 = vshrl.u32 %v11190_v11, 16  ;;  %v3096_v10 = vshll.u32 %v11190_v11, 16  ;;  %v12793_v8 = vshrl.u32 %v10985_v53, 16  ;;  %v10220_v63 = vld [vmem:[%s10402_s5 + $0x78] sm:$0xc] }
 0x125   : > { %v3082_v38 = vrot.slane %v3080_v18, 4  ;;  %v3081_v12 = vsel %vm10606_vm7, %v3077_v22, %v3080_v18  ;;  %9312 = vmatmul.mubr.msk.bf16.gmra.mrb[12].mxu1 %vm667_vm4, %v8107_v51  ;;  %v12794_v29 = vshll.u32 %v10985_v53, 16  ;;  %v3107_v37 = vshrl.u32 %v8248_v20, 16  ;;  %v10221_v25 = vld [vmem:[%s10402_s5 + $0x7c] sm:$0xf] }
 0x126   : > { %v3101_v9 = vrot.slane %v12793_v8, 6  ;;  %v1781_v59 = vsel %vm10439_vm3, %v1779_v41, %v1780_v14  ;;  %v3095_v34 = vrot.slane %v3093_v27, 6  ;;  %v3110_v40 = vshll.u32 %v8248_v20, 16 }
 0x127   : > { %v3102_v49 = vrot.slane %v12794_v29, 7  ;;  %v3091_v3 = vsel %vm10606_vm7, %v3082_v38, %v3090_v7  ;;  %v8136_v16 = vcombine.low %v1778_v58, %v1781_v59  ;;  %v3098_v4 = vrot.slane %v3096_v10, 7 }
 0x128   : > { %v8255_v43 = vcombine.low %v3081_v12, %v3091_v3  ;;  %v3109_v21 = vrot.slane %v3107_v37, 6  ;;  %v3112_v46 = vrot.slane %v3110_v40, 7  ;;  %v12795_v57 = vrot.slane %v10736_v17, 6  ;;  %v8250_v12 = vld [vmem:[%s10402_s5 + $0x8c] sm:$0x7] }
 0x129   : > { %v3103_v11 = vor.u32 %v3102_v49, %v3101_v9  ;;  %v12796_v53 = vrot.slane %v10746_v42, 10  ;;  %9325 = vmatprep.mubr.msk.bf16.mxu1 %vm667_vm4, %v8136_v16  ;;  %v3099_v26 = vor.u32 %v3098_v4, %v3095_v34  ;;  %v3116_v32 = vshrl.u32 %v11208_v39, 16 }
 0x12a   : > { %v12797_v23 = vmov %v12795_v57  ;;  %9394 = vmatmul.mubr.msk.bf16.gmra.mrb[4].mxu0 %vm667_vm4, %v8255_v43  ;;  %v3119_v54 = vshll.u32 %v11208_v39, 16  ;;  %v3113_v48 = vor.u32 %v3112_v46, %v3109_v21  ;;  %v12798_v17 = vshrl.u32 %v11016_v28, 16 }
 0x12b   : > { %v1785_v13 = vsel %vm10439_vm3, %v12796_v53, %v12795_v57  ;;  %v1786_v52 = vrot.slane %v12797_v23, 4  ;;  %v3105_v6 = vrot.slane %v3103_v11, 4  ;;  %v12799_v36 = vshll.u32 %v11016_v28, 16 }
 0x12c   : > { %v3124_v45 = vrot.slane %v12798_v17, 6  ;;  %v3100_v18 = vrot.slane %v3099_v26, 4  ;;  %v3118_v0 = vrot.slane %v3116_v32, 6  ;;  %v3121_v44 = vrot.slane %v3119_v54, 7  ;;  %v8251_v32 = vld [vmem:[%s10402_s5 + $0x98] sm:$0x7] }
 0x12d   : > { %v1788_v42 = vsel %vm10439_vm3, %v1786_v52, %v1787_v61  ;;  %v3125_v30 = vrot.slane %v12799_v36, 7  ;;  %v3114_v39 = vsel %vm10606_vm7, %v3105_v6, %v3113_v48  ;;  %v3130_v35 = vshrl.u32 %v8249_v24, 16  ;;  %v10223_v52 = vld [vmem:[%s10402_s5 + $0x88] sm:$0xf] }
 0x12e   : > { %v8137_v15 = vcombine.low %v1785_v13, %v1788_v42  ;;  %v3133_v47 = vshll.u32 %v8249_v24, 16  ;;  %v3104_v61 = vsel %vm10606_vm7, %v3100_v18, %v3103_v11  ;;  %v3122_v22 = vor.u32 %v3121_v44, %v3118_v0  ;;  %v10222_v13 = vld [vmem:[%s10402_s5 + $0x84] sm:$0xc] }
 0x12f   : > { %v3126_v60 = vor.u32 %v3125_v30, %v3124_v45  ;;  %v8130_v28 = vrot.slane %v10220_v63, 10  ;;  %v1791_v20 = vrot.slane %v10221_v25, 6  ;;  %v8256_v51 = vcombine.low %v3104_v61, %v3114_v39 }
 0x130   : > { %9326 = vmatmul.mubr.msk.bf16.vlgmr.msra.gmra.mrb[8].mxu1 %vm667_vm4, %v8137_v15  ;;  %v3132_v58 = vrot.slane %v3130_v35, 6  ;;  %v3135_v41 = vrot.slane %v3133_v47, 7  ;;  %v3123_v7 = vrot.slane %v3122_v22, 4  ;;  %v1794_v10 = vrot.slane %v11338_v33, 6 }
 0x131   : > { %v3128_v38 = vrot.slane %v3126_v60, 4  ;;  %v1792_v14 = vsel %vm10439_vm3, %v8130_v28, %v1791_v20  ;;  %v1793_v27 = vrot.slane %v1791_v20, 4  ;;  %9397 = vmatprep.mubr.msk.bf16.mxu0 %vm667_vm4, %v8256_v51  ;;  %v3139_v9 = vshrl.u32 %v11235_v56, 16 }
 0x132   : > { %v3136_v8 = vor.u32 %v3135_v41, %v3132_v58  ;;  %v3142_v29 = vshll.u32 %v11235_v56, 16  ;;  %v12800_v49 = vshrl.u32 %v11050_v31, 16  ;;  %v3127_v3 = vsel %vm10606_vm7, %v3123_v7, %v3126_v60 }
 0x133   : > { %v1795_v59 = vsel %vm10439_vm3, %v1793_v27, %v1794_v10  ;;  %v12801_v33 = vshll.u32 %v11050_v31, 16  ;;  %v3153_v40 = vshrl.u32 %v8250_v12, 16  ;;  %v3141_v56 = vrot.slane %v3139_v9, 6 }
 0x134   : > { %v3147_v37 = vrot.slane %v12800_v49, 6  ;;  %v3137_v43 = vsel %vm10606_vm7, %v3128_v38, %v3136_v8  ;;  %v8138_v16 = vcombine.low %v1792_v14, %v1795_v59  ;;  %v3144_v4 = vrot.slane %v3142_v29, 7 }
 0x135   : > { %v3148_v34 = vrot.slane %v12801_v33, 7  ;;  %v8257_v11 = vcombine.low %v3127_v3, %v3137_v43  ;;  %v3155_v46 = vrot.slane %v3153_v40, 6  ;;  %v3156_v57 = vshll.u32 %v8250_v12, 16 }
 0x136   : > { %9329 = vmatprep.mubr.msk.bf16.mxu1 %vm667_vm4, %v8138_v16  ;;  %v3145_v53 = vor.u32 %v3144_v4, %v3141_v56  ;;  %v8131_v23 = vrot.slane %v10222_v13, 10  ;;  %v1798_v31 = vrot.slane %v10223_v52, 6  ;;  %v1801_v26 = vrot.slane %v11363_v1, 6 }
 0x137   : > { %v3149_v21 = vor.u32 %v3148_v34, %v3147_v37  ;;  %9398 = vmatmul.mubr.msk.bf16.gmra.mrb[8].mxu0 %vm667_vm4, %v8257_v11  ;;  %v3158_v24 = vrot.slane %v3156_v57, 7  ;;  %v3162_v54 = vshrl.u32 %v11265_v5, 16  ;;  %v3165_v48 = vshll.u32 %v11265_v5, 16 }
 0x138   : > { %v3146_v42 = vrot.slane %v3145_v53, 4  ;;  %v1799_v17 = vsel %vm10439_vm3, %v8131_v23, %v1798_v31  ;;  %v1800_v45 = vrot.slane %v1798_v31, 4  ;;  %v3170_v36 = vrot.slane %v2556_v2, 6 }
 0x139   : > { %v3151_v6 = vrot.slane %v3149_v21, 4  ;;  %v3159_v30 = vor.u32 %v3158_v24, %v3155_v46  ;;  %v3164_v18 = vrot.slane %v3162_v54, 6  ;;  %v3167_v1 = vrot.slane %v3165_v48, 7 }
 0x13a   : > { %v3171_v15 = vrot.slane %v2559_v55, 7  ;;  %v3150_v0 = vsel %vm10606_vm7, %v3146_v42, %v3149_v21  ;;  %v1802_v5 = vsel %vm10439_vm3, %v1800_v45, %v1801_v26  ;;  %v3176_v44 = vshrl.u32 %v8251_v32, 16 }
 0x13b   : > { %v3179_v39 = vshll.u32 %v8251_v32, 16  ;;  %v3160_v60 = vsel %vm10606_vm7, %v3151_v6, %v3159_v30  ;;  %v8139_v35 = vcombine.low %v1799_v17, %v1802_v5  ;;  %v3168_v47 = vor.u32 %v3167_v1, %v3164_v18 }
 0x13c   : > { %v3172_v2 = vor.u32 %v3171_v15, %v3170_v36  ;;  %v8258_v61 = vcombine.low %v3150_v0, %v3160_v60  ;;  %v3178_v22 = vrot.slane %v3176_v44, 6 }
 0x13d   : > { %v3181_v63 = vrot.slane %v3179_v39, 7  ;;  %9330 = vmatmul.mubr.msk.bf16.gmra.mrb[12].mxu1 %vm667_vm4, %v8139_v35  ;;  %v3169_v50 = vrot.slane %v3168_v47, 4 }
 0x13e   : > { %v3174_v55 = vrot.slane %v3172_v2, 4  ;;  %9401 = vmatprep.mubr.msk.bf16.mxu0 %vm667_vm4, %v8258_v61 }
 0x13f   : > { %v3182_v28 = vor.u32 %v3181_v63, %v3178_v22  ;;  %v3173_v19 = vsel %vm10606_vm7, %v3169_v50, %v3172_v2 }
 0x141   : > { %v3183_v25 = vsel %vm10606_vm7, %v3174_v55, %v3182_v28 }
 0x142   : > { %v8259_v20 = vcombine.low %v3173_v19, %v3183_v25 }
 0x144   : > { %9402 = vmatmul.mubr.msk.bf16.gmra.mrb[12].mxu0 %vm667_vm4, %v8259_v20 }
 0x1c6   : > { %v9301_v51 = vpop.f32.mrb[0].mxu1 }
 0x1c7   : > { %v1636_v38 = vpop.f32.mrb[1].mxu1 }
 0x1c8   : > { %v9302_v58 = vpop.f32.mrb[2].mxu1 }
 0x1c9   : > { %v1639_v41 = vpop.f32.mrb[3].mxu1 }
 0x1d2   : > { %v9305_v12 = vpop.f32.mrb[4].mxu1 }
 0x1d3   : > { %v1652_v7 = vpop.f32.mrb[5].mxu1 }
 0x1d4   : > { %v9306_v14 = vpop.f32.mrb[6].mxu1 }
 0x1d5   : > { %v1655_v27 = vpop.f32.mrb[7].mxu1 }
 0x1e8   : > { %v9391_v10 = vpop.f32.mrb[0].mxu0 }
 0x1e9   : > { %v9731_v8 = vadd.f32 %v9391_v10, %v9301_v51  ;;  %v3270_v9 = vpop.f32.mrb[1].mxu0 }
 0x1ea   : > { %v9732_v29 = vadd.f32 %v3270_v9, %v1636_v38  ;;  %v9392_v49 = vpop.f32.mrb[2].mxu0 }
 0x1eb   : > { %v9733_v37 = vadd.f32 %v9392_v49, %v9302_v58  ;;  %v3273_v3 = vpop.f32.mrb[3].mxu0  ;;  %3383 = vst [vmem:[#allocation2 + $0x10] sm:$0xff] %v9731_v8 }
 0x1ec   : > { %v9734_v62 = vadd.f32 %v3273_v3, %v1639_v41  ;;  %3381 = vst [vmem:[#allocation2] sm:$0xff] %v9732_v29 }
 0x1ed   : > { %3384 = vst [vmem:[#allocation2 + $0x18] sm:$0xff] %v9733_v37 }
 0x1ee   : > { %3382 = vst [vmem:[#allocation2 + $0x8] sm:$0xff] %v9734_v62 }
 0x1fd   : > { %v9395_v59 = vpop.f32.mrb[4].mxu0 }
 0x1fe   : > { %v9735_v33 = vadd.f32 %v9395_v59, %v9305_v12  ;;  %v3286_v34 = vpop.f32.mrb[5].mxu0 }
 0x1ff   : > { %v9736_v40 = vadd.f32 %v3286_v34, %v1652_v7  ;;  %v9396_v43 = vpop.f32.mrb[6].mxu0 }
 0x200   : > { %v9737_v16 = vadd.f32 %v9396_v43, %v9306_v14  ;;  %v3289_v56 = vpop.f32.mrb[7].mxu0  ;;  %3387 = vst [vmem:[#allocation2 + $0x30] sm:$0xff] %v9735_v33 }
 0x201   : > { %v9738_v4 = vadd.f32 %v3289_v56, %v1655_v27  ;;  %3385 = vst [vmem:[#allocation2 + $0x20] sm:$0xff] %v9736_v40 }
 0x202   : > { %3388 = vst [vmem:[#allocation2 + $0x38] sm:$0xff] %v9737_v16 }
 0x203   : > { %v9327_v11 = vpop.f32.mrb[8].mxu1  ;;  %3386 = vst [vmem:[#allocation2 + $0x28] sm:$0xff] %v9738_v4 }
 0x204   : > { %v1921_v21 = vpop.f32.mrb[9].mxu1 }
 0x205   : > { %v9328_v46 = vpop.f32.mrb[10].mxu1 }
 0x206   : > { %v1924_v57 = vpop.f32.mrb[11].mxu1 }
 0x20a   : > { %v9399_v53 = vpop.f32.mrb[8].mxu0 }
 0x20b   : > { %v9739_v13 = vadd.f32 %v9399_v53, %v9327_v11  ;;  %v3302_v23 = vpop.f32.mrb[9].mxu0 }
 0x20c   : > { %v9740_v52 = vadd.f32 %v3302_v23, %v1921_v21  ;;  %v9400_v31 = vpop.f32.mrb[10].mxu0 }
 0x20d   : > { %v9741_v26 = vadd.f32 %v9400_v31, %v9328_v46  ;;  %v3305_v6 = vpop.f32.mrb[11].mxu0  ;;  %3391 = vst [vmem:[#allocation2 + $0x50] sm:$0xff] %v9739_v13 }
 0x20e   : > { %v9742_v24 = vadd.f32 %v3305_v6, %v1924_v57  ;;  %3389 = vst [vmem:[#allocation2 + $0x40] sm:$0xff] %v9740_v52 }
 0x20f   : > { %3392 = vst [vmem:[#allocation2 + $0x58] sm:$0xff] %v9741_v26 }
 0x210   : > { %v9331_v32 = vpop.f32.mrb[12].mxu1  ;;  %3390 = vst [vmem:[#allocation2 + $0x48] sm:$0xff] %v9742_v24 }
 0x211   : > { %v1937_v54 = vpop.f32.mrb[13].mxu1 }
 0x212   : > { %v9332_v48 = vpop.f32.mrb[14].mxu1 }
 0x213   : > { %v1940_v42 = vpop.f32.mrb[15].mxu1 }
 0x217   : > { %v9403_v17 = vpop.f32.mrb[12].mxu0 }
 0x218   : > { %v9743_v45 = vadd.f32 %v9403_v17, %v9331_v32  ;;  %v3318_v36 = vpop.f32.mrb[13].mxu0 }
 0x219   : > { %v9744_v30 = vadd.f32 %v3318_v36, %v1937_v54  ;;  %v9404_v18 = vpop.f32.mrb[14].mxu0 }
 0x21a   : > { %v9745_v1 = vadd.f32 %v9404_v18, %v9332_v48  ;;  %v3321_v15 = vpop.f32.mrb[15].mxu0  ;;  %3395 = vst [vmem:[#allocation2 + $0x70] sm:$0xff] %v9743_v45 }
 0x21b   : > { %v9746_v0 = vadd.f32 %v3321_v15, %v1940_v42  ;;  %3393 = vst [vmem:[#allocation2 + $0x60] sm:$0xff] %v9744_v30 }
 0x21c   : > { %3396 = vst [vmem:[#allocation2 + $0x78] sm:$0xff] %v9745_v1 }
 0x21d   : > { %3394 = vst [vmem:[#allocation2 + $0x68] sm:$0xff] %v9746_v0 }
 0x21e PF: > { %p8268_p11 = scmp.ne.s32.totalorder %s10302_s12, 1 }
 0x21f   : > { %v3601_v5 = vld [vmem:[%s10407_s8 + $0x4] sm:$0xf] (!%p8268_p11)  ;;  %vm3651_vm11 = vcmask (!%p8268_p11), 1043456   ;;  %v11484_v44 = vld [vmem:[%s10407_s8 + $0x10] sm:$0xf] (!%p8268_p11)  ;;  %vm3542_vm12 = vcmask (!%p8268_p11), 1041408  }
 0x220   : > { %3400 = sbr.rel (%p8268_p11) target bundleno = 916 (0x394), region = 40  ;;  %10129 = vmatprep.subr.msk.bf16.mxu1 (!%p8268_p11), %vm3651_vm11, %v3601_v5  ;;  %10133 = vmatprep.subr.msk.bf16.mxu0 (!%p8268_p11), %vm3651_vm11, %v11484_v44  ;;  %v3653_v39 = vsel (!%p8268_p11), %vm3651_vm11, %v3601_v5, 0  ;;  %v11492_v60 = vsel (!%p8268_p11), %vm3651_vm11, %v11484_v44, 0  ;;  %v11495_v35 = vld [vmem:[%s10402_s5 + $0x1c] sm:$0xf] (!%p8268_p11)  ;;  %vm3543_vm13 = vcmask (!%p8268_p11), 1045508  }
 0x221   : > { %v8301_v47 = vld [vmem:[%s10402_s5 + $0x18] sm:$0xc] (!%p8268_p11)  ;;  %9406 = vmatpush3.bf16.msra.mxu1 (!%p8268_p11), %v3653_v39  ;;  %9478 = vmatpush3.bf16.msra.mxu0 (!%p8268_p11), %v11492_v60  ;;  %v8302_v2 = vld [vmem:[%s10402_s5 + $0x20] sm:$0x3] (!%p8268_p11)  ;;  %v3547_v22 = vrot.slane (!%p8268_p11), %v11495_v35, 6  ;;  %vm11501_vm14 = vmor (!%p8268_p11), %vm3542_vm12, %vm3543_vm13  ;;  %vm3626_vm15 = vcmask (!%p8268_p11), 64512  }
 0x222   : > { %v8317_v61 = vrot.slane (!%p8268_p11), %v8301_v47, 10  ;;  %v3550_v50 = vrot.slane (!%p8268_p11), %v8302_v2, 6  ;;  %v3509_v55 = vld [vmem:[%s10407_s8] sm:$0xf] (!%p8268_p11)  ;;  %v11510_v25 = vld [vmem:[%s10402_s5 + $0x34] sm:$0xf] (!%p8268_p11) }
 0x223   : > { %v3549_v19 = vrot.slane (!%p8268_p11), %v3547_v22, 4  ;;  %10130 = vmatprep.subr.msk.bf16.mxu1 (!%p8268_p11), %vm3651_vm11, %v3509_v55  ;;  %v8445_v20 = vld [vmem:[%s10402_s5 + $0x30] sm:$0xc] (!%p8268_p11)  ;;  %v8446_v51 = vld [vmem:[%s10402_s5 + $0x38] sm:$0x3] (!%p8268_p11)  ;;  %v4460_v58 = vrot.slane (!%p8268_p11), %v11510_v25, 6 }
 0x224   : > { %v3548_v28 = vsel (!%p8268_p11), %vm11501_vm14, %v8317_v61, %v3547_v22  ;;  %v8461_v38 = vrot.slane (!%p8268_p11), %v8445_v20, 10  ;;  %v4463_v12 = vrot.slane (!%p8268_p11), %v8446_v51, 6  ;;  %v4767_v7 = vld [vmem:[%s10407_s8 + $0x14] sm:$0xf] (!%p8268_p11)  ;;  %v11519_v14 = vld [vmem:[%s10402_s5 + $0x28] sm:$0xf] (!%p8268_p11) }
 0x225   : > { %v3551_v41 = vsel (!%p8268_p11), %vm11501_vm14, %v3549_v19, %v3550_v50  ;;  %v4462_v8 = vrot.slane (!%p8268_p11), %v4460_v58, 4  ;;  %10135 = vmatprep.subr.msk.bf16.mxu0 (!%p8268_p11), %vm3651_vm11, %v4767_v7  ;;  %v8303_v9 = vld [vmem:[%s10402_s5 + $0x24] sm:$0xc] (!%p8268_p11)  ;;  %v8304_v29 = vld [vmem:[%s10402_s5 + $0x2c] sm:$0x3] (!%p8268_p11)  ;;  %v3455_v49 = vrot.slane (!%p8268_p11), %v11495_v35, 5 }
 0x226   : > { %v8325_v27 = vcombine.low (!%p8268_p11), %v3548_v28, %v3551_v41  ;;  %v4461_v10 = vsel (!%p8268_p11), %vm11501_vm14, %v8461_v38, %v4460_v58  ;;  %v8318_v37 = vrot.slane (!%p8268_p11), %v8303_v9, 10  ;;  %v3554_v3 = vrot.slane (!%p8268_p11), %v11519_v14, 6  ;;  %v11529_v59 = vld [vmem:[%s10402_s5 + $0x40] sm:$0xf] (!%p8268_p11)  ;;  %v8447_v43 = vld [vmem:[%s10402_s5 + $0x3c] sm:$0xc] (!%p8268_p11) }
 0x227   : > { %v3557_v62 = vrot.slane %v8304_v29, 6  ;;  %v4464_v33 = vsel %vm11501_vm14, %v4462_v8, %v4463_v12  ;;  %v4713_v34 = vrot.slane %v11510_v25, 7  ;;  %v3801_v40 = vsel %vm3651_vm11, %v3509_v55, 0  ;;  %v8448_v16 = vld [vmem:[%s10402_s5 + $0x44] sm:$0x3] }
 0x228   : > { %9407 = vmatprep.mubr.msk.bf16.mxu1 %vm3626_vm15, %v8325_v27  ;;  %vm3932_vm0 = vcmask 1040384   ;;  %v8469_v56 = vcombine.low %v4461_v10, %v4464_v33  ;;  %v3555_v4 = vsel %vm11501_vm14, %v8318_v37, %v3554_v3  ;;  %v3556_v11 = vrot.slane %v3554_v3, 4  ;;  %v11541_v21 = vld [vmem:[%s10402_s5 + $0x34] sm:$0xf]  ;;  %v8305_v46 = vld [vmem:[%s10402_s5 + $0x30] sm:$0xc] }
 0x229   : > { %vm3933_vm1 = vcmask 1044484   ;;  %v3462_v57 = vrot.slane %v11519_v14, 5  ;;  %v8462_v53 = vrot.slane %v8447_v43, 10  ;;  %v4467_v13 = vrot.slane %v11529_v59, 6  ;;  %v8306_v52 = vld [vmem:[%s10402_s5 + $0x38] sm:$0x3] }
 0x22a   : > { %v4470_v23 = vrot.slane %v8448_v16, 6  ;;  %9479 = vmatprep.mubr.msk.bf16.mxu0 %vm3626_vm15, %v8469_v56  ;;  %v3558_v31 = vsel %vm11501_vm14, %v3556_v11, %v3557_v62  ;;  %v4720_v26 = vrot.slane %v11529_v59, 7  ;;  %v4817_v6 = vsel %vm3651_vm11, %v4767_v7, 0  ;;  %v11553_v32 = vld [vmem:[%s10402_s5 + $0x4c] sm:$0xf]  ;;  %vm11603_vm2 = vmor %vm3932_vm0, %vm3933_vm1 }
 0x22b   : > { %v8319_v24 = vrot.slane %v8305_v46, 10  ;;  %v8326_v54 = vcombine.low %v3555_v4, %v3558_v31  ;;  %v4468_v48 = vsel %vm11501_vm14, %v8462_v53, %v4467_v13  ;;  %v4469_v42 = vrot.slane %v4467_v13, 4  ;;  %v8449_v45 = vld [vmem:[%s10402_s5 + $0x48] sm:$0xc]  ;;  %v8450_v36 = vld [vmem:[%s10402_s5 + $0x50] sm:$0x3] }
 0x22c   : > { %v3561_v17 = vrot.slane %v11541_v21, 6  ;;  %v11562_v30 = vrot.slane %v4720_v26, 4  ;;  %v3564_v18 = vrot.slane %v8306_v52, 6  ;;  %v8463_v1 = vrot.slane %v8449_v45, 10  ;;  %v11566_v0 = vld [vmem:[%s10402_s5 + $0x40] sm:$0xf] }
 0x22d   : > { %v4474_v15 = vrot.slane %v11553_v32, 6  ;;  %9408 = vmatmul.mubr.msk.bf16.vlgmr.msra.gmra.mrb[0].mxu1 %vm3626_vm15, %v8326_v54  ;;  %v4471_v5 = vsel %vm11501_vm14, %v4469_v42, %v4470_v23  ;;  %v4477_v2 = vrot.slane %v8450_v36, 6  ;;  %v8307_v61 = vld [vmem:[%s10402_s5 + $0x3c] sm:$0xc]  ;;  %v8308_v22 = vld [vmem:[%s10402_s5 + $0x44] sm:$0x3] }
 0x22e   : > { %v3562_v39 = vsel %vm11501_vm14, %v8319_v24, %v3561_v17  ;;  %v3563_v47 = vrot.slane %v3561_v17, 4  ;;  %9424 = vmatpush3.bf16.msra.mxu1 %v3801_v40  ;;  %v8470_v50 = vcombine.low %v4468_v48, %v4471_v5  ;;  %v8320_v19 = vrot.slane %v8307_v61, 10  ;;  %v11578_v20 = vld [vmem:[%s10402_s5 + $0x58] sm:$0xf]  ;;  %v8451_v51 = vld [vmem:[%s10402_s5 + $0x54] sm:$0xc] }
 0x22f   : > { %v4475_v55 = vsel %vm11501_vm14, %v8463_v1, %v4474_v15  ;;  %v4476_v28 = vrot.slane %v4474_v15, 4  ;;  %v3568_v58 = vrot.slane %v11566_v0, 6  ;;  %v3571_v41 = vrot.slane %v8308_v22, 6  ;;  %v8452_v12 = vld [vmem:[%s10402_s5 + $0x5c] sm:$0x3]  ;;  %v5708_v53 = vld [vmem:[#allocation2] sm:$0xff] }
 0x230   : > { %v3565_v38 = vsel %vm11501_vm14, %v3563_v47, %v3564_v18  ;;  %v8464_v7 = vrot.slane %v8451_v51, 10  ;;  %9480 = vmatmul.mubr.msk.bf16.vlgmr.msra.gmra.mrb[0].mxu0 %vm3626_vm15, %v8470_v50  ;;  %v4481_v8 = vrot.slane %v11578_v20, 6  ;;  %v4484_v9 = vrot.slane %v8452_v12, 6  ;;  %v11590_v29 = vld [vmem:[%s10402_s5 + $0x4c] sm:$0xf] }
 0x231   : > { %v8327_v27 = vcombine.low %v3562_v39, %v3565_v38  ;;  %v4478_v10 = vsel %vm11501_vm14, %v4476_v28, %v4477_v2  ;;  %v8309_v37 = vld [vmem:[%s10402_s5 + $0x48] sm:$0xc]  ;;  %9496 = vmatpush3.bf16.msra.mxu0 %v4817_v6  ;;  %v3569_v62 = vsel %vm11501_vm14, %v8320_v19, %v3568_v58  ;;  %v3570_v33 = vrot.slane %v3568_v58, 4  ;;  %v8310_v40 = vld [vmem:[%s10402_s5 + $0x50] sm:$0x3] }
 0x232   : > { %v8471_v3 = vcombine.low %v4475_v55, %v4478_v10  ;;  %v8321_v43 = vrot.slane %v8309_v37, 10  ;;  %v8485_v16 = vld [vmem:[%s10402_s5 + $0x30] sm:$0x8]  ;;  %v4482_v56 = vsel %vm11501_vm14, %v8464_v7, %v4481_v8  ;;  %v4483_v4 = vrot.slane %v4481_v8, 4  ;;  %v8486_v13 = vld [vmem:[%s10402_s5 + $0x38] sm:$0x7] }
 0x233   : > { %9411 = vmatprep.mubr.msk.bf16.mxu1 %vm3626_vm15, %v8327_v27  ;;  %v3575_v11 = vrot.slane %v11590_v29, 6  ;;  %v3578_v46 = vrot.slane %v8310_v40, 6  ;;  %v3572_v23 = vsel %vm11501_vm14, %v3570_v33, %v3571_v41  ;;  %v8501_v52 = vrot.slane %v8485_v16, 11  ;;  %v5037_v24 = vld [vmem:[%s10407_s8 + $0x18] sm:$0xf] }
 0x234   : > { %9483 = vmatprep.mubr.msk.bf16.mxu0 %vm3626_vm15, %v8471_v3  ;;  %v4715_v31 = vrot.slane %v4713_v34, 4  ;;  %v4716_v6 = vrot.slane %v8486_v13, 7  ;;  %v8328_v54 = vcombine.low %v3569_v62, %v3572_v23  ;;  %v4485_v48 = vsel %vm11501_vm14, %v4483_v4, %v4484_v9  ;;  %10136 = vmatprep.subr.msk.bf16.mxu0 %vm3651_vm11, %v5037_v24  ;;  %v11620_v45 = vld [vmem:[%s10402_s5 + $0x58] sm:$0xf]  ;;  %v8311_v36 = vld [vmem:[%s10402_s5 + $0x54] sm:$0xc] }
 0x235   : > { %v3576_v42 = vsel %vm11501_vm14, %v8321_v43, %v3575_v11  ;;  %v3577_v17 = vrot.slane %v3575_v11, 4  ;;  %v8472_v18 = vcombine.low %v4482_v56, %v4485_v48  ;;  %v4714_v1 = vsel %vm11603_vm2, %v8501_v52, %v4713_v34  ;;  %v8312_v5 = vld [vmem:[%s10402_s5 + $0x5c] sm:$0x3]  ;;  %v8487_v47 = vld [vmem:[%s10402_s5 + $0x3c] sm:$0x8] }
 0x236   : > { %v4717_v15 = vsel %vm11603_vm2, %v4715_v31, %v4716_v6  ;;  %v8322_v39 = vrot.slane %v8311_v36, 10  ;;  %9412 = vmatmul.mubr.msk.bf16.gmra.mrb[4].mxu1 %vm3626_vm15, %v8328_v54  ;;  %v3582_v22 = vrot.slane %v11620_v45, 6  ;;  %v3585_v50 = vrot.slane %v8312_v5, 6  ;;  %v8488_v55 = vld [vmem:[%s10402_s5 + $0x44] sm:$0x7] }
 0x237   : > { %v3579_v2 = vsel %vm11501_vm14, %v3577_v17, %v3578_v46  ;;  %v8509_v61 = vcombine.low %v4714_v1, %v4717_v15  ;;  %v11637_v28 = vld [vmem:[%s10402_s5 + $0x64] sm:$0xf]  ;;  %v8502_v19 = vrot.slane %v8487_v47, 11  ;;  %v4723_v51 = vrot.slane %v8488_v55, 7  ;;  %v8313_v58 = vld [vmem:[%s10402_s5 + $0x60] sm:$0xc] }
 0x238   : > { %v8329_v34 = vcombine.low %v3576_v42, %v3579_v2  ;;  %v5087_v38 = vsel %vm3651_vm11, %v5037_v24, 0  ;;  %9484 = vmatmul.mubr.msk.bf16.gmra.mrb[4].mxu0 %vm3626_vm15, %v8472_v18  ;;  %v3583_v41 = vsel %vm11501_vm14, %v8322_v39, %v3582_v22  ;;  %v3584_v12 = vrot.slane %v3582_v22, 4  ;;  %v8314_v7 = vld [vmem:[%s10402_s5 + $0x68] sm:$0x3]  ;;  %v8489_v3 = vld [vmem:[%s10402_s5 + $0x48] sm:$0x8] }
 0x239   : > { %v8323_v27 = vrot.slane %v8313_v58, 10  ;;  %v3589_v10 = vrot.slane %v11637_v28, 6  ;;  %9497 = vmatprep.mubr.msk.bf16.mxu0 %vm3626_vm15, %v8509_v61  ;;  %v4721_v8 = vsel %vm11603_vm2, %v8502_v19, %v4720_v26  ;;  %v4724_v9 = vsel %vm11603_vm2, %v11562_v30, %v4723_v51  ;;  %v8490_v62 = vld [vmem:[%s10402_s5 + $0x50] sm:$0x7]  ;;  %v8315_v4 = vld [vmem:[%s10402_s5 + $0x6c] sm:$0xc] }
 0x23a   : > { %9415 = vmatprep.mubr.msk.bf16.mxu1 %vm3626_vm15, %v8329_v34  ;;  %v3592_v37 = vrot.slane %v8314_v7, 6  ;;  %v4727_v33 = vrot.slane %v11553_v32, 7  ;;  %v3586_v40 = vsel %vm11501_vm14, %v3584_v12, %v3585_v50  ;;  %v8510_v43 = vcombine.low %v4721_v8, %v4724_v9  ;;  %v11663_v26 = vld [vmem:[%s10402_s5 + $0x70] sm:$0xf]  ;;  %v8316_v23 = vld [vmem:[%s10402_s5 + $0x74] sm:$0x3] }
 0x23b   : > { %v3590_v16 = vsel %vm11501_vm14, %v8323_v27, %v3589_v10  ;;  %v3591_v56 = vrot.slane %v3589_v10, 4  ;;  %v8330_v30 = vcombine.low %v3583_v41, %v3586_v40  ;;  %v8503_v11 = vrot.slane %v8489_v3, 11  ;;  %v8491_v54 = vld [vmem:[%s10402_s5 + $0x54] sm:$0x8]  ;;  %v8492_v36 = vld [vmem:[%s10402_s5 + $0x5c] sm:$0x7] }
 0x23c   : > { %v4729_v46 = vrot.slane %v4727_v33, 4  ;;  %v4730_v13 = vrot.slane %v8490_v62, 7  ;;  %v8324_v31 = vrot.slane %v8315_v4, 10  ;;  %v3596_v6 = vrot.slane %v11663_v26, 6  ;;  %v8269_v1 = vld [vmem:[%s10402_s5 + $0x18] sm:$0xe] }
 0x23d   : > { %v3593_v52 = vsel %vm11501_vm14, %v3591_v56, %v3592_v37  ;;  %v3599_v24 = vrot.slane %v8316_v23, 6  ;;  %v4728_v42 = vsel %vm11603_vm2, %v8503_v11, %v4727_v33  ;;  %v8504_v18 = vrot.slane %v8491_v54, 11  ;;  %v8271_v2 = vld [vmem:[%s10402_s5 + $0x20] sm:$0x1]  ;;  %v3991_v61 = vld [vmem:[%s10407_s8 + $0x8] sm:$0xf] }
 0x23e   : > { %v8331_v48 = vcombine.low %v3590_v16, %v3593_v52  ;;  %v4731_v17 = vsel %vm11603_vm2, %v4729_v46, %v4730_v13  ;;  %9416 = vmatmul.mubr.msk.bf16.gmra.mrb[8].mxu1 %vm3626_vm15, %v8330_v30  ;;  %v3597_v5 = vsel %vm11501_vm14, %v8324_v31, %v3596_v6  ;;  %v3598_v39 = vrot.slane %v3596_v6, 4  ;;  %10131 = vmatprep.subr.msk.bf16.mxu1 %vm3651_vm11, %v3991_v61  ;;  %v11686_v55 = vld [vmem:[%s10402_s5 + $0x64] sm:$0xf]  ;;  %v8493_v12 = vld [vmem:[%s10402_s5 + $0x60] sm:$0x8] }
 0x23f   : > { %v8511_v15 = vcombine.low %v4728_v42, %v4731_v17  ;;  %v4734_v47 = vrot.slane %v11578_v20, 7  ;;  %v4737_v22 = vrot.slane %v8492_v36, 7  ;;  %vm3450_vm3 = vcmask 1042432   ;;  %v8494_v7 = vld [vmem:[%s10402_s5 + $0x68] sm:$0x7] }
 0x240   : > { %9419 = vmatprep.mubr.msk.bf16.mxu1 %vm3626_vm15, %v8331_v48  ;;  %vm3451_vm4 = vcmask 1046532   ;;  %v8293_v50 = vrot.slane %v8269_v1, 9  ;;  %9498 = vmatmul.mubr.msk.bf16.vlgmr.msra.gmra.mrb[0].mxu0 %vm3626_vm15, %v8510_v43  ;;  %v3600_v34 = vsel %vm11501_vm14, %v3598_v39, %v3599_v24  ;;  %v3457_v41 = vrot.slane %v3455_v49, 4  ;;  %v8272_v37 = vld [vmem:[%s10402_s5 + $0x24] sm:$0xe] }
 0x241   : > { %v4735_v19 = vsel %vm11603_vm2, %v8504_v18, %v4734_v47  ;;  %v4736_v51 = vrot.slane %v4734_v47, 4  ;;  %vm11693_vm5 = vmor %vm3450_vm3, %vm3451_vm4  ;;  %9514 = vmatpush3.bf16.msra.mxu0 %v5087_v38  ;;  %9501 = vmatprep.mubr.msk.bf16.mxu0 %vm3626_vm15, %v8511_v15  ;;  %v8332_v27 = vcombine.low %v3597_v5, %v3600_v34  ;;  %v3458_v8 = vrot.slane %v8271_v2, 5  ;;  %v8274_v3 = vld [vmem:[%s10402_s5 + $0x2c] sm:$0x1]  ;;  %v11712_v43 = vld [vmem:[%s10402_s5 + $0x70] sm:$0xf] }
 0x242   : > { %v3456_v10 = vsel %vm11693_vm5, %v8293_v50, %v3455_v49  ;;  %v8505_v9 = vrot.slane %v8493_v12, 11  ;;  %v4741_v38 = vrot.slane %v11686_v55, 7  ;;  %v4744_v33 = vrot.slane %v8494_v7, 7  ;;  %v8495_v30 = vld [vmem:[%s10402_s5 + $0x6c] sm:$0x8] }
 0x243   : > { %v4738_v62 = vsel %vm11603_vm2, %v4736_v51, %v4737_v22  ;;  %v8294_v40 = vrot.slane %v8272_v37, 9  ;;  %v3464_v16 = vrot.slane %v3462_v57, 4  ;;  %v3459_v56 = vsel %vm11693_vm5, %v3457_v41, %v3458_v8  ;;  %v8496_v11 = vld [vmem:[%s10402_s5 + $0x74] sm:$0x7]  ;;  %v8275_v31 = vld [vmem:[%s10402_s5 + $0x30] sm:$0xe] }
 0x244   : > { %v8512_v49 = vcombine.low %v4735_v19, %v4738_v62  ;;  %v3465_v4 = vrot.slane %v8274_v3, 5  ;;  %v8341_v46 = vcombine.low %v3456_v10, %v3459_v56  ;;  %v4742_v13 = vsel %vm11603_vm2, %v8505_v9, %v4741_v38  ;;  %v8277_v54 = vld [vmem:[%s10402_s5 + $0x38] sm:$0x1]  ;;  %v11727_v48 = vld [vmem:[%s10402_s5 + $0x7c] sm:$0xf] }
 0x245   : > { %v4743_v23 = vrot.slane %v4741_v38, 4  ;;  %v4041_v52 = vsel %vm3651_vm11, %v3991_v61, 0  ;;  %v8506_v6 = vrot.slane %v8495_v30, 11  ;;  %v4748_v24 = vrot.slane %v11712_v43, 7  ;;  %v8497_v1 = vld [vmem:[%s10402_s5 + $0x78] sm:$0x8] }
 0x246   : > { %9420 = vmatmul.mubr.msk.bf16.gmra.mrb[12].mxu1 %vm3626_vm15, %v8332_v27  ;;  %v3463_v17 = vsel %vm11693_vm5, %v8294_v40, %v3462_v57  ;;  %v4751_v36 = vrot.slane %v8496_v11, 7  ;;  %v8295_v18 = vrot.slane %v8275_v31, 9  ;;  %v8498_v15 = vld [vmem:[%s10402_s5 + $0x80] sm:$0x7]  ;;  %v3466_v39 = vsel %vm11693_vm5, %v3464_v16, %v3465_v4  ;;  %v8278_v61 = vld [vmem:[%s10402_s5 + $0x3c] sm:$0xe] }
 0x247   : > { %v4745_v42 = vsel %vm11603_vm2, %v4743_v23, %v4744_v33  ;;  %9425 = vmatprep.mubr.msk.bf16.mxu1 %vm3626_vm15, %v8341_v46  ;;  %v4749_v47 = vsel %vm11603_vm2, %v8506_v6, %v4748_v24  ;;  %v4750_v2 = vrot.slane %v4748_v24, 4  ;;  %v8280_v22 = vld [vmem:[%s10402_s5 + $0x44] sm:$0x1]  ;;  %v3469_v57 = vrot.slane %v11541_v21, 5  ;;  %v11749_v51 = vld [vmem:[%s10402_s5 + $0x88] sm:$0xf] }
 0x248   : > { %v8513_v5 = vcombine.low %v4742_v13, %v4745_v42  ;;  %9502 = vmatmul.mubr.msk.bf16.gmra.mrb[4].mxu0 %vm3626_vm15, %v8512_v49  ;;  %v3472_v50 = vrot.slane %v8277_v54, 5  ;;  %v8507_v34 = vrot.slane %v8497_v1, 11  ;;  %v4755_v19 = vrot.slane %v11727_v48, 7  ;;  %v8499_v10 = vld [vmem:[%s10402_s5 + $0x84] sm:$0x8] }
 0x249   : > { %v4752_v41 = vsel %vm11603_vm2, %v4750_v2, %v4751_v36  ;;  %v4758_v12 = vrot.slane %v8498_v15, 7  ;;  %v8296_v7 = vrot.slane %v8278_v61, 9  ;;  %v3476_v27 = vrot.slane %v11566_v0, 5  ;;  %v8500_v62 = vld [vmem:[%s10402_s5 + $0x8c] sm:$0x7] }
 0x24a   : > { %9505 = vmatprep.mubr.msk.bf16.mxu0 %vm3626_vm15, %v8513_v5  ;;  %v8342_v8 = vcombine.low %v3463_v17, %v3466_v39  ;;  %v8514_v9 = vcombine.low %v4749_v47, %v4752_v41  ;;  %v3470_v37 = vsel %vm11693_vm5, %v8295_v18, %v3469_v57  ;;  %v3471_v3 = vrot.slane %v3469_v57, 4  ;;  %v8281_v38 = vld [vmem:[%s10402_s5 + $0x48] sm:$0xe]  ;;  %v8283_v56 = vld [vmem:[%s10402_s5 + $0x50] sm:$0x1] }
 0x24b   : > { %v4756_v33 = vsel %vm11603_vm2, %v8507_v34, %v4755_v19  ;;  %v4757_v40 = vrot.slane %v4755_v19, 4  ;;  %v3478_v16 = vrot.slane %v3476_v27, 4  ;;  %v3479_v49 = vrot.slane %v8280_v22, 5  ;;  %v8525_v13 = vld [vmem:[%s10402_s5 + $0x48] sm:$0xe] }
 0x24c   : > { %v3473_v4 = vsel %vm11693_vm5, %v3471_v3, %v3472_v50  ;;  %v8508_v30 = vrot.slane %v8499_v10, 11  ;;  %v4762_v11 = vrot.slane %v11749_v51, 7  ;;  %v4765_v46 = vrot.slane %v8500_v62, 7  ;;  %v11772_v54 = vld [vmem:[%s10402_s5 + $0x4c] sm:$0xf] }
 0x24d   : > { %v8343_v23 = vcombine.low %v3470_v37, %v3473_v4  ;;  %v4759_v31 = vsel %vm11603_vm2, %v4757_v40, %v4758_v12  ;;  %v3477_v6 = vsel %vm11693_vm5, %v8296_v7, %v3476_v27  ;;  %v8297_v24 = vrot.slane %v8281_v38, 9  ;;  %v8527_v42 = vld [vmem:[%s10402_s5 + $0x50] sm:$0x1]  ;;  %v11781_v15 = vld [vmem:[%s10407_s8 + $0x1c] sm:$0xf] }
 0x24e   : > { %9426 = vmatmul.mubr.msk.bf16.vlgmr.msra.gmra.mrb[0].mxu1 %vm3626_vm15, %v8342_v8  ;;  %v8515_v17 = vcombine.low %v4756_v33, %v4759_v31  ;;  %v3480_v36 = vsel %vm11693_vm5, %v3478_v16, %v3479_v49  ;;  %v4763_v18 = vsel %vm11603_vm2, %v8508_v30, %v4762_v11  ;;  %v4764_v1 = vrot.slane %v4762_v11, 4  ;;  %v8284_v5 = vld [vmem:[%s10402_s5 + $0x54] sm:$0xe]  ;;  %v8286_v22 = vld [vmem:[%s10402_s5 + $0x5c] sm:$0x1]  ;;  %10137 = vmatprep.subr.msk.bf16.mxu0 %vm3651_vm11, %v11781_v15 }
 0x24f   : > { %9442 = vmatpush3.bf16.msra.mxu1 %v4041_v52  ;;  %9429 = vmatprep.mubr.msk.bf16.mxu1 %vm3626_vm15, %v8343_v23  ;;  %v3483_v39 = vrot.slane %v11590_v29, 5  ;;  %v3486_v47 = vrot.slane %v8283_v56, 5  ;;  %v8549_v2 = vrot.slane %v8525_v13, 9  ;;  %v4983_v61 = vrot.slane %v11772_v54, 5  ;;  %v8528_v7 = vld [vmem:[%s10402_s5 + $0x54] sm:$0xe] }
 0x250   : > { %9506 = vmatmul.mubr.msk.bf16.gmra.mrb[8].mxu0 %vm3626_vm15, %v8514_v9  ;;  %v4766_v57 = vsel %vm11603_vm2, %v4764_v1, %v4765_v46  ;;  %v4986_v50 = vrot.slane %v8527_v42, 5  ;;  %v8298_v52 = vrot.slane %v8284_v5, 9  ;;  %v3490_v34 = vrot.slane %v11620_v45, 5  ;;  %v11799_v27 = vld [vmem:[%s10402_s5 + $0x58] sm:$0xf] }
 0x251   : > { %9509 = vmatprep.mubr.msk.bf16.mxu0 %vm3626_vm15, %v8515_v17  ;;  %v8344_v19 = vcombine.low %v3477_v6, %v3480_v36  ;;  %v3484_v41 = vsel %vm11693_vm5, %v8297_v24, %v3483_v39  ;;  %v3485_v12 = vrot.slane %v3483_v39, 4  ;;  %v4984_v10 = vsel %vm11693_vm5, %v8549_v2, %v4983_v61  ;;  %v8530_v3 = vld [vmem:[%s10402_s5 + $0x5c] sm:$0x1]  ;;  %v8287_v16 = vld [vmem:[%s10402_s5 + $0x60] sm:$0xe] }
 0x252   : > { %v4985_v8 = vrot.slane %v4983_v61, 4  ;;  %v3492_v9 = vrot.slane %v3490_v34, 4  ;;  %v3493_v37 = vrot.slane %v8286_v22, 5  ;;  %v8516_v62 = vcombine.low %v4763_v18, %v4766_v57  ;;  %v8289_v49 = vld [vmem:[%s10402_s5 + $0x68] sm:$0x1] }
 0x253   : > { %v3487_v38 = vsel %vm11693_vm5, %v3485_v12, %v3486_v47  ;;  %v11808_v33 = vsel %vm11693_vm5, %v8298_v52, %v3490_v34  ;;  %v4990_v40 = vrot.slane %v11799_v27, 5  ;;  %v8550_v11 = vrot.slane %v8528_v7, 9  ;;  %v8531_v46 = vld [vmem:[%s10402_s5 + $0x60] sm:$0xe]  ;;  %v11819_v13 = vld [vmem:[%s10402_s5 + $0x64] sm:$0xf] }
 0x254   : > { %v8345_v56 = vcombine.low %v3484_v41, %v3487_v38  ;;  %v4987_v4 = vsel %vm11693_vm5, %v4985_v8, %v4986_v50  ;;  %v3494_v30 = vsel %vm11693_vm5, %v3492_v9, %v3493_v37  ;;  %v4993_v6 = vrot.slane %v8530_v3, 5  ;;  %v8533_v24 = vld [vmem:[%s10402_s5 + $0x68] sm:$0x1]  ;;  %v8290_v42 = vld [vmem:[%s10402_s5 + $0x6c] sm:$0xe] }
 0x255   : > { %v8557_v23 = vcombine.low %v4984_v10, %v4987_v4  ;;  %v4992_v31 = vrot.slane %v4990_v40, 4  ;;  %v8299_v17 = vrot.slane %v8287_v16, 9  ;;  %v3497_v36 = vrot.slane %v11637_v28, 5  ;;  %v8292_v5 = vld [vmem:[%s10402_s5 + $0x74] sm:$0x1] }
 0x256   : > { %9430 = vmatmul.mubr.msk.bf16.gmra.mrb[4].mxu1 %vm3626_vm15, %v8344_v19  ;;  %v3500_v18 = vrot.slane %v8289_v49, 5  ;;  %v8551_v1 = vrot.slane %v8531_v46, 9  ;;  %v3937_v39 = vrot.slane %v11495_v35, 7  ;;  %v8346_v47 = vcombine.low %v11808_v33, %v3494_v30  ;;  %v8534_v22 = vld [vmem:[%s10402_s5 + $0x6c] sm:$0xe] }
 0x257   : > { %9433 = vmatprep.mubr.msk.bf16.mxu1 %vm3626_vm15, %v8345_v56  ;;  %v4997_v2 = vrot.slane %v11819_v13, 5  ;;  %v5000_v61 = vrot.slane %v8533_v24, 5  ;;  %v4991_v57 = vsel %vm11693_vm5, %v8550_v11, %v4990_v40  ;;  %v3498_v50 = vsel %vm11693_vm5, %v8299_v17, %v3497_v36  ;;  %v11838_v34 = vld [vmem:[%s10402_s5 + $0x70] sm:$0xf]  ;;  %v8536_v19 = vld [vmem:[%s10402_s5 + $0x74] sm:$0x1] }
 0x258   : > { %9510 = vmatmul.mubr.msk.bf16.gmra.mrb[12].mxu0 %vm3626_vm15, %v8516_v62  ;;  %v3499_v35 = vrot.slane %v3497_v36, 4  ;;  %v3504_v52 = vrot.slane %v11663_v26, 5  ;;  %v4994_v41 = vsel %vm11693_vm5, %v4992_v31, %v4993_v6  ;;  %v8300_v7 = vrot.slane %v8290_v42, 9  ;;  %v8357_v8 = vld [vmem:[%s10402_s5 + $0x18] sm:$0x8] }
 0x259   : > { %9515 = vmatprep.mubr.msk.bf16.mxu0 %vm3626_vm15, %v8557_v23  ;;  %v4999_v12 = vrot.slane %v4997_v2, 4  ;;  %v3507_v10 = vrot.slane %v8292_v5, 5  ;;  %v4998_v37 = vsel %vm11693_vm5, %v8551_v1, %v4997_v2  ;;  %v8552_v3 = vrot.slane %v8534_v22, 9  ;;  %v8358_v38 = vld [vmem:[%s10402_s5 + $0x20] sm:$0x7] }
 0x25a   : > { %v3501_v9 = vsel %vm11693_vm5, %v3499_v35, %v3500_v18  ;;  %v5004_v62 = vrot.slane %v11838_v34, 5  ;;  %v11852_v33 = vld [vmem:[%s10407_s8 + $0xc] sm:$0xf]  ;;  %v3506_v49 = vrot.slane %v3504_v52, 4  ;;  %v5007_v56 = vrot.slane %v8536_v19, 5 }
 0x25b   : > { %v8347_v40 = vcombine.low %v3498_v50, %v3501_v9  ;;  %v5001_v16 = vsel %vm11693_vm5, %v4999_v12, %v5000_v61  ;;  %10132 = vmatprep.subr.msk.bf16.mxu1 %vm3651_vm11, %v11852_v33  ;;  %v8537_v4 = vld [vmem:[%s10402_s5 + $0x78] sm:$0xe]  ;;  %v11860_v30 = vld [vmem:[%s10402_s5 + $0x7c] sm:$0xf]  ;;  %v8558_v11 = vcombine.low %v4991_v57, %v4994_v41  ;;  %v8373_v23 = vrot.slane %v8357_v8, 11 }
 0x25c   : > { %v5006_v46 = vrot.slane %v5004_v62, 4  ;;  %v8539_v31 = vld [vmem:[%s10402_s5 + $0x80] sm:$0x1]  ;;  %v8359_v6 = vld [vmem:[%s10402_s5 + $0x24] sm:$0x8]  ;;  %v3944_v24 = vrot.slane %v11519_v14, 7  ;;  %v8559_v42 = vcombine.low %v4998_v37, %v5001_v16  ;;  %v3505_v14 = vsel %vm11693_vm5, %v8300_v7, %v3504_v52 }
 0x25d   : > { %v3939_v17 = vrot.slane %v3937_v39, 4  ;;  %v3940_v36 = vrot.slane %v8358_v38, 7  ;;  %v5340_v18 = vsel %vm3651_vm11, %v11781_v15, 0  ;;  %v8553_v1 = vrot.slane %v8537_v4, 9  ;;  %v11870_v61 = vld [vmem:[%s10402_s5 + $0x88] sm:$0xf] }
 0x25e   : > { %9434 = vmatmul.mubr.msk.bf16.gmra.mrb[8].mxu1 %vm3626_vm15, %v8346_v47  ;;  %v5011_v5 = vrot.slane %v11860_v30, 5  ;;  %v5014_v2 = vrot.slane %v8539_v31, 5  ;;  %v3508_v47 = vsel %vm11693_vm5, %v3506_v49, %v3507_v10  ;;  %v5005_v15 = vsel %vm11693_vm5, %v8552_v3, %v5004_v62  ;;  %v8360_v22 = vld [vmem:[%s10402_s5 + $0x2c] sm:$0x7]  ;;  %v8540_v41 = vld [vmem:[%s10402_s5 + $0x84] sm:$0xe] }
 0x25f   : > { %9437 = vmatprep.mubr.msk.bf16.mxu1 %vm3626_vm15, %v8347_v40  ;;  %v8374_v57 = vrot.slane %v8359_v6, 11  ;;  %v5008_v50 = vsel %vm11693_vm5, %v5006_v46, %v5007_v56  ;;  %v3938_v35 = vsel %vm11603_vm2, %v8373_v23, %v3937_v39  ;;  %v3941_v52 = vsel %vm11603_vm2, %v3939_v17, %v3940_v36  ;;  %v8361_v12 = vld [vmem:[%s10402_s5 + $0x30] sm:$0x8]  ;;  %v8362_v8 = vld [vmem:[%s10402_s5 + $0x38] sm:$0x7] }
 0x260   : > { %9516 = vmatmul.mubr.msk.bf16.vlgmr.msra.gmra.mrb[0].mxu0 %vm3626_vm15, %v8558_v11  ;;  %v5013_v19 = vrot.slane %v5011_v5, 4  ;;  %v3946_v7 = vrot.slane %v3944_v24, 4  ;;  %v5018_v10 = vrot.slane %v11870_v61, 5  ;;  %v11893_v9 = vld [vmem:[%s10402_s5 + $0x94] sm:$0xf]  ;;  %v8348_v37 = vcombine.low %v3505_v14, %v3508_v47 }
 0x261   : > { %9532 = vmatpush3.bf16.msra.mxu0 %v5340_v18  ;;  %9519 = vmatprep.mubr.msk.bf16.mxu0 %vm3626_vm15, %v8559_v42  ;;  %v5012_v39 = vsel %vm11693_vm5, %v8553_v1, %v5011_v5  ;;  %v3947_v62 = vrot.slane %v8360_v22, 7  ;;  %v8542_v38 = vld [vmem:[%s10402_s5 + $0x8c] sm:$0x1]  ;;  %v8560_v40 = vcombine.low %v5005_v15, %v5008_v50  ;;  %v8381_v16 = vcombine.low %v3938_v35, %v3941_v52  ;;  %v8543_v4 = vld [vmem:[%s10402_s5 + $0x90] sm:$0xe] }
 0x262   : > { %v5015_v3 = vsel %vm11693_vm5, %v5013_v19, %v5014_v2  ;;  %v3945_v49 = vsel %vm11603_vm2, %v8374_v57, %v3944_v24  ;;  %v3951_v56 = vrot.slane %v11541_v21, 7  ;;  %v8545_v11 = vld [vmem:[%s10402_s5 + $0x98] sm:$0x1]  ;;  %v8554_v46 = vrot.slane %v8540_v41, 9  ;;  %v11910_v2 = vld [vmem:[%s10402_s5 + $0xa0] sm:$0xf] }
 0x263   : > { %v8375_v23 = vrot.slane %v8361_v12, 11  ;;  %v3954_v31 = vrot.slane %v8362_v8, 7  ;;  %v5025_v6 = vrot.slane %v11893_v9, 5  ;;  %v8561_v42 = vcombine.low %v5012_v39, %v5015_v3  ;;  %v8363_v14 = vld [vmem:[%s10402_s5 + $0x3c] sm:$0x8] }
 0x264   : > { %v5020_v17 = vrot.slane %v5018_v10, 4  ;;  %v5021_v36 = vrot.slane %v8542_v38, 5  ;;  %v3953_v18 = vrot.slane %v3951_v56, 4  ;;  %v3948_v21 = vsel %vm11603_vm2, %v3946_v7, %v3947_v62  ;;  %v11916_v15 = vld [vmem:[%s10407_s8 + $0x20] sm:$0xf] }
 0x265   : > { %v8555_v24 = vrot.slane %v8543_v4, 9  ;;  %v5027_v1 = vrot.slane %v5025_v6, 4  ;;  %v5028_v5 = vrot.slane %v8545_v11, 5  ;;  %v3958_v47 = vrot.slane %v11566_v0, 7  ;;  %v8364_v35 = vld [vmem:[%s10402_s5 + $0x44] sm:$0x7]  ;;  %10138 = vmatprep.subr.msk.bf16.mxu0 %vm3651_vm11, %v11916_v15 }
 0x266   : > { %9438 = vmatmul.mubr.msk.bf16.gmra.mrb[12].mxu1 %vm3626_vm15, %v8348_v37  ;;  %v4311_v22 = vsel %vm3651_vm11, %v11852_v33, 0  ;;  %v3952_v57 = vsel %vm11603_vm2, %v8375_v23, %v3951_v56  ;;  %v3955_v50 = vsel %vm11603_vm2, %v3953_v18, %v3954_v31  ;;  %v8546_v52 = vld [vmem:[%s10402_s5 + $0x9c] sm:$0xe]  ;;  %v8382_v0 = vcombine.low %v3945_v49, %v3948_v21  ;;  %v8365_v12 = vld [vmem:[%s10402_s5 + $0x48] sm:$0x8] }
 0x267   : > { %9443 = vmatprep.mubr.msk.bf16.mxu1 %vm3626_vm15, %v8381_v16  ;;  %v5019_v33 = vsel %vm11693_vm5, %v8554_v46, %v5018_v10  ;;  %v5022_v19 = vsel %vm11693_vm5, %v5020_v17, %v5021_v36  ;;  %v5032_v41 = vrot.slane %v11910_v2, 5  ;;  %v8366_v7 = vld [vmem:[%s10402_s5 + $0x50] sm:$0x7]  ;;  %v5026_v8 = vsel %vm11693_vm5, %v8555_v24, %v5025_v6  ;;  %v8548_v3 = vld [vmem:[%s10402_s5 + $0xa4] sm:$0x1] }
 0x268   : > { %9520 = vmatmul.mubr.msk.bf16.gmra.mrb[4].mxu0 %vm3626_vm15, %v8560_v40  ;;  %v5029_v37 = vsel %vm11693_vm5, %v5027_v1, %v5028_v5  ;;  %v8376_v39 = vrot.slane %v8363_v14, 11  ;;  %v3965_v62 = vrot.slane %v11590_v29, 7  ;;  %v8573_v38 = vld [vmem:[%s10402_s5 + $0x48] sm:$0xc]  ;;  %v8383_v40 = vcombine.low %v3952_v57, %v3955_v50  ;;  %v8574_v49 = vld [vmem:[%s10402_s5 + $0x50] sm:$0x3] }
 0x269   : > { %9523 = vmatprep.mubr.msk.bf16.mxu0 %vm3626_vm15, %v8561_v42  ;;  %v3960_v10 = vrot.slane %v3958_v47, 4  ;;  %v3961_v16 = vrot.slane %v8364_v35, 7  ;;  %v5236_v56 = vrot.slane %v11772_v54, 6  ;;  %v8562_v4 = vcombine.low %v5019_v33, %v5022_v19  ;;  %v8367_v1 = vld [vmem:[%s10402_s5 + $0x54] sm:$0x8] }
 0x26a   : > { %v8377_v11 = vrot.slane %v8365_v12, 11  ;;  %v3967_v46 = vrot.slane %v3965_v62, 4  ;;  %v3968_v23 = vrot.slane %v8366_v7, 7  ;;  %v8563_v31 = vcombine.low %v5026_v8, %v5029_v37  ;;  %v8368_v57 = vld [vmem:[%s10402_s5 + $0x5c] sm:$0x7] }
 0x26b   : > { %v8556_v6 = vrot.slane %v8546_v52, 9  ;;  %v5034_v42 = vrot.slane %v5032_v41, 4  ;;  %v5035_v17 = vrot.slane %v8548_v3, 5  ;;  %v8589_v29 = vrot.slane %v8573_v38, 10  ;;  %v8575_v50 = vld [vmem:[%s10402_s5 + $0x54] sm:$0xc] }
 0x26c   : > { %v5238_v36 = vrot.slane %v5236_v56, 4  ;;  %v5239_v18 = vrot.slane %v8574_v49, 6  ;;  %v3959_v21 = vsel %vm11603_vm2, %v8376_v39, %v3958_v47  ;;  %v3962_v24 = vsel %vm11603_vm2, %v3960_v10, %v3961_v16  ;;  %v8369_v52 = vld [vmem:[%s10402_s5 + $0x60] sm:$0x8]  ;;  %v8576_v8 = vld [vmem:[%s10402_s5 + $0x5c] sm:$0x3] }
 0x26d   : > { %v3972_v5 = vrot.slane %v11620_v45, 7  ;;  %v3966_v14 = vsel %vm11603_vm2, %v8377_v11, %v3965_v62  ;;  %v5033_v45 = vsel %vm11693_vm5, %v8556_v6, %v5032_v41  ;;  %v5036_v47 = vsel %vm11693_vm5, %v5034_v42, %v5035_v17  ;;  %v8577_v37 = vld [vmem:[%s10402_s5 + $0x60] sm:$0xc]  ;;  %v8578_v62 = vld [vmem:[%s10402_s5 + $0x68] sm:$0x3] }
 0x26e   : > { %9444 = vmatmul.mubr.msk.bf16.vlgmr.msra.gmra.mrb[0].mxu1 %vm3626_vm15, %v8382_v0  ;;  %v5243_v35 = vrot.slane %v11799_v27, 6  ;;  %v8370_v0 = vld [vmem:[%s10402_s5 + $0x68] sm:$0x7]  ;;  %v3979_v33 = vrot.slane %v11637_v28, 7  ;;  %v8384_v19 = vcombine.low %v3959_v21, %v3962_v24  ;;  %v5237_v12 = vsel %vm11501_vm14, %v8589_v29, %v5236_v56  ;;  %v8372_v21 = vld [vmem:[%s10402_s5 + $0x74] sm:$0x7] }
 0x26f   : > { %9460 = vmatpush3.bf16.msra.mxu1 %v4311_v22  ;;  %9447 = vmatprep.mubr.msk.bf16.mxu1 %vm3626_vm15, %v8383_v40  ;;  %v3969_v22 = vsel %vm11603_vm2, %v3967_v46, %v3968_v23  ;;  %v8378_v7 = vrot.slane %v8367_v1, 11  ;;  %v3974_v39 = vrot.slane %v3972_v5, 4  ;;  %v3975_v3 = vrot.slane %v8368_v57, 7  ;;  %v8579_v24 = vld [vmem:[%s10402_s5 + $0x6c] sm:$0xc] }
 0x270   : > { %9524 = vmatmul.mubr.msk.bf16.gmra.mrb[8].mxu0 %vm3626_vm15, %v8562_v4  ;;  %10134 = vmatprep.subr.msk.bf16.mxu1 %vm3651_vm11, %v11484_v44  ;;  %v5240_v44 = vsel %vm11501_vm14, %v5238_v36, %v5239_v18  ;;  %v8385_v41 = vcombine.low %v3966_v14, %v3969_v22  ;;  %v5250_v38 = vrot.slane %v11819_v13, 6  ;;  %v8564_v40 = vcombine.low %v5033_v45, %v5036_v47  ;;  %v8371_v18 = vld [vmem:[%s10402_s5 + $0x6c] sm:$0x8]  ;;  %v8397_v22 = vld [vmem:[%s10402_s5 + $0x30] sm:$0xe] }
 0x271   : > { %9527 = vmatprep.mubr.msk.bf16.mxu0 %vm3626_vm15, %v8563_v31  ;;  %v8379_v10 = vrot.slane %v8369_v52, 11  ;;  %v3981_v16 = vrot.slane %v3979_v33, 4  ;;  %v3982_v28 = vrot.slane %v8370_v0, 7  ;;  %v8597_v49 = vcombine.low %v5237_v12, %v5240_v44  ;;  %v8399_v57 = vld [vmem:[%s10402_s5 + $0x38] sm:$0x1] }
 0x272   : > { %v8590_v4 = vrot.slane %v8575_v50, 10  ;;  %v5245_v56 = vrot.slane %v5243_v35, 4  ;;  %v5246_v11 = vrot.slane %v8576_v8, 6  ;;  %v8591_v46 = vrot.slane %v8577_v37, 10  ;;  %v8580_v52 = vld [vmem:[%s10402_s5 + $0x74] sm:$0x3] }
 0x273   : > { %v5252_v23 = vrot.slane %v5250_v38, 4  ;;  %v5253_v31 = vrot.slane %v8578_v62, 6  ;;  %v4207_v6 = vrot.slane %v11510_v25, 5  ;;  %v3973_v42 = vsel %vm11603_vm2, %v8378_v7, %v3972_v5  ;;  %v8581_v0 = vld [vmem:[%s10402_s5 + $0x78] sm:$0xc] }
 0x274   : > { %v3976_v17 = vsel %vm11603_vm2, %v3974_v39, %v3975_v3  ;;  %v3986_v29 = vrot.slane %v11663_v26, 7  ;;  %v3980_v36 = vsel %vm11603_vm2, %v8379_v10, %v3979_v33  ;;  %v3983_v25 = vsel %vm11603_vm2, %v3981_v16, %v3982_v28  ;;  %v8582_v7 = vld [vmem:[%s10402_s5 + $0x80] sm:$0x3] }
 0x275   : > { %v4214_v1 = vrot.slane %v11529_v59, 5  ;;  %v5244_v26 = vsel %vm11501_vm14, %v8590_v4, %v5243_v35  ;;  %v5247_v5 = vsel %vm11501_vm14, %v5245_v56, %v5246_v11  ;;  %v5257_v14 = vrot.slane %v11838_v34, 6 }
 0x276   : > { %9448 = vmatmul.mubr.msk.bf16.gmra.mrb[4].mxu1 %vm3626_vm15, %v8384_v19  ;;  %v8386_v50 = vcombine.low %v3973_v42, %v3976_v17  ;;  %v5251_v45 = vsel %vm11501_vm14, %v8591_v46, %v5250_v38  ;;  %v5254_v47 = vsel %vm11501_vm14, %v5252_v23, %v5253_v31  ;;  %v5264_v33 = vrot.slane %v11860_v30, 6  ;;  %v8400_v46 = vld [vmem:[%s10402_s5 + $0x3c] sm:$0xe]  ;;  %v8402_v23 = vld [vmem:[%s10402_s5 + $0x44] sm:$0x1] }
 0x277   : > { %9451 = vmatprep.mubr.msk.bf16.mxu1 %vm3626_vm15, %v8385_v41  ;;  %v8387_v19 = vcombine.low %v3980_v36, %v3983_v25  ;;  %v8380_v35 = vrot.slane %v8371_v18, 11  ;;  %v3988_v12 = vrot.slane %v3986_v29, 4  ;;  %v3989_v44 = vrot.slane %v8372_v21, 7  ;;  %v8403_v36 = vld [vmem:[%s10402_s5 + $0x48] sm:$0xe] }
 0x278   : > { %9528 = vmatmul.mubr.msk.bf16.gmra.mrb[12].mxu0 %vm3626_vm15, %v8564_v40  ;;  %v8598_v8 = vcombine.low %v5244_v26, %v5247_v5  ;;  %v8421_v37 = vrot.slane %v8397_v22, 9  ;;  %v4209_v41 = vrot.slane %v4207_v6, 4  ;;  %v4210_v39 = vrot.slane %v8399_v57, 5  ;;  %v8405_v25 = vld [vmem:[%s10402_s5 + $0x50] sm:$0x1] }
 0x279   : > { %9533 = vmatprep.mubr.msk.bf16.mxu0 %vm3626_vm15, %v8597_v49  ;;  %v8599_v3 = vcombine.low %v5251_v45, %v5254_v47  ;;  %v8592_v62 = vrot.slane %v8579_v24, 10  ;;  %v5259_v38 = vrot.slane %v5257_v14, 4  ;;  %v5260_v40 = vrot.slane %v8580_v52, 6  ;;  %v8583_v24 = vld [vmem:[%s10402_s5 + $0x84] sm:$0xc] }
 0x27a   : > { %v5593_v10 = vsel %vm3651_vm11, %v11916_v15, 0  ;;  %v8593_v16 = vrot.slane %v8581_v0, 10  ;;  %v5266_v28 = vrot.slane %v5264_v33, 4  ;;  %v5267_v49 = vrot.slane %v8582_v7, 6  ;;  %v8584_v26 = vld [vmem:[%s10402_s5 + $0x8c] sm:$0x3] }
 0x27b   : > { %v3987_v4 = vsel %vm11603_vm2, %v8380_v35, %v3986_v29  ;;  %v3990_v56 = vsel %vm11603_vm2, %v3988_v12, %v3989_v44  ;;  %v4208_v11 = vsel %vm11693_vm5, %v8421_v37, %v4207_v6  ;;  %v4211_v15 = vsel %vm11693_vm5, %v4209_v41, %v4210_v39  ;;  %v8586_v45 = vld [vmem:[%s10402_s5 + $0x98] sm:$0x3] }
 0x27c   : > { %v4221_v31 = vrot.slane %v11553_v32, 5  ;;  %v4216_v42 = vrot.slane %v4214_v1, 4  ;;  %v5258_v6 = vsel %vm11501_vm14, %v8592_v62, %v5257_v14  ;;  %v5261_v17 = vsel %vm11501_vm14, %v5259_v38, %v5260_v40  ;;  %v8408_v40 = vld [vmem:[%s10402_s5 + $0x5c] sm:$0x1] }
 0x27d   : > { %v5271_v29 = vrot.slane %v11870_v61, 6  ;;  %v8388_v18 = vcombine.low %v3987_v4, %v3990_v56  ;;  %v5265_v32 = vsel %vm11501_vm14, %v8593_v16, %v5264_v33  ;;  %v5268_v21 = vsel %vm11501_vm14, %v5266_v28, %v5267_v49  ;;  %v8409_v49 = vld [vmem:[%s10402_s5 + $0x60] sm:$0xe]  ;;  %v8411_v4 = vld [vmem:[%s10402_s5 + $0x68] sm:$0x1] }
 0x27e   : > { %9452 = vmatmul.mubr.msk.bf16.gmra.mrb[8].mxu1 %vm3626_vm15, %v8386_v50  ;;  %v5278_v5 = vrot.slane %v11893_v9, 6  ;;  %v8429_v22 = vcombine.low %v4208_v11, %v4211_v15  ;;  %v8422_v14 = vrot.slane %v8400_v46, 9  ;;  %v4217_v57 = vrot.slane %v8402_v23, 5  ;;  %v8585_v50 = vld [vmem:[%s10402_s5 + $0x90] sm:$0xc] }
 0x27f   : > { %9455 = vmatprep.mubr.msk.bf16.mxu1 %vm3626_vm15, %v8387_v19  ;;  %v8600_v47 = vcombine.low %v5258_v6, %v5261_v17  ;;  %v8423_v52 = vrot.slane %v8403_v36, 9  ;;  %v4223_v0 = vrot.slane %v4221_v31, 4  ;;  %v4224_v19 = vrot.slane %v8405_v25, 5  ;;  %v8588_v46 = vld [vmem:[%s10402_s5 + $0xa4] sm:$0x3] }
 0x280   : > { %9534 = vmatmul.mubr.msk.bf16.vlgmr.msra.gmra.mrb[0].mxu0 %vm3626_vm15, %v8598_v8  ;;  %v8601_v35 = vcombine.low %v5265_v32, %v5268_v21  ;;  %v8594_v33 = vrot.slane %v8583_v24, 10  ;;  %v5273_v12 = vrot.slane %v5271_v29, 4  ;;  %v5274_v44 = vrot.slane %v8584_v26, 6  ;;  %v8613_v23 = vld [vmem:[%s10402_s5 + $0x48] sm:$0x8] }
 0x281   : > { %9550 = vmatpush3.bf16.msra.mxu0 %v5593_v10  ;;  %9537 = vmatprep.mubr.msk.bf16.mxu0 %vm3626_vm15, %v8599_v3  ;;  %v8595_v7 = vrot.slane %v8585_v50, 10  ;;  %v5280_v8 = vrot.slane %v5278_v5, 4  ;;  %v5281_v37 = vrot.slane %v8586_v45, 6  ;;  %v4215_v41 = vsel %vm11693_vm5, %v8422_v14, %v4214_v1  ;;  %v8406_v3 = vld [vmem:[%s10402_s5 + $0x54] sm:$0xe] }
 0x282   : > { %v4218_v39 = vsel %vm11693_vm5, %v4216_v42, %v4217_v57  ;;  %v4228_v62 = vrot.slane %v11578_v20, 5  ;;  %v4222_v38 = vsel %vm11693_vm5, %v8423_v52, %v4221_v31  ;;  %v4225_v59 = vsel %vm11693_vm5, %v4223_v0, %v4224_v19  ;;  %v8587_v10 = vld [vmem:[%s10402_s5 + $0x9c] sm:$0xc]  ;;  %v8614_v36 = vld [vmem:[%s10402_s5 + $0x50] sm:$0x7] }
 0x283   : > { %v4235_v1 = vrot.slane %v11686_v55, 5  ;;  %v5272_v20 = vsel %vm11501_vm14, %v8594_v33, %v5271_v29  ;;  %v5275_v16 = vsel %vm11501_vm14, %v5273_v12, %v5274_v44  ;;  %v5285_v28 = vrot.slane %v11910_v2, 6  ;;  %v8414_v19 = vld [vmem:[%s10402_s5 + $0x74] sm:$0x1] }
 0x284   : > { %v8430_v56 = vcombine.low %v4215_v41, %v4218_v39  ;;  %v5279_v11 = vsel %vm11501_vm14, %v8595_v7, %v5278_v5  ;;  %v5282_v15 = vsel %vm11501_vm14, %v5280_v8, %v5281_v37  ;;  %v5489_v31 = vrot.slane %v11772_v54, 7  ;;  %v8415_v8 = vld [vmem:[%s10402_s5 + $0x78] sm:$0xe]  ;;  %v8417_v37 = vld [vmem:[%s10402_s5 + $0x80] sm:$0x1] }
 0x285   : > { %v8431_v42 = vcombine.low %v4222_v38, %v4225_v59  ;;  %v8424_v6 = vrot.slane %v8406_v3, 9  ;;  %v4230_v17 = vrot.slane %v4228_v62, 4  ;;  %v4231_v29 = vrot.slane %v8408_v40, 5  ;;  %v8617_v38 = vld [vmem:[%s10402_s5 + $0x60] sm:$0x8] }
 0x286   : > { %9456 = vmatmul.mubr.msk.bf16.gmra.mrb[12].mxu1 %vm3626_vm15, %v8388_v18  ;;  %v8602_v25 = vcombine.low %v5272_v20, %v5275_v16  ;;  %v8425_v18 = vrot.slane %v8409_v49, 9  ;;  %v4237_v32 = vrot.slane %v4235_v1, 4  ;;  %v4238_v21 = vrot.slane %v8411_v4, 5  ;;  %v8618_v16 = vld [vmem:[%s10402_s5 + $0x68] sm:$0x7] }
 0x287   : > { %9461 = vmatprep.mubr.msk.bf16.mxu1 %vm3626_vm15, %v8429_v22  ;;  %v8603_v24 = vcombine.low %v5279_v11, %v5282_v15  ;;  %v8596_v26 = vrot.slane %v8587_v10, 10  ;;  %v5287_v5 = vrot.slane %v5285_v28, 4  ;;  %v5288_v22 = vrot.slane %v8588_v46, 6 }
 0x288   : > { %9538 = vmatmul.mubr.msk.bf16.gmra.mrb[4].mxu0 %vm3626_vm15, %v8600_v47  ;;  %v8629_v14 = vrot.slane %v8613_v23, 11  ;;  %v5491_v54 = vrot.slane %v5489_v31, 4  ;;  %v5492_v57 = vrot.slane %v8614_v36, 7  ;;  %v4229_v50 = vsel %vm11693_vm5, %v8424_v6, %v4228_v62  ;;  %v8412_v47 = vld [vmem:[%s10402_s5 + $0x6c] sm:$0xe] }
 0x289   : > { %9541 = vmatprep.mubr.msk.bf16.mxu0 %vm3626_vm15, %v8601_v35  ;;  %v4232_v45 = vsel %vm11693_vm5, %v4230_v17, %v4231_v29  ;;  %v4242_v52 = vrot.slane %v11712_v43, 5  ;;  %v4239_v0 = vsel %vm11693_vm5, %v4237_v32, %v4238_v21  ;;  %v8615_v35 = vld [vmem:[%s10402_s5 + $0x54] sm:$0x8]  ;;  %v4249_v33 = vrot.slane %v11727_v48, 5  ;;  %v8616_v62 = vld [vmem:[%s10402_s5 + $0x5c] sm:$0x7] }
 0x28a   : > { %v5286_v12 = vsel %vm11501_vm14, %v8596_v26, %v5285_v28  ;;  %v5289_v44 = vsel %vm11501_vm14, %v5287_v5, %v5288_v22  ;;  %v5496_v7 = vrot.slane %v11799_v27, 7  ;;  %v8432_v41 = vcombine.low %v4229_v50, %v4232_v45  ;;  %v8418_v17 = vld [vmem:[%s10402_s5 + $0x84] sm:$0xe]  ;;  %v8619_v32 = vld [vmem:[%s10402_s5 + $0x6c] sm:$0x8] }
 0x28b   : > { %v5490_v39 = vsel %vm11603_vm2, %v8629_v14, %v5489_v31  ;;  %v5493_v3 = vsel %vm11603_vm2, %v5491_v54, %v5492_v57  ;;  %v5503_v59 = vrot.slane %v11819_v13, 7  ;;  %v8426_v10 = vrot.slane %v8412_v47, 9  ;;  %v8453_v14 = vld [vmem:[%s10402_s5 + $0x60] sm:$0xc]  ;;  %v8454_v54 = vld [vmem:[%s10402_s5 + $0x68] sm:$0x3] }
 0x28c   : > { %v4245_v20 = vrot.slane %v8414_v19, 5  ;;  %v8604_v27 = vcombine.low %v5286_v12, %v5289_v44  ;;  %v8427_v28 = vrot.slane %v8415_v8, 9  ;;  %v4251_v49 = vrot.slane %v4249_v33, 4  ;;  %v8620_v45 = vld [vmem:[%s10402_s5 + $0x74] sm:$0x7] }
 0x28d   : > { %v4252_v4 = vrot.slane %v8417_v37, 5  ;;  %v8630_v11 = vrot.slane %v8615_v35, 11  ;;  %v5498_v15 = vrot.slane %v5496_v7, 4  ;;  %v5499_v46 = vrot.slane %v8616_v62, 7  ;;  %v8621_v47 = vld [vmem:[%s10402_s5 + $0x78] sm:$0x8] }
 0x28e   : > { %9462 = vmatmul.mubr.msk.bf16.vlgmr.msra.gmra.mrb[0].mxu1 %vm3626_vm15, %v8430_v56  ;;  %v8637_v56 = vcombine.low %v5490_v39, %v5493_v3  ;;  %v8631_v23 = vrot.slane %v8617_v38, 11  ;;  %v5505_v13 = vrot.slane %v5503_v59, 4  ;;  %v5506_v31 = vrot.slane %v8618_v16, 7 }
 0x28f   : > { %9860 = vmatpush3.bf16.msra.mxu1 %v11492_v60  ;;  %9465 = vmatprep.mubr.msk.bf16.mxu1 %vm3626_vm15, %v8431_v42  ;;  %v4236_v60 = vsel %vm11693_vm5, %v8425_v18, %v4235_v1  ;;  %v4244_v1 = vrot.slane %v4242_v52, 4  ;;  %v4243_v42 = vsel %vm11693_vm5, %v8426_v10, %v4242_v52  ;;  %v4256_v29 = vrot.slane %v11749_v51, 5  ;;  %v8420_v18 = vld [vmem:[%s10402_s5 + $0x8c] sm:$0x1] }
 0x290   : > { %9542 = vmatmul.mubr.msk.bf16.gmra.mrb[8].mxu0 %vm3626_vm15, %v8602_v25  ;;  %v8433_v40 = vcombine.low %v4236_v60, %v4239_v0  ;;  %v4250_v36 = vsel %vm11693_vm5, %v8427_v28, %v4249_v33  ;;  %v4253_v25 = vsel %vm11693_vm5, %v4251_v49, %v4252_v4  ;;  %v4488_v21 = vrot.slane %v11686_v55, 6  ;;  %v8622_v33 = vld [vmem:[%s10402_s5 + $0x80] sm:$0x7]  ;;  %v8457_v4 = vld [vmem:[%s10402_s5 + $0x78] sm:$0xc] }
 0x291   : > { %9545 = vmatprep.mubr.msk.bf16.mxu0 %vm3626_vm15, %v8603_v24  ;;  %v4246_v6 = vsel %vm11693_vm5, %v4244_v1, %v4245_v20  ;;  %v4495_v24 = vrot.slane %v11712_v43, 6  ;;  %v5497_v26 = vsel %vm11603_vm2, %v8630_v11, %v5496_v7  ;;  %v5500_v5 = vsel %vm11603_vm2, %v5498_v15, %v5499_v46  ;;  %v8455_v1 = vld [vmem:[%s10402_s5 + $0x6c] sm:$0xc]  ;;  %v8456_v20 = vld [vmem:[%s10402_s5 + $0x74] sm:$0x3] }
 0x292   : > { %v5510_v22 = vrot.slane %v11838_v34, 7  ;;  %v8434_v57 = vcombine.low %v4243_v42, %v4246_v6  ;;  %v5504_v50 = vsel %vm11603_vm2, %v8631_v23, %v5503_v59  ;;  %v5507_v55 = vsel %vm11603_vm2, %v5505_v13, %v5506_v31  ;;  %v8623_v46 = vld [vmem:[%s10402_s5 + $0x84] sm:$0x8]  ;;  %v8624_v23 = vld [vmem:[%s10402_s5 + $0x8c] sm:$0x7] }
 0x293   : > { %v5517_v52 = vrot.slane %v11860_v30, 7  ;;  %v8435_v60 = vcombine.low %v4250_v36, %v4253_v25  ;;  %v8428_v0 = vrot.slane %v8418_v17, 9  ;;  %v4258_v19 = vrot.slane %v4256_v29, 4  ;;  %v8625_v17 = vld [vmem:[%s10402_s5 + $0x90] sm:$0x8] }
 0x294   : > { %v4259_v35 = vrot.slane %v8420_v18, 5  ;;  %v8638_v12 = vcombine.low %v5497_v26, %v5500_v5  ;;  %v8465_v34 = vrot.slane %v8453_v14, 10  ;;  %v4490_v44 = vrot.slane %v4488_v21, 4  ;;  %v8460_v43 = vld [vmem:[%s10402_s5 + $0x8c] sm:$0x3] }
 0x295   : > { %v4491_v7 = vrot.slane %v8454_v54, 6  ;;  %v8639_v8 = vcombine.low %v5504_v50, %v5507_v55  ;;  %v8632_v37 = vrot.slane %v8619_v32, 11  ;;  %v5513_v39 = vrot.slane %v8620_v45, 7 }
 0x296   : > { %9466 = vmatmul.mubr.msk.bf16.gmra.mrb[4].mxu1 %vm3626_vm15, %v8432_v41  ;;  %v5512_v41 = vrot.slane %v5510_v22, 4  ;;  %v8633_v3 = vrot.slane %v8621_v47, 11  ;;  %v5519_v62 = vrot.slane %v5517_v52, 4  ;;  %v5520_v30 = vrot.slane %v8622_v33, 7  ;;  %v8459_v47 = vld [vmem:[%s10402_s5 + $0x84] sm:$0xc] }
 0x297   : > { %9469 = vmatprep.mubr.msk.bf16.mxu1 %vm3626_vm15, %v8433_v40  ;;  %v4257_v38 = vsel %vm11693_vm5, %v8428_v0, %v4256_v29  ;;  %v4260_v59 = vsel %vm11693_vm5, %v4258_v19, %v4259_v35  ;;  %v4489_v40 = vsel %vm11501_vm14, %v8465_v34, %v4488_v21  ;;  %v4492_v10 = vsel %vm11501_vm14, %v4490_v44, %v4491_v7  ;;  %v8626_v29 = vld [vmem:[%s10402_s5 + $0x98] sm:$0x7]  ;;  %v8627_v35 = vld [vmem:[%s10402_s5 + $0x9c] sm:$0x8]  ;;  %v8628_v33 = vld [vmem:[%s10402_s5 + $0xa4] sm:$0x7] }
 0x298   : > { %9546 = vmatmul.mubr.msk.bf16.gmra.mrb[12].mxu0 %vm3626_vm15, %v8604_v27  ;;  %v4502_v16 = vrot.slane %v11727_v48, 6  ;;  %v4497_v27 = vrot.slane %v4495_v24, 4  ;;  %v5511_v58 = vsel %vm11603_vm2, %v8632_v37, %v5510_v22  ;;  %v5514_v28 = vsel %vm11603_vm2, %v5512_v41, %v5513_v39 }
 0x299   : > { %9551 = vmatprep.mubr.msk.bf16.mxu0 %vm3626_vm15, %v8637_v56  ;;  %v5524_v49 = vrot.slane %v11870_v61, 7  ;;  %v8458_v56 = vld [vmem:[%s10402_s5 + $0x80] sm:$0x3]  ;;  %v8436_v11 = vcombine.low %v4257_v38, %v4260_v59  ;;  %v5518_v48 = vsel %vm11603_vm2, %v8633_v3, %v5517_v52  ;;  %v5521_v15 = vsel %vm11603_vm2, %v5519_v62, %v5520_v30 }
 0x29a   : > { %v5531_v13 = vrot.slane %v11893_v9, 7  ;;  %v8473_v31 = vcombine.low %v4489_v40, %v4492_v10  ;;  %v8466_v42 = vrot.slane %v8455_v1, 10  ;;  %v4498_v6 = vrot.slane %v8456_v20, 6 }
 0x29b   : > { %v8640_v36 = vcombine.low %v5511_v58, %v5514_v28  ;;  %v8467_v61 = vrot.slane %v8457_v4, 10  ;;  %v4504_v25 = vrot.slane %v4502_v16, 4  ;;  %v4505_v18 = vrot.slane %v8458_v56, 6  ;;  %v5710_v4 = vld [vmem:[#allocation2 + $0x10] sm:$0xff] }
 0x29c   : > { %v8641_v32 = vcombine.low %v5518_v48, %v5521_v15  ;;  %v8634_v21 = vrot.slane %v8623_v46, 11  ;;  %v5526_v26 = vrot.slane %v5524_v49, 4  ;;  %v5527_v5 = vrot.slane %v8624_v23, 7  ;;  %v5711_v46 = vld [vmem:[#allocation2 + $0x18] sm:$0xff] }
 0x29d   : > { %v8635_v22 = vrot.slane %v8625_v17, 11  ;;  %v5533_v14 = vrot.slane %v5531_v13, 4  ;;  %v5534_v9 = vrot.slane %v8626_v29, 7  ;;  %v4496_v54 = vsel %vm11501_vm14, %v8466_v42, %v4495_v24  ;;  %v5709_v42 = vld [vmem:[#allocation2 + $0x8] sm:$0xff] }
 0x29e   : > { %9470 = vmatmul.mubr.msk.bf16.gmra.mrb[8].mxu1 %vm3626_vm15, %v8434_v57  ;;  %v4499_v57 = vsel %vm11501_vm14, %v4497_v27, %v4498_v6  ;;  %v4509_v50 = vrot.slane %v11749_v51, 6  ;;  %v4503_v55 = vsel %vm11501_vm14, %v8467_v61, %v4502_v16  ;;  %v4506_v45 = vsel %vm11501_vm14, %v4504_v25, %v4505_v18  ;;  %v5714_v25 = vld [vmem:[#allocation2 + $0x30] sm:$0xff] }
 0x29f   : > { %9473 = vmatprep.mubr.msk.bf16.mxu1 %vm3626_vm15, %v8435_v60  ;;  %v5525_v24 = vsel %vm11603_vm2, %v8634_v21, %v5524_v49  ;;  %v5528_v52 = vsel %vm11603_vm2, %v5526_v26, %v5527_v5  ;;  %v5538_v51 = vrot.slane %v11910_v2, 7  ;;  %v8474_v60 = vcombine.low %v4496_v54, %v4499_v57  ;;  %v5712_v21 = vld [vmem:[#allocation2 + $0x20] sm:$0xff]  ;;  %v5713_v57 = vld [vmem:[#allocation2 + $0x28] sm:$0xff] }
 0x2a0   : > { %9552 = vmatmul.mubr.msk.bf16.vlgmr.msra.gmra.mrb[0].mxu0 %vm3626_vm15, %v8638_v12  ;;  %v5532_v0 = vsel %vm11603_vm2, %v8635_v22, %v5531_v13  ;;  %v5535_v19 = vsel %vm11603_vm2, %v5533_v14, %v5534_v9  ;;  %v8475_v12 = vcombine.low %v4503_v55, %v4506_v45  ;;  %v8468_v34 = vrot.slane %v8459_v47, 10  ;;  %v5715_v22 = vld [vmem:[#allocation2 + $0x38] sm:$0xff] }
 0x2a1   : > { %9555 = vmatprep.mubr.msk.bf16.mxu0 %vm3626_vm15, %v8639_v8  ;;  %v4511_v44 = vrot.slane %v4509_v50, 4  ;;  %v4512_v7 = vrot.slane %v8460_v43, 6  ;;  %v8642_v8 = vcombine.low %v5525_v24, %v5528_v52  ;;  %v8643_v37 = vcombine.low %v5532_v0, %v5535_v19 }
 0x2a2   : > { %v8636_v41 = vrot.slane %v8627_v35, 11  ;;  %v5540_v39 = vrot.slane %v5538_v51, 4  ;;  %v5541_v3 = vrot.slane %v8628_v33, 7  ;;  %v4510_v2 = vsel %vm11501_vm14, %v8468_v34, %v4509_v50  ;;  %v5716_v35 = vld [vmem:[#allocation2 + $0x40] sm:$0xff] }
 0x2a3   : > { %v4513_v62 = vsel %vm11501_vm14, %v4511_v44, %v4512_v7  ;;  %v5719_v44 = vld [vmem:[#allocation2 + $0x58] sm:$0xff] }
 0x2a4   : > { %v5539_v30 = vsel %vm11603_vm2, %v8636_v41, %v5538_v51  ;;  %v5542_v38 = vsel %vm11603_vm2, %v5540_v39, %v5541_v3  ;;  %v8476_v59 = vcombine.low %v4510_v2, %v4513_v62  ;;  %v5718_v51 = vld [vmem:[#allocation2 + $0x50] sm:$0xff]  ;;  %v5717_v41 = vld [vmem:[#allocation2 + $0x48] sm:$0xff] }
 0x2a5   : > { %v8644_v40 = vcombine.low %v5539_v30, %v5542_v38 }
 0x2a6   : > { %9474 = vmatmul.mubr.msk.bf16.gmra.mrb[12].mxu1 %vm3626_vm15, %v8436_v11 }
 0x2a7   : > { %9487 = vmatprep.mubr.msk.bf16.mxu1 %vm3626_vm15, %v8473_v31 }
 0x2a8   : > { %9556 = vmatmul.mubr.msk.bf16.gmra.mrb[4].mxu0 %vm3626_vm15, %v8640_v36 }
 0x2a9   : > { %9559 = vmatprep.mubr.msk.bf16.mxu0 %vm3626_vm15, %v8641_v32 }
 0x2ae   : > { %9488 = vmatmul.mubr.msk.bf16.vlgmr.msra.gmra.mrb[8].mxu1 %vm3626_vm15, %v8474_v60 }
 0x2af   : > { %9491 = vmatprep.mubr.msk.bf16.mxu1 %vm3626_vm15, %v8475_v12 }
 0x2b0   : > { %9560 = vmatmul.mubr.msk.bf16.gmra.mrb[8].mxu0 %vm3626_vm15, %v8642_v8 }
 0x2b1   : > { %9563 = vmatprep.mubr.msk.bf16.mxu0 %vm3626_vm15, %v8643_v37 }
 0x2b6   : > { %9492 = vmatmul.mubr.msk.bf16.gmra.mrb[12].mxu1 %vm3626_vm15, %v8476_v59 }
 0x2b8   : > { %9564 = vmatmul.mubr.msk.bf16.gmra.mrb[12].mxu0 %vm3626_vm15, %v8644_v40  ;;  %v5722_v40 = vld [vmem:[#allocation2 + $0x70] sm:$0xff] }
 0x361   : > { %v9463_v10 = vpop.f32.mrb[0].mxu1 }
 0x362   : > { %v4347_v1 = vpop.f32.mrb[1].mxu1 }
 0x363   : > { %v9464_v63 = vpop.f32.mrb[2].mxu1 }
 0x364   : > { %v4350_v20 = vpop.f32.mrb[3].mxu1 }
 0x369   : > { %v9467_v16 = vpop.f32.mrb[4].mxu1 }
 0x36a   : > { %v4363_v27 = vpop.f32.mrb[5].mxu1 }
 0x36b   : > { %v9468_v58 = vpop.f32.mrb[6].mxu1 }
 0x36c   : > { %v4366_v28 = vpop.f32.mrb[7].mxu1 }
 0x373   : > { %v9553_v49 = vpop.f32.mrb[0].mxu0 }
 0x374   : > { %v9861_v56 = vadd.f32 %v9553_v49, %v9463_v10  ;;  %v5629_v11 = vpop.f32.mrb[1].mxu0 }
 0x375   : > { %v9862_v48 = vadd.f32 %v5629_v11, %v4347_v1  ;;  %v9554_v15 = vpop.f32.mrb[2].mxu0  ;;  %v5721_v11 = vld [vmem:[#allocation2 + $0x68] sm:$0xff] }
 0x376   : > { %v5726_v23 = vadd.f32 %v9861_v56, %v5710_v4  ;;  %v9863_v13 = vadd.f32 %v9554_v15, %v9464_v63  ;;  %v5632_v31 = vpop.f32.mrb[3].mxu0 }
 0x377   : > { %v5724_v6 = vadd.f32 %v9862_v48, %v5708_v53  ;;  %v9864_v17 = vadd.f32 %v5632_v31, %v4350_v20  ;;  %v5720_v20 = vld [vmem:[#allocation2 + $0x60] sm:$0xff] }
 0x378   : > { %5742 = vst [vmem:[#allocation2 + $0x10] sm:$0xff] %v5726_v23  ;;  %v5727_v29 = vadd.f32 %v9863_v13, %v5711_v46 }
 0x379   : > { %5740 = vst [vmem:[#allocation2] sm:$0xff] %v5724_v6  ;;  %v5725_v36 = vadd.f32 %v9864_v17, %v5709_v42 }
 0x37a   : > { %5743 = vst [vmem:[#allocation2 + $0x18] sm:$0xff] %v5727_v29 }
 0x37b   : > { %5741 = vst [vmem:[#allocation2 + $0x8] sm:$0xff] %v5725_v36  ;;  %v9557_v61 = vpop.f32.mrb[4].mxu0 }
 0x37c   : > { %v9865_v18 = vadd.f32 %v9557_v61, %v9467_v16  ;;  %v5645_v32 = vpop.f32.mrb[5].mxu0 }
 0x37d   : > { %v9866_v26 = vadd.f32 %v5645_v32, %v4363_v27  ;;  %v9558_v5 = vpop.f32.mrb[6].mxu0 }
 0x37e   : > { %v5730_v14 = vadd.f32 %v9865_v18, %v5714_v25  ;;  %v9867_v9 = vadd.f32 %v9558_v5, %v9468_v58  ;;  %v5648_v54 = vpop.f32.mrb[7].mxu0 }
 0x37f   : > { %v5728_v50 = vadd.f32 %v9866_v26, %v5712_v21  ;;  %v9868_v55 = vadd.f32 %v5648_v54, %v4366_v28  ;;  %v5723_v28 = vld [vmem:[#allocation2 + $0x78] sm:$0xff] }
 0x380   : > { %5746 = vst [vmem:[#allocation2 + $0x30] sm:$0xff] %v5730_v14  ;;  %v5731_v45 = vadd.f32 %v9867_v9, %v5715_v22 }
 0x381   : > { %5744 = vst [vmem:[#allocation2 + $0x20] sm:$0xff] %v5728_v50  ;;  %v5729_v47 = vadd.f32 %v9868_v55, %v5713_v57  ;;  %v9489_v43 = vpop.f32.mrb[8].mxu1 }
 0x382   : > { %5747 = vst [vmem:[#allocation2 + $0x38] sm:$0xff] %v5731_v45  ;;  %v4632_v24 = vpop.f32.mrb[9].mxu1 }
 0x383   : > { %5745 = vst [vmem:[#allocation2 + $0x28] sm:$0xff] %v5729_v47  ;;  %v9561_v52 = vpop.f32.mrb[8].mxu0  ;;  %v9490_v60 = vpop.f32.mrb[10].mxu1 }
 0x384   : > { %v9869_v0 = vadd.f32 %v9561_v52, %v9489_v43  ;;  %v5661_v19 = vpop.f32.mrb[9].mxu0  ;;  %v4635_v33 = vpop.f32.mrb[11].mxu1 }
 0x385   : > { %v9870_v12 = vadd.f32 %v5661_v19, %v4632_v24  ;;  %v9562_v34 = vpop.f32.mrb[10].mxu0 }
 0x386   : > { %v5734_v7 = vadd.f32 %v9869_v0, %v5718_v51  ;;  %v9871_v8 = vadd.f32 %v9562_v34, %v9490_v60  ;;  %v5664_v37 = vpop.f32.mrb[11].mxu0 }
 0x387   : > { %v5732_v39 = vadd.f32 %v9870_v12, %v5716_v35  ;;  %v9872_v3 = vadd.f32 %v5664_v37, %v4635_v33 }
 0x388   : > { %5750 = vst [vmem:[#allocation2 + $0x50] sm:$0xff] %v5734_v7  ;;  %v5735_v2 = vadd.f32 %v9871_v8, %v5719_v44 }
 0x389   : > { %5748 = vst [vmem:[#allocation2 + $0x40] sm:$0xff] %v5732_v39  ;;  %v5733_v62 = vadd.f32 %v9872_v3, %v5717_v41  ;;  %v9493_v30 = vpop.f32.mrb[12].mxu1 }
 0x38a   : > { %5751 = vst [vmem:[#allocation2 + $0x58] sm:$0xff] %v5735_v2  ;;  %v4648_v38 = vpop.f32.mrb[13].mxu1 }
 0x38b   : > { %5749 = vst [vmem:[#allocation2 + $0x48] sm:$0xff] %v5733_v62  ;;  %v9565_v59 = vpop.f32.mrb[12].mxu0  ;;  %v9494_v10 = vpop.f32.mrb[14].mxu1 }
 0x38c   : > { %v9873_v1 = vadd.f32 %v9565_v59, %v9493_v30  ;;  %v5677_v63 = vpop.f32.mrb[13].mxu0  ;;  %v4651_v16 = vpop.f32.mrb[15].mxu1 }
 0x38d   : > { %v9874_v27 = vadd.f32 %v5677_v63, %v4648_v38  ;;  %v9566_v58 = vpop.f32.mrb[14].mxu0 }
 0x38e   : > { %v5738_v49 = vadd.f32 %v9873_v1, %v5722_v40  ;;  %v9875_v4 = vadd.f32 %v9566_v58, %v9494_v10  ;;  %v5680_v56 = vpop.f32.mrb[15].mxu0 }
 0x38f   : > { %v5736_v53 = vadd.f32 %v9874_v27, %v5720_v20  ;;  %v9876_v48 = vadd.f32 %v5680_v56, %v4651_v16 }
 0x390   : > { %5754 = vst [vmem:[#allocation2 + $0x70] sm:$0xff] %v5738_v49  ;;  %v5739_v15 = vadd.f32 %v9875_v4, %v5723_v28 }
 0x391   : > { %5752 = vst [vmem:[#allocation2 + $0x60] sm:$0xff] %v5736_v53  ;;  %v5737_v46 = vadd.f32 %v9876_v48, %v5721_v11 }
 0x392   : > { %5755 = vst [vmem:[#allocation2 + $0x78] sm:$0xff] %v5739_v15 }
 0x393   : > { %5753 = vst [vmem:[#allocation2 + $0x68] sm:$0xff] %v5737_v46 }
 0x394 PF: > { %p8653_p12 = scmp.ne.s32.totalorder %s10302_s12, 2 }
 0x395   : > { %v5876_v23 = vld [vmem:[%s10407_s8 + $0x4] sm:$0xf] (!%p8653_p12)  ;;  %vm5926_vm6 = vcmask (!%p8653_p12), 1043456   ;;  %v12226_v13 = vld [vmem:[%s10407_s8 + $0x10] sm:$0xf] (!%p8653_p12)  ;;  %vm5817_vm7 = vcmask (!%p8653_p12), 1041408  }
 0x396   : > { %5759 = sbr.rel (%p8653_p12) target bundleno = 1293 (0x50d), region = 44  ;;  %10139 = vmatprep.subr.msk.bf16.mxu1 (!%p8653_p12), %vm5926_vm6, %v5876_v23  ;;  %10143 = vmatprep.subr.msk.bf16.mxu0 (!%p8653_p12), %vm5926_vm6, %v12226_v13  ;;  %v5928_v31 = vsel (!%p8653_p12), %vm5926_vm6, %v5876_v23, 0  ;;  %v12234_v42 = vsel (!%p8653_p12), %vm5926_vm6, %v12226_v13, 0  ;;  %v12237_v6 = vld [vmem:[%s10402_s5 + $0x4] sm:$0xf] (!%p8653_p12)  ;;  %vm5818_vm8 = vcmask (!%p8653_p12), 1045508  }
 0x397   : > { %v5777_v17 = vld [vmem:[%s10402_s5] sm:$0xc] (!%p8653_p12)  ;;  %9568 = vmatpush3.bf16.msra.mxu1 (!%p8653_p12), %v5928_v31  ;;  %9640 = vmatpush3.bf16.msra.mxu0 (!%p8653_p12), %v12234_v42  ;;  %v5778_v29 = vld [vmem:[%s10402_s5 + $0x8] sm:$0x3] (!%p8653_p12)  ;;  %v5822_v61 = vrot.slane (!%p8653_p12), %v12237_v6, 6  ;;  %vm12243_vm9 = vmor (!%p8653_p12), %vm5817_vm7, %vm5818_vm8  ;;  %vm5901_vm10 = vcmask (!%p8653_p12), 64512  }
 0x398   : > { %v8654_v36 = vrot.slane (!%p8653_p12), %v5777_v17, 10  ;;  %v5825_v18 = vrot.slane (!%p8653_p12), %v5778_v29, 6  ;;  %v5776_v32 = vld [vmem:[%s10407_s8] sm:$0xf] (!%p8653_p12)  ;;  %v8742_v21 = vld [vmem:[%s10402_s5 + $0x30] sm:$0xc] (!%p8653_p12) }
 0x399   : > { %v5824_v5 = vrot.slane (!%p8653_p12), %v5822_v61, 4  ;;  %10140 = vmatprep.subr.msk.bf16.mxu1 (!%p8653_p12), %vm5926_vm6, %v5776_v32  ;;  %v12253_v22 = vld [vmem:[%s10402_s5 + $0x34] sm:$0xf] (!%p8653_p12)  ;;  %v8744_v14 = vld [vmem:[%s10402_s5 + $0x38] sm:$0x3] (!%p8653_p12)  ;;  %v8766_v9 = vrot.slane (!%p8653_p12), %v8742_v21, 10 }
 0x39a   : > { %v5823_v26 = vsel (!%p8653_p12), %vm12243_vm9, %v8654_v36, %v5822_v61  ;;  %v6604_v54 = vrot.slane (!%p8653_p12), %v12253_v22, 6  ;;  %v6607_v57 = vrot.slane (!%p8653_p12), %v8744_v14, 6  ;;  %v6831_v50 = vld [vmem:[%s10407_s8 + $0x14] sm:$0xf] (!%p8653_p12)  ;;  %v12259_v55 = vld [vmem:[%s10402_s5 + $0x10] sm:$0xf] (!%p8653_p12) }
 0x39b   : > { %v5826_v45 = vsel (!%p8653_p12), %vm12243_vm9, %v5824_v5, %v5825_v18  ;;  %10145 = vmatprep.subr.msk.bf16.mxu0 (!%p8653_p12), %vm5926_vm6, %v6831_v50  ;;  %v5779_v47 = vld [vmem:[%s10402_s5 + $0xc] sm:$0xc] (!%p8653_p12)  ;;  %v5780_v43 = vld [vmem:[%s10402_s5 + $0x14] sm:$0x3] (!%p8653_p12)  ;;  %v5829_v24 = vrot.slane (!%p8653_p12), %v12259_v55, 6  ;;  %v6084_v52 = vsel (!%p8653_p12), %vm5926_vm6, %v5776_v32, 0 }
 0x39c   : > { %v8662_v51 = vcombine.low (!%p8653_p12), %v5823_v26, %v5826_v45  ;;  %v6605_v60 = vsel (!%p8653_p12), %vm12243_vm9, %v8766_v9, %v6604_v54  ;;  %v6606_v0 = vrot.slane (!%p8653_p12), %v6604_v54, 4  ;;  %v8655_v19 = vrot.slane (!%p8653_p12), %v5779_v47, 10  ;;  %v8745_v35 = vld [vmem:[%s10402_s5 + $0x3c] sm:$0xc] (!%p8653_p12)  ;;  %v12272_v33 = vld [vmem:[%s10402_s5 + $0x40] sm:$0xf] (!%p8653_p12) }
 0x39d   : > { %v5831_v12 = vrot.slane %v5829_v24, 4  ;;  %v5832_v34 = vrot.slane %v5780_v43, 6  ;;  %v8747_v44 = vld [vmem:[%s10402_s5 + $0x44] sm:$0x3]  ;;  %v8767_v7 = vrot.slane %v8745_v35, 10  ;;  %v6611_v8 = vrot.slane %v12272_v33, 6 }
 0x39e   : > { %9569 = vmatprep.mubr.msk.bf16.mxu1 %vm5901_vm10, %v8662_v51  ;;  %v6608_v37 = vsel %vm12243_vm9, %v6606_v0, %v6607_v57  ;;  %v5830_v41 = vsel %vm12243_vm9, %v8655_v19, %v5829_v24  ;;  %v6614_v39 = vrot.slane %v8747_v44, 6  ;;  %v6889_v3 = vsel %vm5926_vm6, %v6831_v50, 0  ;;  %v12283_v2 = vld [vmem:[%s10402_s5 + $0x1c] sm:$0xf]  ;;  %v5781_v40 = vld [vmem:[%s10402_s5 + $0x18] sm:$0xc] }
 0x39f   : > { %v8774_v62 = vcombine.low %v6605_v60, %v6608_v37  ;;  %v5833_v30 = vsel %vm12243_vm9, %v5831_v12, %v5832_v34  ;;  %v6612_v38 = vsel %vm12243_vm9, %v8767_v7, %v6611_v8  ;;  %v6613_v59 = vrot.slane %v6611_v8, 4  ;;  %v5782_v10 = vld [vmem:[%s10402_s5 + $0x20] sm:$0x3]  ;;  %v8748_v16 = vld [vmem:[%s10402_s5 + $0x48] sm:$0xc] }
 0x3a0   : > { %v8663_v1 = vcombine.low %v5830_v41, %v5833_v30  ;;  %v8656_v63 = vrot.slane %v5781_v40, 10  ;;  %v5836_v20 = vrot.slane %v12283_v2, 6  ;;  %v12294_v27 = vld [vmem:[%s10402_s5 + $0x4c] sm:$0xf]  ;;  %v5839_v28 = vrot.slane %v5782_v10, 6 }
 0x3a1   : > { %9641 = vmatprep.mubr.msk.bf16.mxu0 %vm5901_vm10, %v8774_v62  ;;  %v6615_v58 = vsel %vm12243_vm9, %v6613_v59, %v6614_v39  ;;  %v8750_v49 = vld [vmem:[%s10402_s5 + $0x50] sm:$0x3]  ;;  %v8768_v4 = vrot.slane %v8748_v16, 10  ;;  %v6618_v56 = vrot.slane %v12294_v27, 6  ;;  %v12305_v46 = vld [vmem:[%s10402_s5 + $0x28] sm:$0xf] }
 0x3a2   : > { %9570 = vmatmul.mubr.msk.bf16.vlgmr.msra.gmra.mrb[0].mxu1 %vm5901_vm10, %v8663_v1  ;;  %v8775_v11 = vcombine.low %v6612_v38, %v6615_v58  ;;  %v5837_v53 = vsel %vm12243_vm9, %v8656_v63, %v5836_v20  ;;  %v5838_v48 = vrot.slane %v5836_v20, 4  ;;  %v6621_v15 = vrot.slane %v8750_v49, 6  ;;  %v5783_v23 = vld [vmem:[%s10402_s5 + $0x24] sm:$0xc]  ;;  %v5784_v29 = vld [vmem:[%s10402_s5 + $0x2c] sm:$0x3] }
 0x3a3   : > { %9586 = vmatpush3.bf16.msra.mxu1 %v6084_v52  ;;  %v6619_v31 = vsel %vm12243_vm9, %v8768_v4, %v6618_v56  ;;  %v6620_v17 = vrot.slane %v6618_v56, 4  ;;  %v8657_v36 = vrot.slane %v5783_v23, 10  ;;  %v5843_v61 = vrot.slane %v12305_v46, 6  ;;  %v8751_v21 = vld [vmem:[%s10402_s5 + $0x54] sm:$0xc] }
 0x3a4   : > { %9642 = vmatmul.mubr.msk.bf16.vlgmr.msra.gmra.mrb[0].mxu0 %vm5901_vm10, %v8775_v11  ;;  %v5840_v18 = vsel %vm12243_vm9, %v5838_v48, %v5839_v28  ;;  %v5846_v32 = vrot.slane %v5784_v29, 6  ;;  %v12317_v26 = vld [vmem:[%s10402_s5 + $0x58] sm:$0xf]  ;;  %v8753_v57 = vld [vmem:[%s10402_s5 + $0x5c] sm:$0x3]  ;;  %v8769_v47 = vrot.slane %v8751_v21, 10 }
 0x3a5   : > { %9658 = vmatpush3.bf16.msra.mxu0 %v6889_v3  ;;  %v8664_v5 = vcombine.low %v5837_v53, %v5840_v18  ;;  %v6622_v14 = vsel %vm12243_vm9, %v6620_v17, %v6621_v15  ;;  %v5844_v9 = vsel %vm12243_vm9, %v8657_v36, %v5843_v61  ;;  %v5845_v54 = vrot.slane %v5843_v61, 4  ;;  %v12325_v50 = vld [vmem:[%s10402_s5 + $0x34] sm:$0xf]  ;;  %v5785_v52 = vld [vmem:[%s10402_s5 + $0x30] sm:$0xc] }
 0x3a6   : > { %v8776_v45 = vcombine.low %v6619_v31, %v6622_v14  ;;  %v6625_v43 = vrot.slane %v12317_v26, 6  ;;  %v6628_v24 = vrot.slane %v8753_v57, 6  ;;  %v5786_v60 = vld [vmem:[%s10402_s5 + $0x38] sm:$0x3]  ;;  %v8658_v0 = vrot.slane %v5785_v52, 10 }
 0x3a7   : > { %9573 = vmatprep.mubr.msk.bf16.mxu1 %vm5901_vm10, %v8664_v5  ;;  %v5847_v51 = vsel %vm12243_vm9, %v5845_v54, %v5846_v32  ;;  %v5850_v19 = vrot.slane %v12325_v50, 6  ;;  %v8790_v35 = vld [vmem:[%s10402_s5 + $0x38] sm:$0xf]  ;;  %v5853_v7 = vrot.slane %v5786_v60, 6  ;;  %v12340_v37 = vld [vmem:[%s10402_s5 + $0x40] sm:$0xf] }
 0x3a8   : > { %9645 = vmatprep.mubr.msk.bf16.mxu0 %vm5901_vm10, %v8776_v45  ;;  %v8665_v12 = vcombine.low %v5844_v9, %v5847_v51  ;;  %v6626_v34 = vsel %vm12243_vm9, %v8769_v47, %v6625_v43  ;;  %v6627_v44 = vrot.slane %v6625_v43, 4  ;;  %v7021_v8 = vld [vmem:[%s10407_s8 + $0x18] sm:$0xf]  ;;  %v5787_v3 = vld [vmem:[%s10402_s5 + $0x3c] sm:$0xc]  ;;  %v5857_v30 = vrot.slane %v12340_v37, 6 }
 0x3a9   : > { %v5851_v41 = vsel %vm12243_vm9, %v8658_v0, %v5850_v19  ;;  %v5852_v39 = vrot.slane %v5850_v19, 4  ;;  %10146 = vmatprep.subr.msk.bf16.mxu0 %vm5926_vm6, %v7021_v8  ;;  %v5788_v62 = vld [vmem:[%s10402_s5 + $0x44] sm:$0x3]  ;;  %v8798_v59 = vcombine.low %v12253_v22, %v8790_v35  ;;  %v8659_v40 = vrot.slane %v5787_v3, 10  ;;  %v12353_v1 = vld [vmem:[%s10402_s5 + $0x4c] sm:$0xf] }
 0x3aa   : > { %9574 = vmatmul.mubr.msk.bf16.gmra.mrb[4].mxu1 %vm5901_vm10, %v8665_v12  ;;  %v6629_v38 = vsel %vm12243_vm9, %v6627_v44, %v6628_v24  ;;  %v5860_v10 = vrot.slane %v5788_v62, 6  ;;  %v5859_v16 = vrot.slane %v5857_v30, 4  ;;  %v5789_v58 = vld [vmem:[%s10402_s5 + $0x48] sm:$0xc]  ;;  %v5790_v28 = vld [vmem:[%s10402_s5 + $0x50] sm:$0x3] }
 0x3ab   : > { %v8777_v63 = vcombine.low %v6626_v34, %v6629_v38  ;;  %v5854_v20 = vsel %vm12243_vm9, %v5852_v39, %v5853_v7  ;;  %v5864_v49 = vrot.slane %v12353_v1, 6  ;;  %v5858_v22 = vsel %vm12243_vm9, %v8659_v40, %v5857_v30  ;;  %v12363_v53 = vld [vmem:[%s10402_s5 + $0x58] sm:$0xf]  ;;  %v5791_v23 = vld [vmem:[%s10402_s5 + $0x54] sm:$0xc] }
 0x3ac   : > { %v8666_v4 = vcombine.low %v5851_v41, %v5854_v20  ;;  %v8660_v56 = vrot.slane %v5789_v58, 10  ;;  %v5867_v11 = vrot.slane %v5790_v28, 6  ;;  %v5861_v48 = vsel %vm12243_vm9, %v5859_v16, %v5860_v10  ;;  %v5792_v31 = vld [vmem:[%s10402_s5 + $0x5c] sm:$0x3]  ;;  %v8791_v29 = vld [vmem:[%s10402_s5 + $0x44] sm:$0xf] }
 0x3ad   : > { %9646 = vmatmul.mubr.msk.bf16.gmra.mrb[4].mxu0 %vm5901_vm10, %v8777_v63  ;;  %v5866_v15 = vrot.slane %v5864_v49, 4  ;;  %v5871_v17 = vrot.slane %v12363_v53, 6  ;;  %v8667_v36 = vcombine.low %v5858_v22, %v5861_v48  ;;  %v8792_v18 = vld [vmem:[%s10402_s5 + $0x50] sm:$0xf]  ;;  %v8661_v21 = vrot.slane %v5791_v23, 10 }
 0x3ae   : > { %9577 = vmatprep.mubr.msk.bf16.mxu1 %vm5901_vm10, %v8666_v4  ;;  %9659 = vmatprep.mubr.msk.bf16.mxu0 %vm5901_vm10, %v8798_v59  ;;  %v5865_v61 = vsel %vm12243_vm9, %v8660_v56, %v5864_v49  ;;  %v5874_v14 = vrot.slane %v5792_v31, 6  ;;  %v6191_v9 = vld [vmem:[%s10407_s8 + $0x8] sm:$0xf]  ;;  %v8799_v57 = vcombine.low %v12272_v33, %v8791_v29  ;;  %v8800_v45 = vcombine.low %v12294_v27, %v8792_v18  ;;  %v5760_v52 = vld [vmem:[%s10402_s5] sm:$0xf]  ;;  %v10239_v48 = vld [vmem:[%s10402_s5 + $0x6c] sm:$0xff]  }
 0x3af   : > { %v5868_v32 = vsel %vm12243_vm9, %v5866_v15, %v5867_v11  ;;  %v5873_v5 = vrot.slane %v5871_v17, 4  ;;  %10141 = vmatprep.subr.msk.bf16.mxu1 %vm5926_vm6, %v6191_v9  ;;  %v7087_v47 = vsel %vm5926_vm6, %v7021_v8, 0  ;;  %v5872_v43 = vsel %vm12243_vm9, %v8661_v21, %v5871_v17  ;;  %v8793_v33 = vld [vmem:[%s10402_s5 + $0x5c] sm:$0xf]  ;;  %v12395_v51 = vld [vmem:[%s10402_s5 + $0x64] sm:$0xf] }
 0x3b0   : > { %v8668_v54 = vcombine.low %v5865_v61, %v5868_v32  ;;  %v8678_v60 = vcombine.low %v5760_v52, %v12237_v6  ;;  %v8794_v0 = vld [vmem:[%s10402_s5 + $0x68] sm:$0xf]  ;;  %v7306_v19 = vld [vmem:[%s10407_s8 + $0x1c] sm:$0xf]  ;;  %v8801_v35 = vcombine.low %v12317_v26, %v8793_v33  ;;  %v5762_v34 = vld [vmem:[%s10402_s5 + $0xc] sm:$0xf] }
 0x3b1   : > { %v5875_v24 = vsel %vm12243_vm9, %v5873_v5, %v5874_v14  ;;  %v8802_v12 = vcombine.low %v12395_v51, %v8794_v0  ;;  %v5764_v44 = vld [vmem:[%s10402_s5 + $0x18] sm:$0xf]  ;;  %v12409_v7 = vld [vmem:[%s10402_s5 + $0x70] sm:$0xf]  ;;  %v8679_v8 = vcombine.low %v5762_v34, %v12259_v55  ;;  %v8795_v26 = vld [vmem:[%s10402_s5 + $0x74] sm:$0xf] }
 0x3b2   : > { %9578 = vmatmul.mubr.msk.bf16.gmra.mrb[8].mxu1 %vm5901_vm10, %v8667_v36  ;;  %v8669_v27 = vcombine.low %v5872_v43, %v5875_v24  ;;  %v8680_v41 = vcombine.low %v5764_v44, %v12283_v2  ;;  %v12416_v39 = vld [vmem:[%s10402_s5 + $0x7c] sm:$0xf]  ;;  %v8796_v3 = vld [vmem:[%s10402_s5 + $0x80] sm:$0xf]  ;;  %v6241_v62 = vsel %vm5926_vm6, %v6191_v9, 0  ;;  %v8803_v30 = vcombine.low %v12409_v7, %v8795_v26  ;;  %v10243_v18 = vld [vmem:[%s10402_s5 + $0x84] sm:$0xff]  }
 0x3b3   : > { %9581 = vmatprep.mubr.msk.bf16.mxu1 %vm5901_vm10, %v8668_v54  ;;  %v6373_v38 = vld [vmem:[%s10407_s8 + $0xc] sm:$0xf]  ;;  %v8804_v59 = vcombine.low %v12416_v39, %v8796_v3  ;;  %v5766_v40 = vld [vmem:[%s10402_s5 + $0x24] sm:$0xf]  ;;  %v5768_v10 = vld [vmem:[%s10402_s5 + $0x30] sm:$0xf] }
 0x3b4   : > { %v8681_v63 = vcombine.low %v5766_v40, %v12305_v46  ;;  %v12432_v20 = vld [vmem:[%s10402_s5 + $0x88] sm:$0xf]  ;;  %v8797_v16 = vld [vmem:[%s10402_s5 + $0x8c] sm:$0xf]  ;;  %v8682_v58 = vcombine.low %v5768_v10, %v12325_v50  ;;  %v10237_v49 = vld [vmem:[%s10402_s5 + $0x60] sm:$0xff]   ;;  %v7356_v23 = vsel %vm5926_vm6, %v7306_v19, 0 }
 0x3b5   : > { %9660 = vmatmul.mubr.msk.bf16.vlgmr.msra.gmra.mrb[0].mxu0 %vm5901_vm10, %v8799_v57  ;;  %v8805_v28 = vcombine.low %v12432_v20, %v8797_v16  ;;  %v5770_v4 = vld [vmem:[%s10402_s5 + $0x3c] sm:$0xf]  ;;  %v5772_v22 = vld [vmem:[%s10402_s5 + $0x48] sm:$0xf]  ;;  %v5774_v31 = vld [vmem:[%s10402_s5 + $0x54] sm:$0xf] }
 0x3b6   : > { %9676 = vmatpush3.bf16.msra.mxu0 %v7087_v47  ;;  %9663 = vmatprep.mubr.msk.bf16.mxu0 %vm5901_vm10, %v8800_v45  ;;  %v8683_v56 = vcombine.low %v5770_v4, %v12340_v37  ;;  %v8684_v11 = vcombine.low %v5772_v22, %v12353_v1  ;;  %v10241_v15 = vld [vmem:[%s10402_s5 + $0x78] sm:$0xff]   ;;  %v6183_v17 = vld [vmem:[%s10402_s5 + $0x8] sm:$0xf]  ;;  %v12454_v29 = vld [vmem:[%s10407_s8 + $0x20] sm:$0xf]  ;;  %v8685_v36 = vcombine.low %v5774_v31, %v12363_v53  ;;  %v6439_v57 = vsel %vm5926_vm6, %v6373_v38, 0 }
 0x3b7   : > { %10147 = vmatprep.subr.msk.bf16.mxu0 %vm5926_vm6, %v7306_v19  ;;  %v8694_v61 = vcombine.low %v12237_v6, %v6183_v17  ;;  %v10245_v32 = vld [vmem:[%s10402_s5 + $0x90] sm:$0xff]   ;;  %v6185_v5 = vld [vmem:[%s10402_s5 + $0x20] sm:$0xf]  ;;  %v12469_v14 = vld [vmem:[%s10402_s5 + $0x64] sm:$0xf] }
 0x3b8   : > { %v6184_v21 = vld [vmem:[%s10402_s5 + $0x14] sm:$0xf]  ;;  %v8696_v9 = vcombine.low %v12283_v2, %v6185_v5  ;;  %v7252_v54 = vrot.slane %v12469_v14, 6  ;;  %v8846_v45 = vld [vmem:[%s10402_s5 + $0x60] sm:$0xc]  ;;  %v10249_v24 = vld [vmem:[%s10402_s5 + $0xa8] sm:$0xff]  }
 0x3b9   : > { %v8695_v6 = vcombine.low %v12259_v55, %v6184_v21  ;;  %v8848_v47 = vld [vmem:[%s10402_s5 + $0x68] sm:$0x3]  ;;  %v10247_v43 = vld [vmem:[%s10402_s5 + $0x9c] sm:$0xff]   ;;  %v6186_v52 = vld [vmem:[%s10402_s5 + $0x2c] sm:$0xf]  ;;  %v8870_v55 = vrot.slane %v8846_v45, 10 }
 0x3ba   : > { %9582 = vmatmul.mubr.msk.bf16.gmra.mrb[12].mxu1 %vm5901_vm10, %v8669_v27  ;;  %v7254_v33 = vrot.slane %v7252_v54, 4  ;;  %v7255_v2 = vrot.slane %v8848_v47, 6  ;;  %v12485_v27 = vld [vmem:[%s10402_s5 + $0x70] sm:$0xf]  ;;  %v12489_v0 = vld [vmem:[%s10402_s5 + $0x7c] sm:$0xf]  ;;  %v8697_v19 = vcombine.low %v12305_v46, %v6186_v52 }
 0x3bb   : > { %9587 = vmatprep.mubr.msk.bf16.mxu1 %vm5901_vm10, %v8678_v60  ;;  %v6187_v60 = vld [vmem:[%s10402_s5 + $0x38] sm:$0xf]  ;;  %v7253_v34 = vsel %vm12243_vm9, %v8870_v55, %v7252_v54  ;;  %v7266_v26 = vrot.slane %v12489_v0, 6  ;;  %v8854_v3 = vld [vmem:[%s10402_s5 + $0x80] sm:$0x3]  ;;  %v10256_v55 = vld [vmem:[%s10402_s5 + $0x30] sm:$0xff]  }
 0x3bc   : > { %v7256_v44 = vsel %vm12243_vm9, %v7254_v33, %v7255_v2  ;;  %v10251_v46 = vld [vmem:[%s10402_s5 + $0xb4] sm:$0xff]   ;;  %v12512_v16 = vld [vmem:[%s10402_s5 + $0x88] sm:$0xf]  ;;  %v8857_v31 = vld [vmem:[%s10402_s5 + $0x8c] sm:$0x3] }
 0x3bd   : > { %9664 = vmatmul.mubr.msk.bf16.gmra.mrb[4].mxu0 %vm5901_vm10, %v8801_v35  ;;  %v7259_v35 = vrot.slane %v12485_v27, 6  ;;  %v7268_v10 = vrot.slane %v7266_v26, 4  ;;  %v8858_v17 = vld [vmem:[%s10402_s5 + $0x90] sm:$0xc]  ;;  %v7276_v5 = vrot.slane %v8857_v31, 6 }
 0x3be   : > { %9667 = vmatprep.mubr.msk.bf16.mxu0 %vm5901_vm10, %v8802_v12  ;;  %v8698_v12 = vcombine.low %v12325_v50, %v6187_v60  ;;  %v6188_v50 = vld [vmem:[%s10402_s5 + $0x44] sm:$0xf]  ;;  %v12542_v45 = vld [vmem:[%s10402_s5 + $0xa0] sm:$0xf]  ;;  %v12545_v47 = vld [vmem:[%s10402_s5 + $0xac] sm:$0xf] }
 0x3bf   : > { %v7287_v52 = vrot.slane %v12542_v45, 6  ;;  %v8861_v60 = vld [vmem:[%s10402_s5 + $0x9c] sm:$0xc] }
 0x3c2   : > { %9588 = vmatmul.mubr.msk.bf16.vlgmr.msra.gmra.mrb[0].mxu1 %vm5901_vm10, %v8679_v8  ;;  %v8849_v8 = vld [vmem:[%s10402_s5 + $0x6c] sm:$0xc] }
 0x3c3   : > { %9604 = vmatpush3.bf16.msra.mxu1 %v6241_v62  ;;  %9591 = vmatprep.mubr.msk.bf16.mxu1 %vm5901_vm10, %v8680_v41  ;;  %v8852_v41 = vld [vmem:[%s10402_s5 + $0x78] sm:$0xc]  ;;  %v8878_v62 = vcombine.low %v7253_v34, %v7256_v44 }
 0x3c4   : > { %10142 = vmatprep.subr.msk.bf16.mxu1 %vm5926_vm6, %v6373_v38  ;;  %v7261_v38 = vrot.slane %v7259_v35, 4  ;;  %v8872_v40 = vrot.slane %v8852_v41, 10 }
 0x3c5   : > { %9668 = vmatmul.mubr.msk.bf16.gmra.mrb[8].mxu0 %vm5901_vm10, %v8803_v30  ;;  %v8871_v30 = vrot.slane %v8849_v8, 10  ;;  %v8875_v8 = vrot.slane %v8861_v60, 10 }
 0x3c6   : > { %9671 = vmatprep.mubr.msk.bf16.mxu0 %vm5901_vm10, %v8804_v59 }
 0x3c7   : > { %v7260_v4 = vsel %vm12243_vm9, %v8871_v30, %v7259_v35  ;;  %v8864_v35 = vld [vmem:[%s10402_s5 + $0xa8] sm:$0xc]  ;;  %v7288_v30 = vsel %vm12243_vm9, %v8875_v8, %v7287_v52 }
 0x3c8   : > { %v8876_v41 = vrot.slane %v8864_v35, 10  ;;  %v8898_v35 = vld [vmem:[%s10402_s5 + $0x98] sm:$0xf] }
 0x3ca   : > { %9592 = vmatmul.mubr.msk.bf16.gmra.mrb[4].mxu1 %vm5901_vm10, %v8681_v63  ;;  %v7269_v63 = vrot.slane %v8854_v3, 6 }
 0x3cb   : > { %9595 = vmatprep.mubr.msk.bf16.mxu1 %vm5901_vm10, %v8682_v58  ;;  %v6189_v58 = vld [vmem:[%s10402_s5 + $0x50] sm:$0xf] }
 0x3cd   : > { %9672 = vmatmul.mubr.msk.bf16.gmra.mrb[12].mxu0 %vm5901_vm10, %v8805_v28  ;;  %v12516_v28 = vld [vmem:[%s10402_s5 + $0x94] sm:$0xf] }
 0x3ce   : > { %9677 = vmatprep.mubr.msk.bf16.mxu0 %vm5901_vm10, %v10237_v49  ;;  %v8699_v49 = vcombine.low %v12340_v37, %v6188_v50  ;;  %v7280_v37 = vrot.slane %v12516_v28, 6  ;;  %v10257_v50 = vld [vmem:[%s10402_s5 + $0x3c] sm:$0xff]  }
 0x3d0   : > { %v7282_v54 = vrot.slane %v7280_v37, 4 }
 0x3d2   : > { %9596 = vmatmul.mubr.msk.bf16.gmra.mrb[8].mxu1 %vm5901_vm10, %v8683_v56  ;;  %v7273_v56 = vrot.slane %v12512_v16, 6 }
 0x3d3   : > { %9599 = vmatprep.mubr.msk.bf16.mxu1 %vm5901_vm10, %v8684_v11  ;;  %v8700_v11 = vcombine.low %v12353_v1, %v6189_v58  ;;  %v8867_v58 = vld [vmem:[%s10402_s5 + $0xb4] sm:$0xc] }
 0x3d4   : > { %v7275_v21 = vrot.slane %v7273_v56, 4 }
 0x3d5   : > { %9678 = vmatmul.mubr.msk.bf16.vlgmr.msra.gmra.mrb[0].mxu0 %vm5901_vm10, %v10239_v48  ;;  %v7267_v48 = vsel %vm12243_vm9, %v8872_v40, %v7266_v26  ;;  %v10258_v40 = vld [vmem:[%s10402_s5 + $0x48] sm:$0xff]  }
 0x3d6   : > { %9694 = vmatpush3.bf16.msra.mxu0 %v7356_v23  ;;  %9681 = vmatprep.mubr.msk.bf16.mxu0 %vm5901_vm10, %v10241_v15  ;;  %v7270_v15 = vsel %vm12243_vm9, %v7268_v10, %v7269_v63  ;;  %v8855_v23 = vld [vmem:[%s10402_s5 + $0x84] sm:$0xc] }
 0x3d7   : > { %10148 = vmatprep.subr.msk.bf16.mxu0 %vm5926_vm6, %v12454_v29  ;;  %v8873_v1 = vrot.slane %v8855_v23, 10 }
 0x3da   : > { %9600 = vmatmul.mubr.msk.bf16.gmra.mrb[12].mxu1 %vm5901_vm10, %v8685_v36  ;;  %v8860_v36 = vld [vmem:[%s10402_s5 + $0x98] sm:$0x3] }
 0x3db   : > { %9605 = vmatprep.mubr.msk.bf16.mxu1 %vm5901_vm10, %v8694_v61 }
 0x3dd   : > { %9682 = vmatmul.mubr.msk.bf16.gmra.mrb[4].mxu0 %vm5901_vm10, %v10243_v18  ;;  %v8880_v18 = vcombine.low %v7267_v48, %v7270_v15  ;;  %v10259_v15 = vld [vmem:[%s10402_s5 + $0x54] sm:$0xff]  }
 0x3de   : > { %9685 = vmatprep.mubr.msk.bf16.mxu0 %vm5901_vm10, %v10245_v32  ;;  %v6190_v32 = vld [vmem:[%s10402_s5 + $0x5c] sm:$0xf] }
 0x3e2   : > { %9606 = vmatmul.mubr.msk.bf16.vlgmr.msra.gmra.mrb[0].mxu1 %vm5901_vm10, %v8695_v6  ;;  %v7537_v6 = vsel %vm5926_vm6, %v12454_v29, 0  ;;  %v8701_v29 = vcombine.low %v12363_v53, %v6190_v32  ;;  %v7294_v53 = vrot.slane %v12545_v47, 6  ;;  %v8756_v32 = vld [vmem:[%s10402_s5 + $0x68] sm:$0x3] }
 0x3e3   : > { %9622 = vmatpush3.bf16.msra.mxu1 %v6439_v57  ;;  %9609 = vmatprep.mubr.msk.bf16.mxu1 %vm5901_vm10, %v8696_v9  ;;  %v8874_v9 = vrot.slane %v8858_v17, 10  ;;  %v7283_v57 = vrot.slane %v8860_v36, 6 }
 0x3e4   : > { %10144 = vmatprep.subr.msk.bf16.mxu1 %vm5926_vm6, %v12226_v13  ;;  %v8851_v13 = vld [vmem:[%s10402_s5 + $0x74] sm:$0x3]  ;;  %v7296_v3 = vrot.slane %v7294_v53, 4  ;;  %v7295_v10 = vsel %vm12243_vm9, %v8876_v41, %v7294_v53 }
 0x3e5   : > { %9686 = vmatmul.mubr.msk.bf16.gmra.mrb[8].mxu0 %vm5901_vm10, %v10247_v43  ;;  %v7262_v59 = vrot.slane %v8851_v13, 6  ;;  %v7274_v43 = vsel %vm12243_vm9, %v8873_v1, %v7273_v56  ;;  %v7281_v33 = vsel %vm12243_vm9, %v8874_v9, %v7280_v37  ;;  %v7284_v2 = vsel %vm12243_vm9, %v7282_v54, %v7283_v57  ;;  %v10260_v37 = vld [vmem:[%s10402_s5 + $0x60] sm:$0xff]   ;;  %v10262_v1 = vld [vmem:[%s10402_s5 + $0x6c] sm:$0xff]  }
 0x3e6   : > { %9689 = vmatprep.mubr.msk.bf16.mxu0 %vm5901_vm10, %v10249_v24  ;;  %v7277_v24 = vsel %vm12243_vm9, %v7275_v21, %v7276_v5  ;;  %v8882_v44 = vcombine.low %v7281_v33, %v7284_v2  ;;  %v7289_v13 = vrot.slane %v7287_v52, 4  ;;  %v8877_v56 = vrot.slane %v8867_v58, 10  ;;  %v8895_v21 = vld [vmem:[%s10402_s5 + $0x74] sm:$0xf]  ;;  %v10264_v5 = vld [vmem:[%s10402_s5 + $0x78] sm:$0xff]  }
 0x3e7   : > { %v7263_v22 = vsel %vm12243_vm9, %v7261_v38, %v7262_v59  ;;  %v8881_v34 = vcombine.low %v7274_v43, %v7277_v24  ;;  %v6635_v54 = vrot.slane %v8756_v32, 6  ;;  %v8757_v43 = vld [vmem:[%s10402_s5 + $0x6c] sm:$0xc]  ;;  %v8759_v24 = vld [vmem:[%s10402_s5 + $0x74] sm:$0x3]  ;;  %v6646_v52 = vrot.slane %v12416_v39, 6 }
 0x3e8   : > { %v8879_v61 = vcombine.low %v7260_v4, %v7263_v22  ;;  %v8762_v2 = vld [vmem:[%s10402_s5 + $0x80] sm:$0x3]  ;;  %v8771_v60 = vrot.slane %v8757_v43, 10  ;;  %v6642_v53 = vrot.slane %v8759_v24, 6 }
 0x3e9   : > { %v7652_v32 = vld [vmem:[#allocation2] sm:$0xff] }
 0x3ea   : > { %9610 = vmatmul.mubr.msk.bf16.gmra.mrb[4].mxu1 %vm5901_vm10, %v8697_v19  ;;  %v8863_v19 = vld [vmem:[%s10402_s5 + $0xa4] sm:$0x3] }
 0x3eb   : > { %9613 = vmatprep.mubr.msk.bf16.mxu1 %vm5901_vm10, %v8698_v12  ;;  %v8866_v12 = vld [vmem:[%s10402_s5 + $0xb0] sm:$0x3]  ;;  %v7290_v26 = vrot.slane %v8863_v19, 6 }
 0x3ed   : > { %9690 = vmatmul.mubr.msk.bf16.gmra.mrb[12].mxu0 %vm5901_vm10, %v10251_v46  ;;  %v7297_v46 = vrot.slane %v8866_v12, 6  ;;  %v7291_v38 = vsel %vm12243_vm9, %v7289_v13, %v7290_v26  ;;  %v6648_v12 = vrot.slane %v6646_v52, 4  ;;  %v8906_v13 = vcombine.low %v12516_v28, %v8898_v35 }
 0x3ee   : > { %9695 = vmatprep.mubr.msk.bf16.mxu0 %vm5901_vm10, %v8878_v62  ;;  %v12568_v62 = vld [vmem:[%s10402_s5 + $0xb8] sm:$0xf]  ;;  %v8883_v4 = vcombine.low %v7288_v30, %v7291_v38  ;;  %v8765_v30 = vld [vmem:[%s10402_s5 + $0x8c] sm:$0x3]  ;;  %v8899_v38 = vld [vmem:[%s10402_s5 + $0xa4] sm:$0xf] }
 0x3ef   : > { %v7301_v59 = vrot.slane %v12568_v62, 6  ;;  %v7298_v63 = vsel %vm12243_vm9, %v7296_v3, %v7297_v46  ;;  %v6653_v3 = vrot.slane %v12432_v20, 6  ;;  %v8900_v20 = vld [vmem:[%s10402_s5 + $0xb0] sm:$0xf]  ;;  %v8907_v58 = vcombine.low %v12542_v45, %v8899_v38 }
 0x3f0   : > { %v8884_v22 = vcombine.low %v7295_v10, %v7298_v63  ;;  %v6656_v63 = vrot.slane %v8765_v30, 6 }
 0x3f1   : > { %v7302_v23 = vsel %vm12243_vm9, %v8877_v56, %v7301_v59 }
 0x3f2   : > { %9614 = vmatmul.mubr.msk.bf16.gmra.mrb[8].mxu1 %vm5901_vm10, %v8699_v49  ;;  %v8869_v49 = vld [vmem:[%s10402_s5 + $0xbc] sm:$0x3] }
 0x3f3   : > { %9617 = vmatprep.mubr.msk.bf16.mxu1 %vm5901_vm10, %v8700_v11  ;;  %v7303_v11 = vrot.slane %v7301_v59, 4  ;;  %v7304_v48 = vrot.slane %v8869_v49, 6  ;;  %v6655_v59 = vrot.slane %v6653_v3, 4  ;;  %v8908_v49 = vcombine.low %v12545_v47, %v8900_v20 }
 0x3f5   : > { %9696 = vmatmul.mubr.msk.bf16.vlgmr.msra.gmra.mrb[0].mxu0 %vm5901_vm10, %v8879_v61  ;;  %v7305_v31 = vsel %vm12243_vm9, %v7303_v11, %v7304_v48  ;;  %v6632_v61 = vrot.slane %v12395_v51, 6  ;;  %v8903_v51 = vcombine.low %v12485_v27, %v8895_v21  ;;  %v8760_v27 = vld [vmem:[%s10402_s5 + $0x78] sm:$0xc]  ;;  %v8901_v11 = vld [vmem:[%s10402_s5 + $0xbc] sm:$0xf] }
 0x3f6   : > { %9712 = vmatpush3.bf16.msra.mxu0 %v7537_v6  ;;  %9699 = vmatprep.mubr.msk.bf16.mxu0 %vm5901_vm10, %v8880_v18  ;;  %v8885_v17 = vcombine.low %v7302_v23, %v7305_v31  ;;  %v8754_v18 = vld [vmem:[%s10402_s5 + $0x60] sm:$0xc]  ;;  %v8909_v45 = vcombine.low %v12568_v62, %v8901_v11  ;;  %v7655_v62 = vld [vmem:[#allocation2 + $0x18] sm:$0xff] }
 0x3f7   : > { %v8896_v6 = vld [vmem:[%s10402_s5 + $0x80] sm:$0xf]  ;;  %v6634_v9 = vrot.slane %v6632_v61, 4 }
 0x3f8   : > { %v8904_v57 = vcombine.low %v12489_v0, %v8896_v6  ;;  %v8897_v0 = vld [vmem:[%s10402_s5 + $0x8c] sm:$0xf] }
 0x3f9   : > { %v6636_v33 = vsel %vm12243_vm9, %v6634_v9, %v6635_v54  ;;  %v8905_v8 = vcombine.low %v12512_v16, %v8897_v0  ;;  %v12664_v54 = vld [vmem:[%s12713_s2] ss:$0 sm:$0xff] }
 0x3fa   : > { %9618 = vmatmul.mubr.msk.bf16.gmra.mrb[12].mxu1 %vm5901_vm10, %v8701_v29  ;;  %v6639_v29 = vrot.slane %v12409_v7, 6  ;;  %v10266_v7 = vld [vmem:[%s10402_s5 + $0x84] sm:$0xff]  }
 0x3fb   : > { %9623 = vmatprep.mubr.msk.bf16.mxu1 %vm5901_vm10, %v10256_v55 }
 0x3fc   : > { %v6641_v19 = vrot.slane %v6639_v29, 4  ;;  %v6640_v26 = vsel %vm12243_vm9, %v8771_v60, %v6639_v29 }
 0x3fd   : > { %9700 = vmatmul.mubr.msk.bf16.gmra.mrb[4].mxu0 %vm5901_vm10, %v8881_v34  ;;  %v8772_v34 = vrot.slane %v8760_v27, 10 }
 0x3fe   : > { %9703 = vmatprep.mubr.msk.bf16.mxu0 %vm5901_vm10, %v8882_v44  ;;  %v6649_v44 = vrot.slane %v8762_v2, 6  ;;  %v6643_v41 = vsel %vm12243_vm9, %v6641_v19, %v6642_v53  ;;  %v7658_v2 = vld [vmem:[#allocation2 + $0x30] sm:$0xff]  ;;  %v7656_v19 = vld [vmem:[#allocation2 + $0x20] sm:$0xff] }
 0x3ff   : > { %v6647_v46 = vsel %vm12243_vm9, %v8772_v34, %v6646_v52  ;;  %v8779_v28 = vcombine.low %v6640_v26, %v6643_v41 }
 0x400   : > { %v6650_v16 = vsel %vm12243_vm9, %v6648_v12, %v6649_v44  ;;  %v7659_v12 = vld [vmem:[#allocation2 + $0x38] sm:$0xff] }
 0x402   : > { %9624 = vmatmul.mubr.msk.bf16.vlgmr.msra.gmra.mrb[0].mxu1 %vm5901_vm10, %v10257_v50  ;;  %v8763_v50 = vld [vmem:[%s10402_s5 + $0x84] sm:$0xc] }
 0x403   : > { %9990 = vmatpush3.bf16.msra.mxu1 %v12234_v42  ;;  %9627 = vmatprep.mubr.msk.bf16.mxu1 %vm5901_vm10, %v10258_v40  ;;  %v8894_v42 = vld [vmem:[%s10402_s5 + $0x68] sm:$0xf]  ;;  %v8780_v40 = vcombine.low %v6647_v46, %v6650_v16  ;;  %v8773_v10 = vrot.slane %v8763_v50, 10 }
 0x404   : > { %v8902_v36 = vcombine.low %v12469_v14, %v8894_v42  ;;  %v8770_v14 = vrot.slane %v8754_v18, 10 }
 0x405   : > { %9704 = vmatmul.mubr.msk.bf16.gmra.mrb[8].mxu0 %vm5901_vm10, %v8883_v4  ;;  %v6654_v4 = vsel %vm12243_vm9, %v8773_v10, %v6653_v3  ;;  %v7662_v10 = vld [vmem:[#allocation2 + $0x50] sm:$0xff] }
 0x406   : > { %9707 = vmatprep.mubr.msk.bf16.mxu0 %vm5901_vm10, %v8884_v22  ;;  %v6633_v55 = vsel %vm12243_vm9, %v8770_v14, %v6632_v61  ;;  %v6657_v22 = vsel %vm12243_vm9, %v6655_v59, %v6656_v63  ;;  %v7653_v14 = vld [vmem:[#allocation2 + $0x8] sm:$0xff] }
 0x407   : > { %v8778_v39 = vcombine.low %v6633_v55, %v6636_v33  ;;  %v8781_v56 = vcombine.low %v6654_v4, %v6657_v22  ;;  %v7660_v22 = vld [vmem:[#allocation2 + $0x40] sm:$0xff] }
 0x40a   : > { %9628 = vmatmul.mubr.msk.bf16.gmra.mrb[4].mxu1 %vm5901_vm10, %v10259_v15 }
 0x40b   : > { %9631 = vmatprep.mubr.msk.bf16.mxu1 %vm5901_vm10, %v10260_v37 }
 0x40d   : > { %9708 = vmatmul.mubr.msk.bf16.gmra.mrb[12].mxu0 %vm5901_vm10, %v8885_v17 }
 0x40e   : > { %9713 = vmatprep.mubr.msk.bf16.mxu0 %vm5901_vm10, %v8902_v36  ;;  %v7654_v36 = vld [vmem:[#allocation2 + $0x10] sm:$0xff] }
 0x412   : > { %9632 = vmatmul.mubr.msk.bf16.gmra.mrb[8].mxu1 %vm5901_vm10, %v10262_v1 }
 0x413   : > { %9635 = vmatprep.mubr.msk.bf16.mxu1 %vm5901_vm10, %v10264_v5 }
 0x415   : > { %9714 = vmatmul.mubr.msk.bf16.vlgmr.msra.gmra.mrb[0].mxu0 %vm5901_vm10, %v8903_v51 }
 0x416   : > { %9717 = vmatprep.mubr.msk.bf16.mxu0 %vm5901_vm10, %v8904_v57 }
 0x41a   : > { %9636 = vmatmul.mubr.msk.bf16.gmra.mrb[12].mxu1 %vm5901_vm10, %v10266_v7 }
 0x41b   : > { %9649 = vmatprep.mubr.msk.bf16.mxu1 %vm5901_vm10, %v8778_v39 }
 0x41d   : > { %9718 = vmatmul.mubr.msk.bf16.gmra.mrb[4].mxu0 %vm5901_vm10, %v8905_v8 }
 0x41e   : > { %9721 = vmatprep.mubr.msk.bf16.mxu0 %vm5901_vm10, %v8906_v13  ;;  %v7657_v13 = vld [vmem:[#allocation2 + $0x28] sm:$0xff] }
 0x422   : > { %9650 = vmatmul.mubr.msk.bf16.vlgmr.msra.gmra.mrb[8].mxu1 %vm5901_vm10, %v8779_v28 }
 0x423   : > { %9653 = vmatprep.mubr.msk.bf16.mxu1 %vm5901_vm10, %v8780_v40 }
 0x425   : > { %9722 = vmatmul.mubr.msk.bf16.gmra.mrb[8].mxu0 %vm5901_vm10, %v8907_v58 }
 0x426   : > { %9725 = vmatprep.mubr.msk.bf16.mxu0 %vm5901_vm10, %v8908_v49 }
 0x42a   : > { %9654 = vmatmul.mubr.msk.bf16.gmra.mrb[12].mxu1 %vm5901_vm10, %v8781_v56 }
 0x42d   : > { %9726 = vmatmul.mubr.msk.bf16.gmra.mrb[12].mxu0 %vm5901_vm10, %v8909_v45 }
 0x4d5   : > { %v9625_v47 = vpop.f32.mrb[0].mxu1 }
 0x4d6   : > { %v6475_v48 = vpop.f32.mrb[1].mxu1 }
 0x4d7   : > { %v9626_v15 = vpop.f32.mrb[2].mxu1 }
 0x4d8   : > { %v6478_v23 = vpop.f32.mrb[3].mxu1 }
 0x4dd   : > { %v9629_v31 = vpop.f32.mrb[4].mxu1 }
 0x4de   : > { %v6491_v37 = vpop.f32.mrb[5].mxu1 }
 0x4df   : > { %v9630_v25 = vpop.f32.mrb[6].mxu1 }
 0x4e0   : > { %v6494_v42 = vpop.f32.mrb[7].mxu1 }
 0x4e8   : > { %v9715_v17 = vpop.f32.mrb[0].mxu0 }
 0x4e9   : > { %v9991_v61 = vadd.f32 %v9715_v17, %v9625_v47  ;;  %v7573_v18 = vpop.f32.mrb[1].mxu0  ;;  %v7663_v47 = vld [vmem:[#allocation2 + $0x58] sm:$0xff] }
 0x4ea   : > { %v9992_v1 = vadd.f32 %v7573_v18, %v6475_v48  ;;  %v9716_v21 = vpop.f32.mrb[2].mxu0 }
 0x4eb   : > { %v7670_v5 = vadd.f32 %v9991_v61, %v7654_v36  ;;  %v9993_v6 = vadd.f32 %v9716_v21, %v9626_v15  ;;  %v7576_v9 = vpop.f32.mrb[3].mxu0 }
 0x4ec   : > { %v7668_v51 = vadd.f32 %v9992_v1, %v7652_v32  ;;  %v9994_v57 = vadd.f32 %v7576_v9, %v6478_v23 }
 0x4ed   : > { %7686 = vst [vmem:[#allocation2 + $0x10] sm:$0xff] %v7670_v5  ;;  %v7671_v29 = vadd.f32 %v9993_v6, %v7655_v62  ;;  %v7725_v24 = vadd.f32 %v12664_v54, %v7670_v5  ;;  %v7666_v6 = vld [vmem:[#allocation2 + $0x70] sm:$0xff] }
 0x4ee   : > { %7684 = vst [vmem:[#allocation2] sm:$0xff] %v7668_v51  ;;  %v7669_v43 = vadd.f32 %v9994_v57, %v7653_v14  ;;  %v7723_v55 = vadd.f32 %v12664_v54, %v7668_v51 }
 0x4ef   : > { %7687 = vst [vmem:[#allocation2 + $0x18] sm:$0xff] %v7671_v29  ;;  %v7726_v52 = vadd.f32 %v12664_v54, %v7671_v29  ;;  %v7664_v29 = vld [vmem:[#allocation2 + $0x60] sm:$0xff] }
 0x4f0   : > { %7685 = vst [vmem:[#allocation2 + $0x8] sm:$0xff] %v7669_v43  ;;  %v7724_v33 = vadd.f32 %v12664_v54, %v7669_v43  ;;  %v9719_v27 = vpop.f32.mrb[4].mxu0 }
 0x4f1   : > { %v8961_v7 = vpack.c.bf16 %v7726_v52, %v7725_v24  ;;  %v9995_v0 = vadd.f32 %v9719_v27, %v9629_v31  ;;  %v7589_v60 = vpop.f32.mrb[5].mxu0  ;;  %v7661_v31 = vld [vmem:[#allocation2 + $0x48] sm:$0xff] }
 0x4f2   : > { %v8956_v53 = vpack.c.bf16 %v7724_v33, %v7723_v55  ;;  %v9996_v39 = vadd.f32 %v7589_v60, %v6491_v37  ;;  %v9720_v35 = vpop.f32.mrb[6].mxu0  ;;  %v7667_v55 = vld [vmem:[#allocation2 + $0x78] sm:$0xff] }
 0x4f3   : > { %8993 = vst [vmem:[%s10412_s25 + $0x8] sm:$0xff] %v8961_v7   ;;  %v7674_v34 = vadd.f32 %v9995_v0, %v7658_v2  ;;  %v9997_v44 = vadd.f32 %v9720_v35, %v9630_v25  ;;  %v7592_v8 = vpop.f32.mrb[7].mxu0  ;;  %v7665_v7 = vld [vmem:[#allocation2 + $0x68] sm:$0xff] }
 0x4f4   : > { %8957 = vst [vmem:[%s10412_s25] sm:$0xff] %v8956_v53   ;;  %v7672_v26 = vadd.f32 %v9996_v39, %v7656_v19  ;;  %v9998_v41 = vadd.f32 %v7592_v8, %v6494_v42 }
 0x4f5   : > { %7690 = vst [vmem:[#allocation2 + $0x30] sm:$0xff] %v7674_v34  ;;  %v7675_v3 = vadd.f32 %v9997_v44, %v7659_v12  ;;  %v9651_v46 = vpop.f32.mrb[8].mxu1  ;;  %v7729_v30 = vadd.f32 %v12664_v54, %v7674_v34 }
 0x4f6   : > { %7688 = vst [vmem:[#allocation2 + $0x20] sm:$0xff] %v7672_v26  ;;  %v7673_v16 = vadd.f32 %v9998_v41, %v7657_v13  ;;  %v6776_v50 = vpop.f32.mrb[9].mxu1  ;;  %v7727_v59 = vadd.f32 %v12664_v54, %v7672_v26 }
 0x4f7   : > { %7691 = vst [vmem:[#allocation2 + $0x38] sm:$0xff] %v7675_v3  ;;  %v7730_v28 = vadd.f32 %v12664_v54, %v7675_v3  ;;  %v9652_v38 = vpop.f32.mrb[10].mxu1 }
 0x4f8   : > { %7689 = vst [vmem:[#allocation2 + $0x28] sm:$0xff] %v7673_v16  ;;  %v7728_v40 = vadd.f32 %v12664_v54, %v7673_v16  ;;  %v9723_v20 = vpop.f32.mrb[8].mxu0  ;;  %v6779_v63 = vpop.f32.mrb[11].mxu1 }
 0x4f9   : > { %v8971_v58 = vpack.c.bf16 %v7730_v28, %v7729_v30  ;;  %v9999_v49 = vadd.f32 %v9723_v20, %v9651_v46  ;;  %v7605_v4 = vpop.f32.mrb[9].mxu0 }
 0x4fa   : > { %v8966_v56 = vpack.c.bf16 %v7728_v40, %v7727_v59  ;;  %v10000_v11 = vadd.f32 %v7605_v4, %v6776_v50  ;;  %v9724_v45 = vpop.f32.mrb[10].mxu0 }
 0x4fb   : > { %8995 = vst [vmem:[%s10412_s25 + $0x18] sm:$0xff] %v8971_v58   ;;  %v7678_v48 = vadd.f32 %v9999_v49, %v7662_v10  ;;  %v10001_v15 = vadd.f32 %v9724_v45, %v9652_v38  ;;  %v7608_v23 = vpop.f32.mrb[11].mxu0 }
 0x4fc   : > { %8994 = vst [vmem:[%s10412_s25 + $0x10] sm:$0xff] %v8966_v56   ;;  %v7676_v37 = vadd.f32 %v10000_v11, %v7660_v22  ;;  %v10002_v25 = vadd.f32 %v7608_v23, %v6779_v63 }
 0x4fd   : > { %7694 = vst [vmem:[#allocation2 + $0x50] sm:$0xff] %v7678_v48  ;;  %v7679_v42 = vadd.f32 %v10001_v15, %v7663_v47  ;;  %v9655_v17 = vpop.f32.mrb[12].mxu1  ;;  %v7733_v18 = vadd.f32 %v12664_v54, %v7678_v48 }
 0x4fe   : > { %7692 = vst [vmem:[#allocation2 + $0x40] sm:$0xff] %v7676_v37  ;;  %v7677_v36 = vadd.f32 %v10002_v25, %v7661_v31  ;;  %v6792_v61 = vpop.f32.mrb[13].mxu1  ;;  %v7731_v21 = vadd.f32 %v12664_v54, %v7676_v37 }
 0x4ff   : > { %7695 = vst [vmem:[#allocation2 + $0x58] sm:$0xff] %v7679_v42  ;;  %v7734_v32 = vadd.f32 %v12664_v54, %v7679_v42  ;;  %v9656_v1 = vpop.f32.mrb[14].mxu1 }
 0x500   : > { %7693 = vst [vmem:[#allocation2 + $0x48] sm:$0xff] %v7677_v36  ;;  %v7732_v62 = vadd.f32 %v12664_v54, %v7677_v36  ;;  %v9727_v5 = vpop.f32.mrb[12].mxu0  ;;  %v6795_v9 = vpop.f32.mrb[15].mxu1 }
 0x501   : > { %v8981_v14 = vpack.c.bf16 %v7734_v32, %v7733_v18  ;;  %v10003_v51 = vadd.f32 %v9727_v5, %v9655_v17  ;;  %v7621_v57 = vpop.f32.mrb[13].mxu0 }
 0x502   : > { %v8976_v43 = vpack.c.bf16 %v7732_v62, %v7731_v21  ;;  %v10004_v24 = vadd.f32 %v7621_v57, %v6792_v61  ;;  %v9728_v52 = vpop.f32.mrb[14].mxu0 }
 0x503   : > { %8997 = vst [vmem:[%s10412_s25 + $0x28] sm:$0xff] %v8981_v14   ;;  %v7682_v33 = vadd.f32 %v10003_v51, %v7666_v6  ;;  %v10005_v27 = vadd.f32 %v9728_v52, %v9656_v1  ;;  %v7624_v2 = vpop.f32.mrb[15].mxu0 }
 0x504   : > { %8996 = vst [vmem:[%s10412_s25 + $0x20] sm:$0xff] %v8976_v43   ;;  %v7680_v0 = vadd.f32 %v10004_v24, %v7664_v29  ;;  %v10006_v60 = vadd.f32 %v7624_v2, %v6795_v9 }
 0x505   : > { %7698 = vst [vmem:[#allocation2 + $0x70] sm:$0xff] %v7682_v33  ;;  %v7683_v19 = vadd.f32 %v10005_v27, %v7667_v55  ;;  %v7737_v39 = vadd.f32 %v12664_v54, %v7682_v33 }
 0x506   : > { %7696 = vst [vmem:[#allocation2 + $0x60] sm:$0xff] %v7680_v0  ;;  %v7681_v53 = vadd.f32 %v10006_v60, %v7665_v7  ;;  %v7735_v12 = vadd.f32 %v12664_v54, %v7680_v0 }
 0x507   : > { %7699 = vst [vmem:[#allocation2 + $0x78] sm:$0xff] %v7683_v19  ;;  %v7738_v35 = vadd.f32 %v12664_v54, %v7683_v19 }
 0x508   : > { %7697 = vst [vmem:[#allocation2 + $0x68] sm:$0xff] %v7681_v53  ;;  %v7736_v34 = vadd.f32 %v12664_v54, %v7681_v53 }
 0x509   : > { %v8991_v44 = vpack.c.bf16 %v7738_v35, %v7737_v39 }
 0x50a   : > { %v8986_v8 = vpack.c.bf16 %v7736_v34, %v7735_v12 }
 0x50b   : > { %8999 = vst [vmem:[%s10412_s25 + $0x38] sm:$0xff] %v8991_v44  }
 0x50c   : > { %8998 = vst [vmem:[%s10412_s25 + $0x30] sm:$0xff] %v8986_v8  }
 0x50d PF: > { %s13_s18 = sadd.s32 1, %s10326_s18   ;;  %s12810_s12 = smov %s10314_s15 }
 0x50e   : > { %p10_p13 = scmp.ge.s32.totalorder %s13_s18, 14   ;;  %s12811_s13 = smov %s10318_s16 }
 0x50f   : > { %s12812_s14 = smov %s10322_s17  ;;  %s12813_s15 = smov %s12817_s19 }
 0x510   : > { %s12814_s16 = smov %s12821_s20  ;;  %s12815_s17 = smov %s12825_s21 }
 0x511   :  { %12 = sbr.rel (!%p10_p13) target bundleno = 4 (0x4), region = 88 }

</bundles_post_ra>
